<compile_context>
chip_gen: v5e
topology: v5e:2x2
jax: 0.10.0
libtpu: 0.0.40
codegen_flags: <defaults>
</compile_context>

<pallas_src>
from functools import partial

import numpy as np
import jax
import jax.numpy as jnp
from jax.experimental import pallas as pl
from jax.experimental.pallas import tpu as pltpu


def _residual_conv_block_kernel(x_ref, w_ref, b_ref, o_ref, pad_ref, *,
                                n_stages, D, H, W, C):
    Hp = H + 2                   # padded-H rows per D plane
    WC = W * C                   # lane width (interior starts at lane 0, no W halo)
    M = D * Hp                   # matmul rows; rows with h in {H, H+1} are discarded scratch

    # Zero the halo scratch once per pallas_call (scratch persists across grid steps).  The
    # interior is fully overwritten before every read for every sample/stage, so only the (zero)
    # D/H halo rows matter and they are never written again => exact Conv3d zero padding=1.
    @pl.when(pl.program_id(0) == 0)
    def _():
        pad_ref[...] = jnp.zeros_like(pad_ref)

    cur = None                   # (M, WC) f32 activation in padded-H-row layout after each stage
    for s in range(n_stages):
        # Scatter the stage input (cast to bf16 for the MXU) into the scratch interior, one
        # D-plane at a time; each store is lane-0 aligned and WC lanes wide.
        for d in range(D):
            rows = x_ref[d * H:(d + 1) * H, :] if s == 0 else cur[d * Hp:d * Hp + H, :]
            pad_ref[(d + 1) * Hp + 1:(d + 1) * Hp + 1 + H, :] = rows.astype(jnp.bfloat16)

        # 9 per-tap MXU matmuls accumulated in f32 (no im2col patch is ever materialized).
        # Slab row m = d*Hp + h lines up exactly with padded input row (d+kd)*Hp + (h+kh),
        # so each slab is a contiguous static row-slice view of the scratch.
        acc = None
        for kd in range(3):
            for kh in range(3):
                slab = pad_ref[kd * Hp + kh:kd * Hp + kh + M, :]            # (M, WC) bf16 view
                p = jnp.dot(slab, w_ref[s * 9 + kd * 3 + kh],
                            preferred_element_type=jnp.float32)             # (M, WC) f32
                acc = p if acc is None else acc + p
        acc = acc + b_ref[s]                                                # (1, WC) f32 bias
        if s != n_stages - 1:
            acc = jnp.maximum(acc, 0.0)                                     # ReLU between stages
        cur = acc

    # Residual add + final ReLU; store only the valid interior rows (lane-dense, WC lanes wide,
    # 8-row aligned when H is a multiple of 8).  x is re-read here instead of being held live.
    for d in range(D):
        o_ref[d * H:(d + 1) * H, :] = jnp.maximum(
            cur[d * Hp:d * Hp + H, :] + x_ref[d * H:(d + 1) * H, :], 0.0)


def _banded_weights(weights, W, C):
    """(3,3,3,Cin,Cout) conv taps -> (n_stages*9, W*C, W*C) per-(kd,kh) banded matmul weights.

    Wb[s*9 + kd*3 + kh, w_in*C + ci, w*C + co] = weights[s][kd, kh, w_in - w + 1, ci, co]
    when |w_in - w| <= 1, else 0.  Band truncation at w = 0 / W-1 implements Conv3d zero
    padding=1 along W, so the activation needs no W-halo lanes (interior is lane-0 aligned).
    """
    S = len(weights)
    WC = W * C
    sel = np.zeros((3, W, W), np.float32)          # sel[kw, w_in, w] = 1 iff w_in == w + kw - 1
    for kw in range(3):
        for w in range(W):
            wi = w + kw - 1
            if 0 <= wi < W:
                sel[kw, wi, w] = 1.0
    wall = np.stack([np.asarray(w, np.float32) for w in weights])           # (S, 3,3,3, Ci, Co)
    blocks = np.einsum('kiw,sdhkco->sdhicwo', sel, wall)                    # (S,3,3, W,Ci, W,Co)
    return blocks.reshape(S * 9, WC, WC)


def _resident_spec(block_shape, index_map):
    # Constant-index blocks (weights / bias): single-buffer them so the pipeline does not spend
    # VMEM on a second copy that is never re-fetched (perf review, v7x headroom).
    try:
        return pl.BlockSpec(block_shape, index_map, pipeline_mode=pl.Buffered(1))
    except (AttributeError, TypeError):       # older jax without pipeline_mode / Buffered
        return pl.BlockSpec(block_shape, index_map)


def residual_conv_block(x_ncdhw, weights, biases):
    """x_ncdhw: (N, C, D, H, W) f32.  weights: list of (3,3,3,C,C).  biases: list of (C,)."""
    n_stages = len(weights)
    N, C, D, H, W = x_ncdhw.shape
    for wgt in weights:
        assert wgt.shape == (3, 3, 3, C, C), "residual add requires n_filters_in == n_filters_out"
    DH, WC, Hp = D * H, W * C, H + 2
    scratch_rows = (D + 2) * Hp + 2          # +2 keeps the (kd=2,kh=2) slab of garbage rows in-bounds

    # NCDHW -> channels-last, lane-dense (N, D*H, W*C).
    # TODO(synk): keep the surrounding network channels-last (and bf16) end-to-end so this
    # transpose (a full HBM read+write outside the kernel) and the f32 writeback disappear.
    x = jnp.transpose(x_ncdhw, (0, 2, 3, 4, 1)).reshape(N, DH, WC).astype(jnp.float32)

    wmat = jnp.asarray(_banded_weights(weights, W, C), jnp.bfloat16)        # (S*9, WC, WC) bf16
    brow = np.stack([np.tile(np.asarray(b, np.float32), W) for b in biases])
    brow = jnp.asarray(brow.reshape(n_stages, 1, WC), jnp.float32)          # (S, 1, WC) f32

    kernel = partial(_residual_conv_block_kernel,
                     n_stages=n_stages, D=D, H=H, W=W, C=C)

    # Explicit VMEM budget: double-buffered activation blocks + single-buffered weights/bias +
    # bf16 halo scratch (perf review item); floor keeps the default headroom on small shapes.
    working = (4 * DH * WC * 4               # x + o blocks, 2 pipeline buffers each, f32
               + wmat.size * 2 + brow.size * 4
               + scratch_rows * WC * 2)
    vmem_limit = int(min(96 * 2 ** 20, max(32 * 2 ** 20, 2 * working)))

    # TODO(synk): for v7x (2 TCs, 64 MiB VMEM) and large volumes, add a D-tile grid axis marked
    # "parallel" (each tile re-zeroes its own halo and fetches an n_stages-deep D halo) and tile
    # W once W*C >> 256 to bound the O(W^2*C^2) banded-weight size; the sample axis here stays
    # "arbitrary" because the halo scratch is initialized only on the first grid step.
    out = pl.pallas_call(
        kernel,
        out_shape=jax.ShapeDtypeStruct((N, DH, WC), jnp.float32),
        grid_spec=pltpu.PrefetchScalarGridSpec(
            num_scalar_prefetch=0,
            grid=(N,),
            in_specs=[
                pl.BlockSpec((None, DH, WC), lambda n: (n, 0, 0)),            # per-sample activation
                _resident_spec((n_stages * 9, WC, WC), lambda n: (0, 0, 0)),  # banded weights
                _resident_spec((n_stages, 1, WC), lambda n: (0, 0, 0)),       # bias rows
            ],
            out_specs=pl.BlockSpec((None, DH, WC), lambda n: (n, 0, 0)),
            scratch_shapes=[pltpu.VMEM((scratch_rows, WC), jnp.bfloat16)],    # bf16 zero-halo scratch
        ),
        compiler_params=pltpu.CompilerParams(
            dimension_semantics=("arbitrary",),
            vmem_limit_bytes=vmem_limit,
        ),
    )(x, wmat, brow)

    # (N, D*H, W*C) -> NCDHW
    return jnp.transpose(out.reshape(N, D, H, W, C), (0, 4, 1, 2, 3))


def _reference_forward(x, weights, biases):
    """Pure-JAX reference mirroring the PyTorch module (normalization='none')."""
    n_stages = len(weights)
    out = x
    for s in range(n_stages):
        w_oidhw = jnp.transpose(weights[s], (4, 3, 0, 1, 2))   # (Cout, Cin, kd, kh, kw)
        out = jax.lax.conv_general_dilated(
            out, w_oidhw, window_strides=(1, 1, 1),
            padding=((1, 1), (1, 1), (1, 1)),
            dimension_numbers=("NCDHW", "OIDHW", "NCDHW"),
            precision=jax.lax.Precision.HIGHEST)
        out = out + biases[s].reshape(1, -1, 1, 1, 1)
        if s != n_stages - 1:
            out = jax.nn.relu(out)
    return jax.nn.relu(out + x)


if __name__ == "__main__":
    # W*C = 128 -> fully lane-dense activations, scatters and output stores.
    N, C, D, H, W = 2, 8, 8, 8, 16
    n_stages = 2

    key = jax.random.PRNGKey(0)
    keys = jax.random.split(key, 1 + 2 * n_stages)
    x = jax.random.normal(keys[0], (N, C, D, H, W), jnp.float32)

    weights, biases = [], []
    for s in range(n_stages):
        weights.append(0.1 * jax.random.normal(keys[1 + 2 * s], (3, 3, 3, C, C), jnp.float32))
        biases.append(0.1 * jax.random.normal(keys[2 + 2 * s], (C,), jnp.float32))

    out = jax.block_until_ready(residual_conv_block(x, weights, biases))

    ref = _reference_forward(x, weights, biases)
    assert out.shape == x.shape, (out.shape, x.shape)
    # bf16 MXU operands (f32 accumulation) round the activations every stage, so error compounds
    # with n_stages; observed error is a few 1e-3, tolerance leaves margin.
    err = float(jnp.max(jnp.abs(out - ref)))
    assert jnp.allclose(out, ref, atol=5e-2, rtol=5e-2), err

    print("KERNEL_OK")
</pallas_src>

<mosaic_0001>
module attributes {stable_mosaic.version = 11 : i64} {
  func.func @_residual_conv_block_kernel(%arg0: i32, %arg1: memref<1x64x128xf32, #tpu.memory_space<vmem>>, %arg2: memref<18x128x128xbf16, #tpu.memory_space<vmem>>, %arg3: memref<2x1x128xf32, #tpu.memory_space<vmem>>, %arg4: memref<1x64x128xf32, #tpu.memory_space<vmem>>, %arg5: memref<102x128xbf16, #tpu.memory_space<vmem>>) attributes {dimension_semantics = [#tpu.dimension_semantics<arbitrary>], iteration_bounds = array<i64: 2>, scalar_prefetch = 0 : i64, scratch_operands = 1 : i64, tpu.core_type = #tpu.core_type<tc>, window_params = [{transform_indices = @transform_0, window_bounds = array<i64: 1, 64, 128>}, {pipeline_mode = #tpu.pipeline_mode<synchronous>, transform_indices = @transform_1, window_bounds = array<i64: 18, 128, 128>}, {pipeline_mode = #tpu.pipeline_mode<synchronous>, transform_indices = @transform_2, window_bounds = array<i64: 2, 1, 128>}, {transform_indices = @transform_3, window_bounds = array<i64: 1, 64, 128>}]} {
    %c0_i32 = arith.constant 0 : i32
    %0 = arith.cmpi eq, %arg0, %c0_i32 : i32
    %1 = arith.extui %0 : i1 to i32
    %c0_i32_0 = arith.constant 0 : i32
    %2 = arith.cmpi ne, %1, %c0_i32_0 : i32
    scf.if %2 {
      %cst_195 = arith.constant 0.000000e+00 : bf16
      %229 = vector.broadcast %cst_195 : bf16 to vector<102x128xbf16>
      %c0_196 = arith.constant 0 : index
      %c0_197 = arith.constant 0 : index
      %230 = vector.load %arg5[%c0_196, %c0_197] : memref<102x128xbf16, #tpu.memory_space<vmem>>, vector<102x128xbf16>
      tpu.vector_store %arg5[%c0_196, %c0_197], %229 {strides = array<i32>} : memref<102x128xbf16, #tpu.memory_space<vmem>>, vector<102x128xbf16>,
    } else {
    }
    %c0 = arith.constant 0 : index
    %c0_1 = arith.constant 0 : index
    %c0_2 = arith.constant 0 : index
    %3 = vector.load %arg1[%c0, %c0_1, %c0_2] : memref<1x64x128xf32, #tpu.memory_space<vmem>>, vector<1x8x128xf32>
    %4 = vector.shape_cast %3 : vector<1x8x128xf32> to vector<8x128xf32>
    %5 = arith.truncf %4 : vector<8x128xf32> to vector<8x128xbf16>
    %c11 = arith.constant 11 : index
    %c0_3 = arith.constant 0 : index
    %6 = vector.load %arg5[%c11, %c0_3] : memref<102x128xbf16, #tpu.memory_space<vmem>>, vector<8x128xbf16>
    tpu.vector_store %arg5[%c11, %c0_3], %5 {strides = array<i32>} : memref<102x128xbf16, #tpu.memory_space<vmem>>, vector<8x128xbf16>,
    %c0_4 = arith.constant 0 : index
    %c8 = arith.constant 8 : index
    %c0_5 = arith.constant 0 : index
    %7 = vector.load %arg1[%c0_4, %c8, %c0_5] : memref<1x64x128xf32, #tpu.memory_space<vmem>>, vector<1x8x128xf32>
    %8 = vector.shape_cast %7 : vector<1x8x128xf32> to vector<8x128xf32>
    %9 = arith.truncf %8 : vector<8x128xf32> to vector<8x128xbf16>
    %c21 = arith.constant 21 : index
    %c0_6 = arith.constant 0 : index
    %10 = vector.load %arg5[%c21, %c0_6] : memref<102x128xbf16, #tpu.memory_space<vmem>>, vector<8x128xbf16>
    tpu.vector_store %arg5[%c21, %c0_6], %9 {strides = array<i32>} : memref<102x128xbf16, #tpu.memory_space<vmem>>, vector<8x128xbf16>,
    %c0_7 = arith.constant 0 : index
    %c16 = arith.constant 16 : index
    %c0_8 = arith.constant 0 : index
    %11 = vector.load %arg1[%c0_7, %c16, %c0_8] : memref<1x64x128xf32, #tpu.memory_space<vmem>>, vector<1x8x128xf32>
    %12 = vector.shape_cast %11 : vector<1x8x128xf32> to vector<8x128xf32>
    %13 = arith.truncf %12 : vector<8x128xf32> to vector<8x128xbf16>
    %c31 = arith.constant 31 : index
    %c0_9 = arith.constant 0 : index
    %14 = vector.load %arg5[%c31, %c0_9] : memref<102x128xbf16, #tpu.memory_space<vmem>>, vector<8x128xbf16>
    tpu.vector_store %arg5[%c31, %c0_9], %13 {strides = array<i32>} : memref<102x128xbf16, #tpu.memory_space<vmem>>, vector<8x128xbf16>,
    %c0_10 = arith.constant 0 : index
    %c24 = arith.constant 24 : index
    %c0_11 = arith.constant 0 : index
    %15 = vector.load %arg1[%c0_10, %c24, %c0_11] : memref<1x64x128xf32, #tpu.memory_space<vmem>>, vector<1x8x128xf32>
    %16 = vector.shape_cast %15 : vector<1x8x128xf32> to vector<8x128xf32>
    %17 = arith.truncf %16 : vector<8x128xf32> to vector<8x128xbf16>
    %c41 = arith.constant 41 : index
    %c0_12 = arith.constant 0 : index
    %18 = vector.load %arg5[%c41, %c0_12] : memref<102x128xbf16, #tpu.memory_space<vmem>>, vector<8x128xbf16>
    tpu.vector_store %arg5[%c41, %c0_12], %17 {strides = array<i32>} : memref<102x128xbf16, #tpu.memory_space<vmem>>, vector<8x128xbf16>,
    %c0_13 = arith.constant 0 : index
    %c32 = arith.constant 32 : index
    %c0_14 = arith.constant 0 : index
    %19 = vector.load %arg1[%c0_13, %c32, %c0_14] : memref<1x64x128xf32, #tpu.memory_space<vmem>>, vector<1x8x128xf32>
    %20 = vector.shape_cast %19 : vector<1x8x128xf32> to vector<8x128xf32>
    %21 = arith.truncf %20 : vector<8x128xf32> to vector<8x128xbf16>
    %c51 = arith.constant 51 : index
    %c0_15 = arith.constant 0 : index
    %22 = vector.load %arg5[%c51, %c0_15] : memref<102x128xbf16, #tpu.memory_space<vmem>>, vector<8x128xbf16>
    tpu.vector_store %arg5[%c51, %c0_15], %21 {strides = array<i32>} : memref<102x128xbf16, #tpu.memory_space<vmem>>, vector<8x128xbf16>,
    %c0_16 = arith.constant 0 : index
    %c40 = arith.constant 40 : index
    %c0_17 = arith.constant 0 : index
    %23 = vector.load %arg1[%c0_16, %c40, %c0_17] : memref<1x64x128xf32, #tpu.memory_space<vmem>>, vector<1x8x128xf32>
    %24 = vector.shape_cast %23 : vector<1x8x128xf32> to vector<8x128xf32>
    %25 = arith.truncf %24 : vector<8x128xf32> to vector<8x128xbf16>
    %c61 = arith.constant 61 : index
    %c0_18 = arith.constant 0 : index
    %26 = vector.load %arg5[%c61, %c0_18] : memref<102x128xbf16, #tpu.memory_space<vmem>>, vector<8x128xbf16>
    tpu.vector_store %arg5[%c61, %c0_18], %25 {strides = array<i32>} : memref<102x128xbf16, #tpu.memory_space<vmem>>, vector<8x128xbf16>,
    %c0_19 = arith.constant 0 : index
    %c48 = arith.constant 48 : index
    %c0_20 = arith.constant 0 : index
    %27 = vector.load %arg1[%c0_19, %c48, %c0_20] : memref<1x64x128xf32, #tpu.memory_space<vmem>>, vector<1x8x128xf32>
    %28 = vector.shape_cast %27 : vector<1x8x128xf32> to vector<8x128xf32>
    %29 = arith.truncf %28 : vector<8x128xf32> to vector<8x128xbf16>
    %c71 = arith.constant 71 : index
    %c0_21 = arith.constant 0 : index
    %30 = vector.load %arg5[%c71, %c0_21] : memref<102x128xbf16, #tpu.memory_space<vmem>>, vector<8x128xbf16>
    tpu.vector_store %arg5[%c71, %c0_21], %29 {strides = array<i32>} : memref<102x128xbf16, #tpu.memory_space<vmem>>, vector<8x128xbf16>,
    %c0_22 = arith.constant 0 : index
    %c56 = arith.constant 56 : index
    %c0_23 = arith.constant 0 : index
    %31 = vector.load %arg1[%c0_22, %c56, %c0_23] : memref<1x64x128xf32, #tpu.memory_space<vmem>>, vector<1x8x128xf32>
    %32 = vector.shape_cast %31 : vector<1x8x128xf32> to vector<8x128xf32>
    %33 = arith.truncf %32 : vector<8x128xf32> to vector<8x128xbf16>
    %c81 = arith.constant 81 : index
    %c0_24 = arith.constant 0 : index
    %34 = vector.load %arg5[%c81, %c0_24] : memref<102x128xbf16, #tpu.memory_space<vmem>>, vector<8x128xbf16>
    tpu.vector_store %arg5[%c81, %c0_24], %33 {strides = array<i32>} : memref<102x128xbf16, #tpu.memory_space<vmem>>, vector<8x128xbf16>,
    %c0_25 = arith.constant 0 : index
    %c0_26 = arith.constant 0 : index
    %35 = vector.load %arg5[%c0_25, %c0_26] : memref<102x128xbf16, #tpu.memory_space<vmem>>, vector<80x128xbf16>
    %c0_27 = arith.constant 0 : index
    %c0_28 = arith.constant 0 : index
    %c0_29 = arith.constant 0 : index
    %36 = vector.load %arg2[%c0_27, %c0_28, %c0_29] : memref<18x128x128xbf16, #tpu.memory_space<vmem>>, vector<1x128x128xbf16>
    %37 = vector.shape_cast %36 : vector<1x128x128xbf16> to vector<128x128xbf16>
    %cst = arith.constant dense<0.000000e+00> : vector<80x128xf32>
    %38 = tpu.matmul %35, %37, %cst {dimension_numbers = #tpu.dot_dimension_numbers<[1], [0], [0], [1], [0, 0, 1, 1], [], []>} : vector<80x128xbf16>, vector<128x128xbf16>, vector<80x128xf32> -> vector<80x128xf32>
    %c1 = arith.constant 1 : index
    %c0_30 = arith.constant 0 : index
    %39 = vector.load %arg5[%c1, %c0_30] : memref<102x128xbf16, #tpu.memory_space<vmem>>, vector<80x128xbf16>
    %c1_31 = arith.constant 1 : index
    %c0_32 = arith.constant 0 : index
    %c0_33 = arith.constant 0 : index
    %40 = vector.load %arg2[%c1_31, %c0_32, %c0_33] : memref<18x128x128xbf16, #tpu.memory_space<vmem>>, vector<1x128x128xbf16>
    %41 = vector.shape_cast %40 : vector<1x128x128xbf16> to vector<128x128xbf16>
    %cst_34 = arith.constant dense<0.000000e+00> : vector<80x128xf32>
    %42 = tpu.matmul %39, %41, %cst_34 {dimension_numbers = #tpu.dot_dimension_numbers<[1], [0], [0], [1], [0, 0, 1, 1], [], []>} : vector<80x128xbf16>, vector<128x128xbf16>, vector<80x128xf32> -> vector<80x128xf32>
    %43 = arith.addf %38, %42 : vector<80x128xf32>
    %c2 = arith.constant 2 : index
    %c0_35 = arith.constant 0 : index
    %44 = vector.load %arg5[%c2, %c0_35] : memref<102x128xbf16, #tpu.memory_space<vmem>>, vector<80x128xbf16>
    %c2_36 = arith.constant 2 : index
    %c0_37 = arith.constant 0 : index
    %c0_38 = arith.constant 0 : index
    %45 = vector.load %arg2[%c2_36, %c0_37, %c0_38] : memref<18x128x128xbf16, #tpu.memory_space<vmem>>, vector<1x128x128xbf16>
    %46 = vector.shape_cast %45 : vector<1x128x128xbf16> to vector<128x128xbf16>
    %cst_39 = arith.constant dense<0.000000e+00> : vector<80x128xf32>
    %47 = tpu.matmul %44, %46, %cst_39 {dimension_numbers = #tpu.dot_dimension_numbers<[1], [0], [0], [1], [0, 0, 1, 1], [], []>} : vector<80x128xbf16>, vector<128x128xbf16>, vector<80x128xf32> -> vector<80x128xf32>
    %48 = arith.addf %43, %47 : vector<80x128xf32>
    %c10 = arith.constant 10 : index
    %c0_40 = arith.constant 0 : index
    %49 = vector.load %arg5[%c10, %c0_40] : memref<102x128xbf16, #tpu.memory_space<vmem>>, vector<80x128xbf16>
    %c3 = arith.constant 3 : index
    %c0_41 = arith.constant 0 : index
    %c0_42 = arith.constant 0 : index
    %50 = vector.load %arg2[%c3, %c0_41, %c0_42] : memref<18x128x128xbf16, #tpu.memory_space<vmem>>, vector<1x128x128xbf16>
    %51 = vector.shape_cast %50 : vector<1x128x128xbf16> to vector<128x128xbf16>
    %cst_43 = arith.constant dense<0.000000e+00> : vector<80x128xf32>
    %52 = tpu.matmul %49, %51, %cst_43 {dimension_numbers = #tpu.dot_dimension_numbers<[1], [0], [0], [1], [0, 0, 1, 1], [], []>} : vector<80x128xbf16>, vector<128x128xbf16>, vector<80x128xf32> -> vector<80x128xf32>
    %53 = arith.addf %48, %52 : vector<80x128xf32>
    %c11_44 = arith.constant 11 : index
    %c0_45 = arith.constant 0 : index
    %54 = vector.load %arg5[%c11_44, %c0_45] : memref<102x128xbf16, #tpu.memory_space<vmem>>, vector<80x128xbf16>
    %c4 = arith.constant 4 : index
    %c0_46 = arith.constant 0 : index
    %c0_47 = arith.constant 0 : index
    %55 = vector.load %arg2[%c4, %c0_46, %c0_47] : memref<18x128x128xbf16, #tpu.memory_space<vmem>>, vector<1x128x128xbf16>
    %56 = vector.shape_cast %55 : vector<1x128x128xbf16> to vector<128x128xbf16>
    %cst_48 = arith.constant dense<0.000000e+00> : vector<80x128xf32>
    %57 = tpu.matmul %54, %56, %cst_48 {dimension_numbers = #tpu.dot_dimension_numbers<[1], [0], [0], [1], [0, 0, 1, 1], [], []>} : vector<80x128xbf16>, vector<128x128xbf16>, vector<80x128xf32> -> vector<80x128xf32>
    %58 = arith.addf %53, %57 : vector<80x128xf32>
    %c12 = arith.constant 12 : index
    %c0_49 = arith.constant 0 : index
    %59 = vector.load %arg5[%c12, %c0_49] : memref<102x128xbf16, #tpu.memory_space<vmem>>, vector<80x128xbf16>
    %c5 = arith.constant 5 : index
    %c0_50 = arith.constant 0 : index
    %c0_51 = arith.constant 0 : index
    %60 = vector.load %arg2[%c5, %c0_50, %c0_51] : memref<18x128x128xbf16, #tpu.memory_space<vmem>>, vector<1x128x128xbf16>
    %61 = vector.shape_cast %60 : vector<1x128x128xbf16> to vector<128x128xbf16>
    %cst_52 = arith.constant dense<0.000000e+00> : vector<80x128xf32>
    %62 = tpu.matmul %59, %61, %cst_52 {dimension_numbers = #tpu.dot_dimension_numbers<[1], [0], [0], [1], [0, 0, 1, 1], [], []>} : vector<80x128xbf16>, vector<128x128xbf16>, vector<80x128xf32> -> vector<80x128xf32>
    %63 = arith.addf %58, %62 : vector<80x128xf32>
    %c20 = arith.constant 20 : index
    %c0_53 = arith.constant 0 : index
    %64 = vector.load %arg5[%c20, %c0_53] : memref<102x128xbf16, #tpu.memory_space<vmem>>, vector<80x128xbf16>
    %c6 = arith.constant 6 : index
    %c0_54 = arith.constant 0 : index
    %c0_55 = arith.constant 0 : index
    %65 = vector.load %arg2[%c6, %c0_54, %c0_55] : memref<18x128x128xbf16, #tpu.memory_space<vmem>>, vector<1x128x128xbf16>
    %66 = vector.shape_cast %65 : vector<1x128x128xbf16> to vector<128x128xbf16>
    %cst_56 = arith.constant dense<0.000000e+00> : vector<80x128xf32>
    %67 = tpu.matmul %64, %66, %cst_56 {dimension_numbers = #tpu.dot_dimension_numbers<[1], [0], [0], [1], [0, 0, 1, 1], [], []>} : vector<80x128xbf16>, vector<128x128xbf16>, vector<80x128xf32> -> vector<80x128xf32>
    %68 = arith.addf %63, %67 : vector<80x128xf32>
    %c21_57 = arith.constant 21 : index
    %c0_58 = arith.constant 0 : index
    %69 = vector.load %arg5[%c21_57, %c0_58] : memref<102x128xbf16, #tpu.memory_space<vmem>>, vector<80x128xbf16>
    %c7 = arith.constant 7 : index
    %c0_59 = arith.constant 0 : index
    %c0_60 = arith.constant 0 : index
    %70 = vector.load %arg2[%c7, %c0_59, %c0_60] : memref<18x128x128xbf16, #tpu.memory_space<vmem>>, vector<1x128x128xbf16>
    %71 = vector.shape_cast %70 : vector<1x128x128xbf16> to vector<128x128xbf16>
    %cst_61 = arith.constant dense<0.000000e+00> : vector<80x128xf32>
    %72 = tpu.matmul %69, %71, %cst_61 {dimension_numbers = #tpu.dot_dimension_numbers<[1], [0], [0], [1], [0, 0, 1, 1], [], []>} : vector<80x128xbf16>, vector<128x128xbf16>, vector<80x128xf32> -> vector<80x128xf32>
    %73 = arith.addf %68, %72 : vector<80x128xf32>
    %c22 = arith.constant 22 : index
    %c0_62 = arith.constant 0 : index
    %74 = vector.load %arg5[%c22, %c0_62] : memref<102x128xbf16, #tpu.memory_space<vmem>>, vector<80x128xbf16>
    %c8_63 = arith.constant 8 : index
    %c0_64 = arith.constant 0 : index
    %c0_65 = arith.constant 0 : index
    %75 = vector.load %arg2[%c8_63, %c0_64, %c0_65] : memref<18x128x128xbf16, #tpu.memory_space<vmem>>, vector<1x128x128xbf16>
    %76 = vector.shape_cast %75 : vector<1x128x128xbf16> to vector<128x128xbf16>
    %cst_66 = arith.constant dense<0.000000e+00> : vector<80x128xf32>
    %77 = tpu.matmul %74, %76, %cst_66 {dimension_numbers = #tpu.dot_dimension_numbers<[1], [0], [0], [1], [0, 0, 1, 1], [], []>} : vector<80x128xbf16>, vector<128x128xbf16>, vector<80x128xf32> -> vector<80x128xf32>
    %78 = arith.addf %73, %77 : vector<80x128xf32>
    %c0_67 = arith.constant 0 : index
    %c0_68 = arith.constant 0 : index
    %c0_69 = arith.constant 0 : index
    %79 = vector.load %arg3[%c0_67, %c0_68, %c0_69] : memref<2x1x128xf32, #tpu.memory_space<vmem>>, vector<1x1x128xf32>
    %80 = vector.shape_cast %79 : vector<1x1x128xf32> to vector<1x128xf32>
    %81 = vector.broadcast %80 : vector<1x128xf32> to vector<80x128xf32>
    %82 = arith.addf %78, %81 : vector<80x128xf32>
    %cst_70 = arith.constant 0.000000e+00 : f32
    %83 = vector.broadcast %cst_70 : f32 to vector<80x128xf32>
    %84 = arith.maximumf %82, %83 : vector<80x128xf32>
    %85 = vector.extract_strided_slice %84 {offsets = [0, 0], sizes = [8, 128], strides = [1, 1]} : vector<80x128xf32> to vector<8x128xf32>
    %86 = arith.truncf %85 : vector<8x128xf32> to vector<8x128xbf16>
    %c11_71 = arith.constant 11 : index
    %c0_72 = arith.constant 0 : index
    %87 = vector.load %arg5[%c11_71, %c0_72] : memref<102x128xbf16, #tpu.memory_space<vmem>>, vector<8x128xbf16>
    tpu.vector_store %arg5[%c11_71, %c0_72], %86 {strides = array<i32>} : memref<102x128xbf16, #tpu.memory_space<vmem>>, vector<8x128xbf16>,
    %88 = vector.extract_strided_slice %84 {offsets = [10, 0], sizes = [8, 128], strides = [1, 1]} : vector<80x128xf32> to vector<8x128xf32>
    %89 = arith.truncf %88 : vector<8x128xf32> to vector<8x128xbf16>
    %c21_73 = arith.constant 21 : index
    %c0_74 = arith.constant 0 : index
    %90 = vector.load %arg5[%c21_73, %c0_74] : memref<102x128xbf16, #tpu.memory_space<vmem>>, vector<8x128xbf16>
    tpu.vector_store %arg5[%c21_73, %c0_74], %89 {strides = array<i32>} : memref<102x128xbf16, #tpu.memory_space<vmem>>, vector<8x128xbf16>,
    %91 = vector.extract_strided_slice %84 {offsets = [20, 0], sizes = [8, 128], strides = [1, 1]} : vector<80x128xf32> to vector<8x128xf32>
    %92 = arith.truncf %91 : vector<8x128xf32> to vector<8x128xbf16>
    %c31_75 = arith.constant 31 : index
    %c0_76 = arith.constant 0 : index
    %93 = vector.load %arg5[%c31_75, %c0_76] : memref<102x128xbf16, #tpu.memory_space<vmem>>, vector<8x128xbf16>
    tpu.vector_store %arg5[%c31_75, %c0_76], %92 {strides = array<i32>} : memref<102x128xbf16, #tpu.memory_space<vmem>>, vector<8x128xbf16>,
    %94 = vector.extract_strided_slice %84 {offsets = [30, 0], sizes = [8, 128], strides = [1, 1]} : vector<80x128xf32> to vector<8x128xf32>
    %95 = arith.truncf %94 : vector<8x128xf32> to vector<8x128xbf16>
    %c41_77 = arith.constant 41 : index
    %c0_78 = arith.constant 0 : index
    %96 = vector.load %arg5[%c41_77, %c0_78] : memref<102x128xbf16, #tpu.memory_space<vmem>>, vector<8x128xbf16>
    tpu.vector_store %arg5[%c41_77, %c0_78], %95 {strides = array<i32>} : memref<102x128xbf16, #tpu.memory_space<vmem>>, vector<8x128xbf16>,
    %97 = vector.extract_strided_slice %84 {offsets = [40, 0], sizes = [8, 128], strides = [1, 1]} : vector<80x128xf32> to vector<8x128xf32>
    %98 = arith.truncf %97 : vector<8x128xf32> to vector<8x128xbf16>
    %c51_79 = arith.constant 51 : index
    %c0_80 = arith.constant 0 : index
    %99 = vector.load %arg5[%c51_79, %c0_80] : memref<102x128xbf16, #tpu.memory_space<vmem>>, vector<8x128xbf16>
    tpu.vector_store %arg5[%c51_79, %c0_80], %98 {strides = array<i32>} : memref<102x128xbf16, #tpu.memory_space<vmem>>, vector<8x128xbf16>,
    %100 = vector.extract_strided_slice %84 {offsets = [50, 0], sizes = [8, 128], strides = [1, 1]} : vector<80x128xf32> to vector<8x128xf32>
    %101 = arith.truncf %100 : vector<8x128xf32> to vector<8x128xbf16>
    %c61_81 = arith.constant 61 : index
    %c0_82 = arith.constant 0 : index
    %102 = vector.load %arg5[%c61_81, %c0_82] : memref<102x128xbf16, #tpu.memory_space<vmem>>, vector<8x128xbf16>
    tpu.vector_store %arg5[%c61_81, %c0_82], %101 {strides = array<i32>} : memref<102x128xbf16, #tpu.memory_space<vmem>>, vector<8x128xbf16>,
    %103 = vector.extract_strided_slice %84 {offsets = [60, 0], sizes = [8, 128], strides = [1, 1]} : vector<80x128xf32> to vector<8x128xf32>
    %104 = arith.truncf %103 : vector<8x128xf32> to vector<8x128xbf16>
    %c71_83 = arith.constant 71 : index
    %c0_84 = arith.constant 0 : index
    %105 = vector.load %arg5[%c71_83, %c0_84] : memref<102x128xbf16, #tpu.memory_space<vmem>>, vector<8x128xbf16>
    tpu.vector_store %arg5[%c71_83, %c0_84], %104 {strides = array<i32>} : memref<102x128xbf16, #tpu.memory_space<vmem>>, vector<8x128xbf16>,
    %106 = vector.extract_strided_slice %84 {offsets = [70, 0], sizes = [8, 128], strides = [1, 1]} : vector<80x128xf32> to vector<8x128xf32>
    %107 = arith.truncf %106 : vector<8x128xf32> to vector<8x128xbf16>
    %c81_85 = arith.constant 81 : index
    %c0_86 = arith.constant 0 : index
    %108 = vector.load %arg5[%c81_85, %c0_86] : memref<102x128xbf16, #tpu.memory_space<vmem>>, vector<8x128xbf16>
    tpu.vector_store %arg5[%c81_85, %c0_86], %107 {strides = array<i32>} : memref<102x128xbf16, #tpu.memory_space<vmem>>, vector<8x128xbf16>,
    %c0_87 = arith.constant 0 : index
    %c0_88 = arith.constant 0 : index
    %109 = vector.load %arg5[%c0_87, %c0_88] : memref<102x128xbf16, #tpu.memory_space<vmem>>, vector<80x128xbf16>
    %c9 = arith.constant 9 : index
    %c0_89 = arith.constant 0 : index
    %c0_90 = arith.constant 0 : index
    %110 = vector.load %arg2[%c9, %c0_89, %c0_90] : memref<18x128x128xbf16, #tpu.memory_space<vmem>>, vector<1x128x128xbf16>
    %111 = vector.shape_cast %110 : vector<1x128x128xbf16> to vector<128x128xbf16>
    %cst_91 = arith.constant dense<0.000000e+00> : vector<80x128xf32>
    %112 = tpu.matmul %109, %111, %cst_91 {dimension_numbers = #tpu.dot_dimension_numbers<[1], [0], [0], [1], [0, 0, 1, 1], [], []>} : vector<80x128xbf16>, vector<128x128xbf16>, vector<80x128xf32> -> vector<80x128xf32>
    %c1_92 = arith.constant 1 : index
    %c0_93 = arith.constant 0 : index
    %113 = vector.load %arg5[%c1_92, %c0_93] : memref<102x128xbf16, #tpu.memory_space<vmem>>, vector<80x128xbf16>
    %c10_94 = arith.constant 10 : index
    %c0_95 = arith.constant 0 : index
    %c0_96 = arith.constant 0 : index
    %114 = vector.load %arg2[%c10_94, %c0_95, %c0_96] : memref<18x128x128xbf16, #tpu.memory_space<vmem>>, vector<1x128x128xbf16>
    %115 = vector.shape_cast %114 : vector<1x128x128xbf16> to vector<128x128xbf16>
    %cst_97 = arith.constant dense<0.000000e+00> : vector<80x128xf32>
    %116 = tpu.matmul %113, %115, %cst_97 {dimension_numbers = #tpu.dot_dimension_numbers<[1], [0], [0], [1], [0, 0, 1, 1], [], []>} : vector<80x128xbf16>, vector<128x128xbf16>, vector<80x128xf32> -> vector<80x128xf32>
    %117 = arith.addf %112, %116 : vector<80x128xf32>
    %c2_98 = arith.constant 2 : index
    %c0_99 = arith.constant 0 : index
    %118 = vector.load %arg5[%c2_98, %c0_99] : memref<102x128xbf16, #tpu.memory_space<vmem>>, vector<80x128xbf16>
    %c11_100 = arith.constant 11 : index
    %c0_101 = arith.constant 0 : index
    %c0_102 = arith.constant 0 : index
    %119 = vector.load %arg2[%c11_100, %c0_101, %c0_102] : memref<18x128x128xbf16, #tpu.memory_space<vmem>>, vector<1x128x128xbf16>
    %120 = vector.shape_cast %119 : vector<1x128x128xbf16> to vector<128x128xbf16>
    %cst_103 = arith.constant dense<0.000000e+00> : vector<80x128xf32>
    %121 = tpu.matmul %118, %120, %cst_103 {dimension_numbers = #tpu.dot_dimension_numbers<[1], [0], [0], [1], [0, 0, 1, 1], [], []>} : vector<80x128xbf16>, vector<128x128xbf16>, vector<80x128xf32> -> vector<80x128xf32>
    %122 = arith.addf %117, %121 : vector<80x128xf32>
    %c10_104 = arith.constant 10 : index
    %c0_105 = arith.constant 0 : index
    %123 = vector.load %arg5[%c10_104, %c0_105] : memref<102x128xbf16, #tpu.memory_space<vmem>>, vector<80x128xbf16>
    %c12_106 = arith.constant 12 : index
    %c0_107 = arith.constant 0 : index
    %c0_108 = arith.constant 0 : index
    %124 = vector.load %arg2[%c12_106, %c0_107, %c0_108] : memref<18x128x128xbf16, #tpu.memory_space<vmem>>, vector<1x128x128xbf16>
    %125 = vector.shape_cast %124 : vector<1x128x128xbf16> to vector<128x128xbf16>
    %cst_109 = arith.constant dense<0.000000e+00> : vector<80x128xf32>
    %126 = tpu.matmul %123, %125, %cst_109 {dimension_numbers = #tpu.dot_dimension_numbers<[1], [0], [0], [1], [0, 0, 1, 1], [], []>} : vector<80x128xbf16>, vector<128x128xbf16>, vector<80x128xf32> -> vector<80x128xf32>
    %127 = arith.addf %122, %126 : vector<80x128xf32>
    %c11_110 = arith.constant 11 : index
    %c0_111 = arith.constant 0 : index
    %128 = vector.load %arg5[%c11_110, %c0_111] : memref<102x128xbf16, #tpu.memory_space<vmem>>, vector<80x128xbf16>
    %c13 = arith.constant 13 : index
    %c0_112 = arith.constant 0 : index
    %c0_113 = arith.constant 0 : index
    %129 = vector.load %arg2[%c13, %c0_112, %c0_113] : memref<18x128x128xbf16, #tpu.memory_space<vmem>>, vector<1x128x128xbf16>
    %130 = vector.shape_cast %129 : vector<1x128x128xbf16> to vector<128x128xbf16>
    %cst_114 = arith.constant dense<0.000000e+00> : vector<80x128xf32>
    %131 = tpu.matmul %128, %130, %cst_114 {dimension_numbers = #tpu.dot_dimension_numbers<[1], [0], [0], [1], [0, 0, 1, 1], [], []>} : vector<80x128xbf16>, vector<128x128xbf16>, vector<80x128xf32> -> vector<80x128xf32>
    %132 = arith.addf %127, %131 : vector<80x128xf32>
    %c12_115 = arith.constant 12 : index
    %c0_116 = arith.constant 0 : index
    %133 = vector.load %arg5[%c12_115, %c0_116] : memref<102x128xbf16, #tpu.memory_space<vmem>>, vector<80x128xbf16>
    %c14 = arith.constant 14 : index
    %c0_117 = arith.constant 0 : index
    %c0_118 = arith.constant 0 : index
    %134 = vector.load %arg2[%c14, %c0_117, %c0_118] : memref<18x128x128xbf16, #tpu.memory_space<vmem>>, vector<1x128x128xbf16>
    %135 = vector.shape_cast %134 : vector<1x128x128xbf16> to vector<128x128xbf16>
    %cst_119 = arith.constant dense<0.000000e+00> : vector<80x128xf32>
    %136 = tpu.matmul %133, %135, %cst_119 {dimension_numbers = #tpu.dot_dimension_numbers<[1], [0], [0], [1], [0, 0, 1, 1], [], []>} : vector<80x128xbf16>, vector<128x128xbf16>, vector<80x128xf32> -> vector<80x128xf32>
    %137 = arith.addf %132, %136 : vector<80x128xf32>
    %c20_120 = arith.constant 20 : index
    %c0_121 = arith.constant 0 : index
    %138 = vector.load %arg5[%c20_120, %c0_121] : memref<102x128xbf16, #tpu.memory_space<vmem>>, vector<80x128xbf16>
    %c15 = arith.constant 15 : index
    %c0_122 = arith.constant 0 : index
    %c0_123 = arith.constant 0 : index
    %139 = vector.load %arg2[%c15, %c0_122, %c0_123] : memref<18x128x128xbf16, #tpu.memory_space<vmem>>, vector<1x128x128xbf16>
    %140 = vector.shape_cast %139 : vector<1x128x128xbf16> to vector<128x128xbf16>
    %cst_124 = arith.constant dense<0.000000e+00> : vector<80x128xf32>
    %141 = tpu.matmul %138, %140, %cst_124 {dimension_numbers = #tpu.dot_dimension_numbers<[1], [0], [0], [1], [0, 0, 1, 1], [], []>} : vector<80x128xbf16>, vector<128x128xbf16>, vector<80x128xf32> -> vector<80x128xf32>
    %142 = arith.addf %137, %141 : vector<80x128xf32>
    %c21_125 = arith.constant 21 : index
    %c0_126 = arith.constant 0 : index
    %143 = vector.load %arg5[%c21_125, %c0_126] : memref<102x128xbf16, #tpu.memory_space<vmem>>, vector<80x128xbf16>
    %c16_127 = arith.constant 16 : index
    %c0_128 = arith.constant 0 : index
    %c0_129 = arith.constant 0 : index
    %144 = vector.load %arg2[%c16_127, %c0_128, %c0_129] : memref<18x128x128xbf16, #tpu.memory_space<vmem>>, vector<1x128x128xbf16>
    %145 = vector.shape_cast %144 : vector<1x128x128xbf16> to vector<128x128xbf16>
    %cst_130 = arith.constant dense<0.000000e+00> : vector<80x128xf32>
    %146 = tpu.matmul %143, %145, %cst_130 {dimension_numbers = #tpu.dot_dimension_numbers<[1], [0], [0], [1], [0, 0, 1, 1], [], []>} : vector<80x128xbf16>, vector<128x128xbf16>, vector<80x128xf32> -> vector<80x128xf32>
    %147 = arith.addf %142, %146 : vector<80x128xf32>
    %c22_131 = arith.constant 22 : index
    %c0_132 = arith.constant 0 : index
    %148 = vector.load %arg5[%c22_131, %c0_132] : memref<102x128xbf16, #tpu.memory_space<vmem>>, vector<80x128xbf16>
    %c17 = arith.constant 17 : index
    %c0_133 = arith.constant 0 : index
    %c0_134 = arith.constant 0 : index
    %149 = vector.load %arg2[%c17, %c0_133, %c0_134] : memref<18x128x128xbf16, #tpu.memory_space<vmem>>, vector<1x128x128xbf16>
    %150 = vector.shape_cast %149 : vector<1x128x128xbf16> to vector<128x128xbf16>
    %cst_135 = arith.constant dense<0.000000e+00> : vector<80x128xf32>
    %151 = tpu.matmul %148, %150, %cst_135 {dimension_numbers = #tpu.dot_dimension_numbers<[1], [0], [0], [1], [0, 0, 1, 1], [], []>} : vector<80x128xbf16>, vector<128x128xbf16>, vector<80x128xf32> -> vector<80x128xf32>
    %152 = arith.addf %147, %151 : vector<80x128xf32>
    %c1_136 = arith.constant 1 : index
    %c0_137 = arith.constant 0 : index
    %c0_138 = arith.constant 0 : index
    %153 = vector.load %arg3[%c1_136, %c0_137, %c0_138] : memref<2x1x128xf32, #tpu.memory_space<vmem>>, vector<1x1x128xf32>
    %154 = vector.shape_cast %153 : vector<1x1x128xf32> to vector<1x128xf32>
    %155 = vector.broadcast %154 : vector<1x128xf32> to vector<80x128xf32>
    %156 = arith.addf %152, %155 : vector<80x128xf32>
    %157 = vector.extract_strided_slice %156 {offsets = [0, 0], sizes = [8, 128], strides = [1, 1]} : vector<80x128xf32> to vector<8x128xf32>
    %c0_139 = arith.constant 0 : index
    %c0_140 = arith.constant 0 : index
    %c0_141 = arith.constant 0 : index
    %158 = vector.load %arg1[%c0_139, %c0_140, %c0_141] : memref<1x64x128xf32, #tpu.memory_space<vmem>>, vector<1x8x128xf32>
    %159 = vector.shape_cast %158 : vector<1x8x128xf32> to vector<8x128xf32>
    %160 = arith.addf %157, %159 : vector<8x128xf32>
    %cst_142 = arith.constant 0.000000e+00 : f32
    %161 = vector.broadcast %cst_142 : f32 to vector<8x128xf32>
    %162 = arith.maximumf %160, %161 : vector<8x128xf32>
    %c0_143 = arith.constant 0 : index
    %c0_144 = arith.constant 0 : index
    %c0_145 = arith.constant 0 : index
    %163 = vector.load %arg4[%c0_143, %c0_144, %c0_145] : memref<1x64x128xf32, #tpu.memory_space<vmem>>, vector<1x8x128xf32>
    %164 = vector.shape_cast %163 : vector<1x8x128xf32> to vector<8x128xf32>
    %165 = vector.shape_cast %162 : vector<8x128xf32> to vector<1x8x128xf32>
    tpu.vector_store %arg4[%c0_143, %c0_144, %c0_145], %165 {strides = array<i32>} : memref<1x64x128xf32, #tpu.memory_space<vmem>>, vector<1x8x128xf32>,
    %166 = vector.extract_strided_slice %156 {offsets = [10, 0], sizes = [8, 128], strides = [1, 1]} : vector<80x128xf32> to vector<8x128xf32>
    %c0_146 = arith.constant 0 : index
    %c8_147 = arith.constant 8 : index
    %c0_148 = arith.constant 0 : index
    %167 = vector.load %arg1[%c0_146, %c8_147, %c0_148] : memref<1x64x128xf32, #tpu.memory_space<vmem>>, vector<1x8x128xf32>
    %168 = vector.shape_cast %167 : vector<1x8x128xf32> to vector<8x128xf32>
    %169 = arith.addf %166, %168 : vector<8x128xf32>
    %cst_149 = arith.constant 0.000000e+00 : f32
    %170 = vector.broadcast %cst_149 : f32 to vector<8x128xf32>
    %171 = arith.maximumf %169, %170 : vector<8x128xf32>
    %c0_150 = arith.constant 0 : index
    %c8_151 = arith.constant 8 : index
    %c0_152 = arith.constant 0 : index
    %172 = vector.load %arg4[%c0_150, %c8_151, %c0_152] : memref<1x64x128xf32, #tpu.memory_space<vmem>>, vector<1x8x128xf32>
    %173 = vector.shape_cast %172 : vector<1x8x128xf32> to vector<8x128xf32>
    %174 = vector.shape_cast %171 : vector<8x128xf32> to vector<1x8x128xf32>
    tpu.vector_store %arg4[%c0_150, %c8_151, %c0_152], %174 {strides = array<i32>} : memref<1x64x128xf32, #tpu.memory_space<vmem>>, vector<1x8x128xf32>,
    %175 = vector.extract_strided_slice %156 {offsets = [20, 0], sizes = [8, 128], strides = [1, 1]} : vector<80x128xf32> to vector<8x128xf32>
    %c0_153 = arith.constant 0 : index
    %c16_154 = arith.constant 16 : index
    %c0_155 = arith.constant 0 : index
    %176 = vector.load %arg1[%c0_153, %c16_154, %c0_155] : memref<1x64x128xf32, #tpu.memory_space<vmem>>, vector<1x8x128xf32>
    %177 = vector.shape_cast %176 : vector<1x8x128xf32> to vector<8x128xf32>
    %178 = arith.addf %175, %177 : vector<8x128xf32>
    %cst_156 = arith.constant 0.000000e+00 : f32
    %179 = vector.broadcast %cst_156 : f32 to vector<8x128xf32>
    %180 = arith.maximumf %178, %179 : vector<8x128xf32>
    %c0_157 = arith.constant 0 : index
    %c16_158 = arith.constant 16 : index
    %c0_159 = arith.constant 0 : index
    %181 = vector.load %arg4[%c0_157, %c16_158, %c0_159] : memref<1x64x128xf32, #tpu.memory_space<vmem>>, vector<1x8x128xf32>
    %182 = vector.shape_cast %181 : vector<1x8x128xf32> to vector<8x128xf32>
    %183 = vector.shape_cast %180 : vector<8x128xf32> to vector<1x8x128xf32>
    tpu.vector_store %arg4[%c0_157, %c16_158, %c0_159], %183 {strides = array<i32>} : memref<1x64x128xf32, #tpu.memory_space<vmem>>, vector<1x8x128xf32>,
    %184 = vector.extract_strided_slice %156 {offsets = [30, 0], sizes = [8, 128], strides = [1, 1]} : vector<80x128xf32> to vector<8x128xf32>
    %c0_160 = arith.constant 0 : index
    %c24_161 = arith.constant 24 : index
    %c0_162 = arith.constant 0 : index
    %185 = vector.load %arg1[%c0_160, %c24_161, %c0_162] : memref<1x64x128xf32, #tpu.memory_space<vmem>>, vector<1x8x128xf32>
    %186 = vector.shape_cast %185 : vector<1x8x128xf32> to vector<8x128xf32>
    %187 = arith.addf %184, %186 : vector<8x128xf32>
    %cst_163 = arith.constant 0.000000e+00 : f32
    %188 = vector.broadcast %cst_163 : f32 to vector<8x128xf32>
    %189 = arith.maximumf %187, %188 : vector<8x128xf32>
    %c0_164 = arith.constant 0 : index
    %c24_165 = arith.constant 24 : index
    %c0_166 = arith.constant 0 : index
    %190 = vector.load %arg4[%c0_164, %c24_165, %c0_166] : memref<1x64x128xf32, #tpu.memory_space<vmem>>, vector<1x8x128xf32>
    %191 = vector.shape_cast %190 : vector<1x8x128xf32> to vector<8x128xf32>
    %192 = vector.shape_cast %189 : vector<8x128xf32> to vector<1x8x128xf32>
    tpu.vector_store %arg4[%c0_164, %c24_165, %c0_166], %192 {strides = array<i32>} : memref<1x64x128xf32, #tpu.memory_space<vmem>>, vector<1x8x128xf32>,
    %193 = vector.extract_strided_slice %156 {offsets = [40, 0], sizes = [8, 128], strides = [1, 1]} : vector<80x128xf32> to vector<8x128xf32>
    %c0_167 = arith.constant 0 : index
    %c32_168 = arith.constant 32 : index
    %c0_169 = arith.constant 0 : index
    %194 = vector.load %arg1[%c0_167, %c32_168, %c0_169] : memref<1x64x128xf32, #tpu.memory_space<vmem>>, vector<1x8x128xf32>
    %195 = vector.shape_cast %194 : vector<1x8x128xf32> to vector<8x128xf32>
    %196 = arith.addf %193, %195 : vector<8x128xf32>
    %cst_170 = arith.constant 0.000000e+00 : f32
    %197 = vector.broadcast %cst_170 : f32 to vector<8x128xf32>
    %198 = arith.maximumf %196, %197 : vector<8x128xf32>
    %c0_171 = arith.constant 0 : index
    %c32_172 = arith.constant 32 : index
    %c0_173 = arith.constant 0 : index
    %199 = vector.load %arg4[%c0_171, %c32_172, %c0_173] : memref<1x64x128xf32, #tpu.memory_space<vmem>>, vector<1x8x128xf32>
    %200 = vector.shape_cast %199 : vector<1x8x128xf32> to vector<8x128xf32>
    %201 = vector.shape_cast %198 : vector<8x128xf32> to vector<1x8x128xf32>
    tpu.vector_store %arg4[%c0_171, %c32_172, %c0_173], %201 {strides = array<i32>} : memref<1x64x128xf32, #tpu.memory_space<vmem>>, vector<1x8x128xf32>,
    %202 = vector.extract_strided_slice %156 {offsets = [50, 0], sizes = [8, 128], strides = [1, 1]} : vector<80x128xf32> to vector<8x128xf32>
    %c0_174 = arith.constant 0 : index
    %c40_175 = arith.constant 40 : index
    %c0_176 = arith.constant 0 : index
    %203 = vector.load %arg1[%c0_174, %c40_175, %c0_176] : memref<1x64x128xf32, #tpu.memory_space<vmem>>, vector<1x8x128xf32>
    %204 = vector.shape_cast %203 : vector<1x8x128xf32> to vector<8x128xf32>
    %205 = arith.addf %202, %204 : vector<8x128xf32>
    %cst_177 = arith.constant 0.000000e+00 : f32
    %206 = vector.broadcast %cst_177 : f32 to vector<8x128xf32>
    %207 = arith.maximumf %205, %206 : vector<8x128xf32>
    %c0_178 = arith.constant 0 : index
    %c40_179 = arith.constant 40 : index
    %c0_180 = arith.constant 0 : index
    %208 = vector.load %arg4[%c0_178, %c40_179, %c0_180] : memref<1x64x128xf32, #tpu.memory_space<vmem>>, vector<1x8x128xf32>
    %209 = vector.shape_cast %208 : vector<1x8x128xf32> to vector<8x128xf32>
    %210 = vector.shape_cast %207 : vector<8x128xf32> to vector<1x8x128xf32>
    tpu.vector_store %arg4[%c0_178, %c40_179, %c0_180], %210 {strides = array<i32>} : memref<1x64x128xf32, #tpu.memory_space<vmem>>, vector<1x8x128xf32>,
    %211 = vector.extract_strided_slice %156 {offsets = [60, 0], sizes = [8, 128], strides = [1, 1]} : vector<80x128xf32> to vector<8x128xf32>
    %c0_181 = arith.constant 0 : index
    %c48_182 = arith.constant 48 : index
    %c0_183 = arith.constant 0 : index
    %212 = vector.load %arg1[%c0_181, %c48_182, %c0_183] : memref<1x64x128xf32, #tpu.memory_space<vmem>>, vector<1x8x128xf32>
    %213 = vector.shape_cast %212 : vector<1x8x128xf32> to vector<8x128xf32>
    %214 = arith.addf %211, %213 : vector<8x128xf32>
    %cst_184 = arith.constant 0.000000e+00 : f32
    %215 = vector.broadcast %cst_184 : f32 to vector<8x128xf32>
    %216 = arith.maximumf %214, %215 : vector<8x128xf32>
    %c0_185 = arith.constant 0 : index
    %c48_186 = arith.constant 48 : index
    %c0_187 = arith.constant 0 : index
    %217 = vector.load %arg4[%c0_185, %c48_186, %c0_187] : memref<1x64x128xf32, #tpu.memory_space<vmem>>, vector<1x8x128xf32>
    %218 = vector.shape_cast %217 : vector<1x8x128xf32> to vector<8x128xf32>
    %219 = vector.shape_cast %216 : vector<8x128xf32> to vector<1x8x128xf32>
    tpu.vector_store %arg4[%c0_185, %c48_186, %c0_187], %219 {strides = array<i32>} : memref<1x64x128xf32, #tpu.memory_space<vmem>>, vector<1x8x128xf32>,
    %220 = vector.extract_strided_slice %156 {offsets = [70, 0], sizes = [8, 128], strides = [1, 1]} : vector<80x128xf32> to vector<8x128xf32>
    %c0_188 = arith.constant 0 : index
    %c56_189 = arith.constant 56 : index
    %c0_190 = arith.constant 0 : index
    %221 = vector.load %arg1[%c0_188, %c56_189, %c0_190] : memref<1x64x128xf32, #tpu.memory_space<vmem>>, vector<1x8x128xf32>
    %222 = vector.shape_cast %221 : vector<1x8x128xf32> to vector<8x128xf32>
    %223 = arith.addf %220, %222 : vector<8x128xf32>
    %cst_191 = arith.constant 0.000000e+00 : f32
    %224 = vector.broadcast %cst_191 : f32 to vector<8x128xf32>
    %225 = arith.maximumf %223, %224 : vector<8x128xf32>
    %c0_192 = arith.constant 0 : index
    %c56_193 = arith.constant 56 : index
    %c0_194 = arith.constant 0 : index
    %226 = vector.load %arg4[%c0_192, %c56_193, %c0_194] : memref<1x64x128xf32, #tpu.memory_space<vmem>>, vector<1x8x128xf32>
    %227 = vector.shape_cast %226 : vector<1x8x128xf32> to vector<8x128xf32>
    %228 = vector.shape_cast %225 : vector<8x128xf32> to vector<1x8x128xf32>
    tpu.vector_store %arg4[%c0_192, %c56_193, %c0_194], %228 {strides = array<i32>} : memref<1x64x128xf32, #tpu.memory_space<vmem>>, vector<1x8x128xf32>,
    return
  }
  func.func @transform_0(%arg0: i32) -> (i32, i32, i32) {
    %c0_i32 = arith.constant 0 : i32
    %c0_i32_0 = arith.constant 0 : i32
    %c0_i32_1 = arith.constant 0 : i32
    return %arg0, %c0_i32, %c0_i32_0 : i32, i32, i32
  }
  func.func @transform_1(%arg0: i32) -> (i32, i32, i32) {
    %c0_i32 = arith.constant 0 : i32
    %c0_i32_0 = arith.constant 0 : i32
    %c0_i32_1 = arith.constant 0 : i32
    %c0_i32_2 = arith.constant 0 : i32
    return %c0_i32, %c0_i32_0, %c0_i32_1 : i32, i32, i32
  }
  func.func @transform_2(%arg0: i32) -> (i32, i32, i32) {
    %c0_i32 = arith.constant 0 : i32
    %c0_i32_0 = arith.constant 0 : i32
    %c0_i32_1 = arith.constant 0 : i32
    %c0_i32_2 = arith.constant 0 : i32
    return %c0_i32, %c0_i32_0, %c0_i32_1 : i32, i32, i32
  }
  func.func @transform_3(%arg0: i32) -> (i32, i32, i32) {
    %c0_i32 = arith.constant 0 : i32
    %c0_i32_0 = arith.constant 0 : i32
    %c0_i32_1 = arith.constant 0 : i32
    return %arg0, %c0_i32, %c0_i32_0 : i32, i32, i32
  }
}

</mosaic_0001>

<bundles_post_ra>
// kernel: tpu_custom_call.1
= control target key start
LH: loop header
LB: loop body
LE: loop exit
PB: predicated region body
PF: predicated region fallthrough
CT: control target
= control target key end

     0   :  { %8 = vsyncpa [#allocation4], 0  ;;  %s5447_s0 = inlined_call_operand.hbm [shape: f32[2,64,128], index: 0, kind: input, shape index: {}]   ;;  %s5448_s1 = inlined_call_operand.hbm [shape: bf16[18,128,128], index: 1, kind: input, shape index: {}]   ;;  %s5449_s2 = inlined_call_operand.hbm [shape: f32[2,1,128], index: 2, kind: input, shape index: {}]   ;;  %s5450_s3 = inlined_call_operand.hbm [shape: f32[2,64,128], index: 3, kind: output, shape index: {}]  }
   0x1   :  { %10 = vsyncpa [#allocation4 + $0x1], 0 }
   0x2   :  { %11 = vsyncpa [#allocation7], 0 }
   0x3   :  { %12 = vsyncpa [#allocation5], 0 }
   0x4   :  { %14 = vsyncpa [#allocation5 + $0x1], 0  ;;  %s4665_s12 = smov 0   ;;  %s4667_s13 = smov 0  }
   0x5   :  { %s4669_s14 = smov 0   ;;  %s4671_s15 = smov 0  }
   0x6 LB: > { %s4686_s16 = sadd.s32 4294967295, %s4632_s15   ;;  %s3503_s17 = sadd.s32 4294967294, %s4632_s15   ;;  %s4632_s15 = sphi %s4671_s15, %s5485_s15   ;;  %s4628_s14 = sphi %s4669_s14, %s5484_s14   ;;  %s4624_s13 = sphi %s4667_s13, %s5483_s13   ;;  %s4620_s12 = sphi %s4665_s12, %s5482_s12  }
   0x7   : > { %p40_p0 = scmp.ne.s32.totalorder %s4624_s13, %s4620_s12  ;;  %p41_p1 = scmp.eq.s32.totalorder %s4686_s16, 0 }
   0x8   : > { %p106_p2 = scmp.eq.s32.totalorder %s4686_s16, 1  ;;  %p112_p3 = scmp.eq.s32.totalorder %s3503_s17, 1 }
   0x9   : > { %p4695_p4 = por %p41_p1, %p40_p0  ;;  %p3504_p5 = scmp.ge.s32.totalorder %s4632_s15, 1 }
   0xa   : > { %p4700_p6 = por %p112_p3, %p40_p0  ;;  %p119_p7 = scmp.lt.s32.totalorder %s4632_s15, 3 }
   0xb   : > { %s130_s22 = sshll.u32 %s5448_s1, 4  ;;  %s4634_s24 = smov [#allocation6]   ;;  %s131_s22 = int_to_ptr.hbm [resolvable:$true] %s130_s22 }
   0xc   : > { %p4709_p9 = pnand %p3504_p5, %p119_p7  ;;  %s132_s25 = sshll.u32 %s4634_s24, 4  ;;  %s133_s25 = int_to_ptr.vmem [resolvable:$true] %s132_s25 }
   0xd   : > { %s144_s28 = sshll.u32 %s5449_s2, 4  ;;  %s4635_s29 = smov 64   ;;  %s145_s28 = int_to_ptr.hbm [resolvable:$true] %s144_s28 }
   0xe   : > { %p4406_p10 = pneg %p4709_p9  ;;  %s4636_s30 = smov 4  }
   0xf   : > { %s4637_s4 = smov [#allocation8]   ;;  %s4638_s6 = smov 16  }
  0x10   : > { %p4407_p11 = pnand %p4406_p10, %p41_p1  ;;  %s146_s5 = sshll.u32 %s4637_s4, 4  ;;  %s147_s5 = int_to_ptr.vmem [resolvable:$true] %s146_s5 }
  0x11   : > { %s4639_s7 = smov 1   ;;  %s4722_s8 = sadd.s32 1, %s4632_s15  }
  0x12   : > { %4409 = dma.hbm_to_vmem [thread:$0]  (!%p4407_p11), %s131_s22, 18432, %s133_s25, [#allocation7], %s4635_s29, %s4635_s29, %s4636_s30  }
  0x13   : > { %4412 = dma.hbm_to_vmem [thread:$0]  (!%p4407_p11), %s145_s28, 32, %s147_s5, [#allocation7], %s4638_s6, %s4638_s6, %s4639_s7  }
  0x14   : > { %s24_s9 = ssub.s32 %s4632_s15, %s4722_s8  ;;  %s27_s10 = sadd.s32 1, %s4628_s14 }
  0x15   : > { %p25_p13 = scmp.eq.s32.totalorder %s24_s9, 0  ;;  %p34_p0 = scmp.ne.s32.totalorder %s4628_s14, %s4624_s13 }
  0x16   : > { %p35_p3 = scmp.eq.s32.totalorder %s4632_s15, 0  ;;  %p4423_p10 = scmp.lt.s32.totalorder %s4632_s15, 2 }
  0x17   : > { %s4731_s11 = scalar_select %p25_p13, %s4628_s14, %s27_s10  }
  0x18   : > { %p36_p5 = por %p35_p3, %p34_p0  ;;  %p4735_p7 = por %p106_p2, %p34_p0 }
  0x19   : > { %s160_s20 = sand.u32 1, %s4628_s14   ;;  %s4194_s22 = sshll.u32 %s4632_s15, 6 }
  0x1a   : > { %s3508_s21 = sshll.u32 %s160_s20, 6  ;;  %s169_s26 = scalar_lea.hbm %s5447_s0, %s4194_s22 }
  0x1b   : > { %s164_s27 = scalar_lea.vmem [#allocation3], %s3508_s21  ;;  %s170_s29 = sshll.u32 %s169_s26, 4  ;;  %s171_s29 = int_to_ptr.hbm [resolvable:$true] %s170_s29 }
  0x1c   : > { %s172_s28 = sshll.u32 %s164_s27, 4  ;;  %p4745_p11 = pnand %p4423_p10, %p36_p5  ;;  %s173_s28 = int_to_ptr.vmem [resolvable:$true] %s172_s28 }
  0x1d   : > { %s161_s4 = scalar_lea.sflag [#allocation4], %s160_s20  ;;  %s4532_s5 = sshra.s32 %s171_s29, 4  ;;  %s4533_s5 = int_to_ptr.hbm [resolvable:$true] %s4532_s5 }
  0x1e   : > { %s4534_s6 = scalar_lea.hbm %s4533_s5, 64  ;;  %p4536_p13 = pneg %p4745_p11 }
  0x1f   : > { %p4535_p2 = scmp.ne.s32.totalorder %s4533_s5, %s4534_s6  ;;  %s4539_s10 = scalar_lea.hbm %s5447_s0, 128 }
  0x20   : > { %p4540_p5 = scmp.lt.s32.totalorder %s4533_s5, %s5447_s0  ;;  %p4541_p10 = scmp.lt.s32.totalorder %s4539_s10, %s4534_s6 }
  0x21   : > { %p4537_p0 = pnand %p4536_p13, %p4535_p2 }
  0x22   : > { %p4542_p12 = por %p4541_p10, %p4540_p5 }
  0x23   : > { %p4538_p3 = pneg %p4537_p0 }
  0x25   : > { %p4543_p8 = pnand %p4542_p12, %p4538_p3 }
  0x27   : > { %4546 = shalt.err (!%p4543_p8)
}
  0x28   : > { %s4640_s20 = smov 128   ;;  %s4641_s24 = smov 8  }
  0x29   : > { %4416 = dma.hbm_to_vmem [thread:$0]  (!%p4745_p11), %s171_s29, 1024, %s173_s28, %s161_s4, %s4640_s20, %s4640_s20, %s4641_s24  }
  0x2a   : > { %184 = sbr.rel (%p4709_p9) target bundleno = 783 (0x30f), region = 32  ;;  %s4762_s25 = sand.u32 (!%p4709_p9), 1, %s4624_s13  }
  0x2b   : > { %s3512_s26 = sshll.u32 (!%p4709_p9), %s4762_s25, 6  ;;  %s187_s27 = scalar_lea.sflag (!%p4709_p9), [#allocation4], %s4762_s25 }
  0x2c   : > { %s4766_s5 = scalar_lea.vmem (!%p4709_p9), [#allocation3], %s3512_s26 }
  0x2f   : > { %4607 = dma.done.wait (%p4695_p4), %s187_s27, 1024  }
  0x30   : > { %4609 = vsyncadd (%p4695_p4), %s187_s27, 4294966272 }
  0x31   : > { %4611 = dma.done.wait (%p41_p1), [#allocation7], 18464  }
  0x32   : > { %4613 = vsyncadd (%p41_p1), [#allocation7], 4294948832  ;;  %s4776_s23 = scalar_lea.vmem [#allocation9], %s3512_s26  ;;  %p5457_p8 = scmp.ne.s32.totalorder %s4686_s16, 0 }
  0x34   : > { %228 = sbr.rel (%p5457_p8) target bundleno = 71 (0x47), region = 48 }
  0x39   : > { %v4642_v0 = vmov 0  }
  0x3a   : > { %229 = vst [vmem:[#allocation2] sm:$0xf] %v4642_v0 }
  0x3b   : > { %230 = vst [vmem:[#allocation2 + $0x4] sm:$0xf] %v4642_v0 }
  0x3c   : > { %231 = vst [vmem:[#allocation2 + $0x8] sm:$0xf] %v4642_v0 }
  0x3d   : > { %232 = vst [vmem:[#allocation2 + $0xc] sm:$0xf] %v4642_v0 }
  0x3e   : > { %233 = vst [vmem:[#allocation2 + $0x10] sm:$0xf] %v4642_v0 }
  0x3f   : > { %234 = vst [vmem:[#allocation2 + $0x14] sm:$0xf] %v4642_v0 }
  0x40   : > { %235 = vst [vmem:[#allocation2 + $0x18] sm:$0xf] %v4642_v0 }
  0x41   : > { %236 = vst [vmem:[#allocation2 + $0x1c] sm:$0xf] %v4642_v0 }
  0x42   : > { %237 = vst [vmem:[#allocation2 + $0x20] sm:$0xf] %v4642_v0 }
  0x43   : > { %238 = vst [vmem:[#allocation2 + $0x24] sm:$0xf] %v4642_v0 }
  0x44   : > { %239 = vst [vmem:[#allocation2 + $0x28] sm:$0xf] %v4642_v0 }
  0x45   : > { %240 = vst [vmem:[#allocation2 + $0x2c] sm:$0xf] %v4642_v0 }
  0x46   : > { %241 = vst [vmem:[#allocation2 + $0x30] sm:$0x7] %v4642_v0 }
  0x47 PF: > { %v4214_v1 = vld [vmem:[#allocation6 + $0x78] sm:$0xff]  ;;  %v4213_v3 = vld [vmem:[#allocation6 + $0x70] sm:$0xff]  ;;  %vm255_vm0 = vcmask 1043457   ;;  %v4212_v5 = vld [vmem:[#allocation6 + $0x68] sm:$0xff]  ;;  %vm256_vm1 = vsmask.f32 7942 }
  0x48   : > { %v4206_v2 = vld [vmem:[#allocation6 + $0x38] sm:$0xff]  ;;  %4378 = vmatpush.bf16.msra.mxu2 %v4214_v1  ;;  %v4205_v4 = vld [vmem:[#allocation6 + $0x30] sm:$0xff]  ;;  %585 = vmatpush.bf16.msra.mxu0 %v4214_v1  ;;  %v4204_v6 = vld [vmem:[#allocation6 + $0x28] sm:$0xff]  ;;  %vm261_vm2 = vcmask 1041408   ;;  %vm262_vm3 = vsmask.f32 1280 }
  0x49   : > { %4386 = vmatpush.bf16.msra.mxu3 %v4206_v2  ;;  %672 = vmatpush.bf16.msra.mxu1 %v4206_v2  ;;  %v292_v7 = vld [vmem:[%s4766_s5 + $0x10] sm:$0xff]  ;;  %vm280_vm4 = vcmask 1043458   ;;  %vm281_vm5 = vsmask.f32 7946  ;;  %v317_v9 = vld [vmem:[%s4766_s5 + $0x18] sm:$0xff]  ;;  %vm311_vm6 = vcmask 1043456   ;;  %vm4785_vm11 = vmand %vm255_vm0, %vm256_vm1 }
  0x4a   : > { %v293_v8 = vpack.c.bf16 %v292_v7, %v292_v7  ;;  %vm312_vm7 = vsmask.f32 3328  ;;  %v318_v10 = vpack.c.bf16 %v317_v9, %v317_v9  ;;  %vm329_vm8 = vsmask.f32 7938  ;;  %v340_v13 = vld [vmem:[%s4766_s5 + $0x20] sm:$0xff]  ;;  %v359_v18 = vld [vmem:[%s4766_s5 + $0x28] sm:$0xff]  ;;  %vm4792_vm13 = vmand %vm261_vm2, %vm262_vm3 }
  0x4b   : > { %vm334_vm9 = vcmask 1040384   ;;  %vm335_vm10 = vsmask.f32 256  ;;  %v341_v17 = vpack.c.bf16 %v340_v13, %v340_v13  ;;  %vm286_vm12 = vcmask 1042432   ;;  %v4211_v19 = vld [vmem:[#allocation6 + $0x60] sm:$0xff]  ;;  %vm4800_vm15 = vmand %vm311_vm6, %vm329_vm8  ;;  %v4210_v30 = vld [vmem:[#allocation6 + $0x58] sm:$0xff] }
  0x4c   : > { %4379 = vmatpush.bf16.msra.mxu2 %v4213_v3  ;;  %586 = vmatpush.bf16.msra.mxu0 %v4213_v3  ;;  %v295_v11 = vshll.u32 %v293_v8, 16  ;;  %v298_v12 = vshrl.u32 %v293_v8, 16  ;;  %v320_v15 = vshrl.u32 %v318_v10, 16  ;;  %v323_v16 = vshll.u32 %v318_v10, 16  ;;  %v4203_v20 = vld [vmem:[#allocation6 + $0x20] sm:$0xff]  ;;  %v4202_v31 = vld [vmem:[#allocation6 + $0x18] sm:$0xff]  ;;  %vm4807_vm1 = vmand %vm334_vm9, %vm335_vm10 }
  0x4d   : > { %4387 = vmatpush.bf16.msra.mxu3 %v4205_v4  ;;  %673 = vmatpush.bf16.msra.mxu1 %v4205_v4  ;;  %v360_v24 = vpack.c.bf16 %v359_v18, %v359_v18  ;;  %vm287_vm14 = vsmask.f32 2304  ;;  %v331_v27 = vld [vmem:[#allocation2 + $0x14] sm:$0xf]  ;;  %v343_v28 = vshrl.u32 %v341_v17, 16  ;;  %v346_v29 = vshll.u32 %v341_v17, 16  ;;  %vm4813_vm8 = vmand %vm311_vm6, %vm312_vm7 }
  0x4e   : > { %v4796_v22 = vrot.slane %v295_v11, 5  ;;  %v300_v23 = vrot.slane %v298_v12, 4  ;;  %v322_v25 = vrot.slane %v320_v15, 7  ;;  %vm305_vm0 = vcmask 1043459   ;;  %v337_v34 = vld [vmem:[#allocation2 + $0x18] sm:$0x1]  ;;  %vm4820_vm9 = vmand %vm280_vm4, %vm281_vm5 }
  0x4f   : > { %v362_v35 = vshrl.u32 %v360_v24, 16  ;;  %v365_v36 = vshll.u32 %v360_v24, 16  ;;  %vm306_vm2 = vsmask.f32 7950  ;;  %v314_v38 = vld [vmem:[#allocation2 + $0x10] sm:$0xf]  ;;  %vm4833_vm4 = vmand %vm286_vm12, %vm287_vm14 }
  0x50   : > { %4380 = vmatpush.bf16.msra.mxu2 %v4212_v5  ;;  %587 = vmatpush.bf16.msra.mxu0 %v4212_v5  ;;  %v301_v32 = vor.u32 %v300_v23, %v4796_v22  ;;  %v325_v39 = vor.u32 %v323_v16, %v322_v25  ;;  %v326_v40 = vrot.slane %v322_v25, 4  ;;  %v345_v41 = vrot.slane %v343_v28, 6  ;;  %v378_v43 = vld [vmem:[%s4766_s5 + $0x30] sm:$0xff]  ;;  %v353_v46 = vld [vmem:[#allocation2 + $0x18] sm:$0xe]  ;;  %v267_v63 = vld [vmem:[%s4766_s5 + $0x8] sm:$0xff] }
  0x51   : > { %4388 = vmatpush.bf16.msra.mxu3 %v4204_v6  ;;  %674 = vmatpush.bf16.msra.mxu1 %v4204_v6  ;;  %v348_v42 = vrot.slane %v346_v29, 7  ;;  %v364_v47 = vrot.slane %v362_v35, 5  ;;  %v367_v48 = vrot.slane %v365_v36, 6  ;;  %v379_v49 = vpack.c.bf16 %v378_v43, %v378_v43  ;;  %v242_v50 = vld [vmem:[%s4766_s5] sm:$0xff]  ;;  %v356_v54 = vld [vmem:[#allocation2 + $0x1c] sm:$0x3]  ;;  %vm4842_vm5 = vmand %vm305_vm0, %vm306_vm2 }
  0x52   : > { %v302_v45 = vrot.slane %v301_v32, 4  ;;  %v332_v51 = vsel %vm4800_vm15, %v325_v39, %v331_v27  ;;  %v338_v52 = vsel %vm4807_vm1, %v326_v40, %v337_v34  ;;  %v372_v55 = vld [vmem:[#allocation2 + $0x1c] sm:$0xc]  ;;  %v375_v56 = vld [vmem:[#allocation2 + $0x20] sm:$0x7]  ;;  %v4209_v57 = vld [vmem:[#allocation6 + $0x50] sm:$0xff]  ;;  %v243_v5 = vpack.c.bf16 %v242_v50, %v242_v50 }
  0x53   : > { %v349_v53 = vor.u32 %v348_v42, %v345_v41  ;;  %333 = vst [vmem:[#allocation2 + $0x14] sm:$0xf] %v332_v51  ;;  %v368_v59 = vor.u32 %v367_v48, %v364_v47  ;;  %v381_v61 = vshll.u32 %v379_v49, 16  ;;  %v384_v62 = vshrl.u32 %v379_v49, 16  ;;  %v4201_v0 = vld [vmem:[#allocation6 + $0x10] sm:$0xff]  ;;  %v397_v11 = vld [vmem:[%s4766_s5 + $0x38] sm:$0xff] }
  0x54   : > { %4381 = vmatpush.bf16.msra.mxu2 %v4211_v19  ;;  %588 = vmatpush.bf16.msra.mxu0 %v4211_v19  ;;  %v315_v58 = vsel %vm4813_vm8, %v302_v45, %v314_v38  ;;  %v391_v4 = vld [vmem:[#allocation2 + $0x20] sm:$0x8]  ;;  %v268_v6 = vpack.c.bf16 %v267_v63, %v267_v63  ;;  %339 = vst [vmem:[#allocation2 + $0x18] sm:$0x1] %v338_v52  ;;  %v394_v13 = vld [vmem:[#allocation2 + $0x24] sm:$0xf] }
  0x55   : > { %4389 = vmatpush.bf16.msra.mxu3 %v4203_v20  ;;  %675 = vmatpush.bf16.msra.mxu1 %v4203_v20  ;;  %316 = vst [vmem:[#allocation2 + $0x10] sm:$0xf] %v315_v58  ;;  %v350_v1 = vrot.slane %v349_v53, 4  ;;  %v354_v2 = vsel %vm4785_vm11, %v349_v53, %v353_v46  ;;  %v373_v7 = vsel %vm4820_vm9, %v368_v59, %v372_v55  ;;  %v369_v8 = vrot.slane %v368_v59, 4  ;;  %v4208_v18 = vld [vmem:[#allocation6 + $0x48] sm:$0xff]  ;;  %v4207_v41 = vld [vmem:[#allocation6 + $0x40] sm:$0xff] }
  0x56   : > { %v383_v9 = vrot.slane %v381_v61, 5  ;;  %v386_v10 = vrot.slane %v384_v62, 4  ;;  %355 = vst [vmem:[#allocation2 + $0x18] sm:$0xe] %v354_v2  ;;  %v245_v15 = vshrl.u32 %v243_v5, 16  ;;  %v248_v16 = vshll.u32 %v243_v5, 16 }
  0x57   : > { %v357_v12 = vsel %vm4792_vm13, %v350_v1, %v356_v54  ;;  %v270_v17 = vshrl.u32 %v268_v6, 16  ;;  %v376_v19 = vsel %vm4833_vm4, %v369_v8, %v375_v56  ;;  %v258_v24 = vld [vmem:[#allocation2 + $0x4] sm:$0xe]  ;;  %v273_v25 = vshll.u32 %v268_v6, 16  ;;  %v4200_v27 = vld [vmem:[#allocation6 + $0x8] sm:$0xff]  ;;  %v4199_v42 = vld [vmem:[#allocation6] sm:$0xff] }
  0x58   : > { %4382 = vmatpush.bf16.msra.mxu2 %v4210_v30  ;;  %589 = vmatpush.bf16.msra.mxu0 %v4210_v30  ;;  %358 = vst [vmem:[#allocation2 + $0x1c] sm:$0x3] %v357_v12  ;;  %v387_v20 = vor.u32 %v386_v10, %v383_v9  ;;  %v392_v23 = vsel %vm4842_vm5, %v383_v9, %v391_v4  ;;  %v247_v28 = vrot.slane %v245_v15, 6  ;;  %v250_v29 = vrot.slane %v248_v16, 7  ;;  %v308_v35 = vld [vmem:[#allocation2 + $0xc] sm:$0x8] }
  0x59   : > { %4390 = vmatpush.bf16.msra.mxu3 %v4202_v31  ;;  %676 = vmatpush.bf16.msra.mxu1 %v4202_v31  ;;  %374 = vst [vmem:[#allocation2 + $0x1c] sm:$0xc] %v373_v7  ;;  %v272_v30 = vrot.slane %v270_v17, 5  ;;  %v398_v31 = vpack.c.bf16 %v397_v11, %v397_v11  ;;  %v275_v34 = vrot.slane %v273_v25, 6  ;;  %v283_v38 = vld [vmem:[#allocation2 + $0x8] sm:$0xc]  ;;  %v309_v39 = vsel %vm4842_vm5, %v4796_v22, %v308_v35 }
  0x5a   : > { %377 = vst [vmem:[#allocation2 + $0x20] sm:$0x7] %v376_v19  ;;  %v388_v32 = vrot.slane %v387_v20, 4  ;;  %v251_v36 = vor.u32 %v250_v29, %v247_v28  ;;  %v264_v46 = vld [vmem:[#allocation2 + $0x8] sm:$0x3]  ;;  %v4222_v49 = vld [vmem:[#allocation6 + $0xb8] sm:$0xff] }
  0x5b   : > { %393 = vst [vmem:[#allocation2 + $0x20] sm:$0x8] %v392_v23  ;;  %v400_v40 = vshrl.u32 %v398_v31, 16  ;;  %v276_v47 = vor.u32 %v275_v34, %v272_v30  ;;  %v403_v48 = vshll.u32 %v398_v31, 16  ;;  %v289_v52 = vld [vmem:[#allocation2 + $0xc] sm:$0x7] }
  0x5c   : > { %4383 = vmatpush.bf16.msra.mxu2 %v4209_v57  ;;  %590 = vmatpush.bf16.msra.mxu0 %v4209_v57  ;;  %v4858_v43 = vld [vmem:[#allocation2 + $0x10] sm:$0xff]  ;;  %v395_v45 = vsel %vm4813_vm8, %v388_v32, %v394_v13  ;;  %310 = vst [vmem:[#allocation2 + $0xc] sm:$0x8] %v309_v39  ;;  %v252_v50 = vrot.slane %v251_v36, 4  ;;  %v259_v51 = vsel %vm4785_vm11, %v251_v36, %v258_v24  ;;  %v409_v61 = vld [vmem:[#allocation2 + $0x28] sm:$0xf] }
  0x5d   : > { %4391 = vmatpush.bf16.msra.mxu3 %v4201_v0  ;;  %677 = vmatpush.bf16.msra.mxu1 %v4201_v0  ;;  %396 = vst [vmem:[#allocation2 + $0x24] sm:$0xf] %v395_v45  ;;  %v4864_v22 = vrot.slane %v400_v40, 7  ;;  %v504_v53 = vshll.u32 %v4858_v43, 16  ;;  %v508_v54 = vshrl.u32 %v4858_v43, 16  ;;  %v4234_v55 = vld [vmem:[#allocation6 + $0xf8] sm:$0xff]  ;;  %v284_v57 = vsel %vm4820_vm9, %v276_v47, %v283_v38 }
  0x5e   : > { %260 = vst [vmem:[#allocation2 + $0x4] sm:$0xe] %v259_v51  ;;  %v277_v56 = vrot.slane %v276_v47, 4  ;;  %v265_v58 = vsel %vm4792_vm13, %v252_v50, %v264_v46  ;;  %v4242_v1 = vld [vmem:[#allocation6 + $0x138] sm:$0xff]  ;;  %vm487_vm6 = vsmask.f32 7424 }
  0x5f   : > { %285 = vst [vmem:[#allocation2 + $0x8] sm:$0xc] %v284_v57  ;;  %v405_v59 = vor.u32 %v403_v48, %v4864_v22  ;;  %v4875_v63 = vrot.slane %v504_v53, 1  ;;  %v4250_v6 = vld [vmem:[#allocation6 + $0x178] sm:$0xff]  ;;  %v4233_v7 = vld [vmem:[#allocation6 + $0xf0] sm:$0xff]  ;;  %v4232_v15 = vld [vmem:[#allocation6 + $0xe8] sm:$0xff] }
  0x60   : > { %4384 = vmatpush.bf16.msra.mxu2 %v4208_v18  ;;  %591 = vmatpush.bf16.msra.mxu0 %v4208_v18  ;;  %v4873_v62 = vld [vmem:[#allocation2 + $0x18] sm:$0xff]  ;;  %266 = vst [vmem:[#allocation2 + $0x8] sm:$0x3] %v265_v58  ;;  %v290_v0 = vsel %vm4833_vm4, %v277_v56, %v289_v52  ;;  %v4221_v9 = vld [vmem:[#allocation6 + $0xb0] sm:$0xff]  ;;  %v4230_v39 = vld [vmem:[#allocation6 + $0xd8] sm:$0xff]  ;;  %vm1193_vm7 = vcmask 1045504  }
  0x61   : > { %4392 = vmatpush.bf16.msra.mxu3 %v4200_v27  ;;  %678 = vmatpush.bf16.msra.mxu1 %v4200_v27  ;;  %291 = vst [vmem:[#allocation2 + $0xc] sm:$0x7] %v290_v0  ;;  %v410_v2 = vsel %vm4800_vm15, %v405_v59, %v409_v61  ;;  %v510_v4 = vor.u32 %v508_v54, %v4875_v63  ;;  %v512_v5 = vshll.u32 %v4873_v62, 16  ;;  %v4241_v11 = vld [vmem:[#allocation6 + $0x130] sm:$0xff]  ;;  %v4220_v18 = vld [vmem:[#allocation6 + $0xa8] sm:$0xff]  ;;  %v4231_v29 = vld [vmem:[#allocation6 + $0xe0] sm:$0xff] }
  0x62   : > { %411 = vst [vmem:[#allocation2 + $0x28] sm:$0xf] %v410_v2  ;;  %v4249_v13 = vld [vmem:[#allocation6 + $0x170] sm:$0xff]  ;;  %v4240_v24 = vld [vmem:[#allocation6 + $0x128] sm:$0xff]  ;;  %v516_v30 = vshrl.u32 %v4873_v62, 16  ;;  %v4219_v34 = vld [vmem:[#allocation6 + $0xa0] sm:$0xff] }
  0x63   : > { %v514_v8 = vrot.slane %v512_v5, 1  ;;  %v4248_v27 = vld [vmem:[#allocation6 + $0x168] sm:$0xff]  ;;  %v4239_v35 = vld [vmem:[#allocation6 + $0x120] sm:$0xff]  ;;  %v4238_v46 = vld [vmem:[#allocation6 + $0x118] sm:$0xff]  ;;  %vm1021_vm10 = vsmask.f32 6400 }
  0x64   : > { %4385 = vmatpush.bf16.msra.mxu2 %v4207_v41  ;;  %592 = vmatpush.bf16.msra.mxu0 %v4207_v41  ;;  %v4885_v19 = vld [vmem:[#allocation2 + $0x20] sm:$0xff]  ;;  %v4247_v38 = vld [vmem:[#allocation6 + $0x160] sm:$0xff]  ;;  %v4246_v47 = vld [vmem:[#allocation6 + $0x158] sm:$0xff]  ;;  %vm727_vm12 = vcmask 1046528   ;;  %vm1659_vm14 = vcmask 1044480   ;;  %s4363_s18 = sshll.u32 %s4686_s16, 6 }
  0x65   : > { %4393 = vmatpush.bf16.msra.mxu3 %v4199_v42  ;;  %679 = vmatpush.bf16.msra.mxu1 %v4199_v42  ;;  %v4365_v10 = vld [vmem:[#allocation2] sm:$0xff]   ;;  %v515_v12 = vsel %vm487_vm6, %v510_v4, %v514_v8  ;;  %v520_v31 = vshll.u32 %v4885_v19, 16  ;;  %v518_v40 = vor.u32 %v516_v30, %v514_v8  ;;  %v4218_v42 = vld [vmem:[#allocation6 + $0x98] sm:$0xff]  ;;  %vm5451_vm0 = vsmask.f32 5376  ;;  %s3407_s30 = scalar_lea.hbm %s5450_s3, %s4363_s18  ;;  %s3408_s4 = sshll.u32 %s4776_s23, 4  ;;  %s3409_s4 = int_to_ptr.vmem [resolvable:$true] %s3408_s4 }
  0x66   : > { %v489_v16 = vshrl.u32 %v4365_v10, 16  ;;  %v491_v17 = vshll.u32 %v4365_v10, 16  ;;  %v4217_v51 = vld [vmem:[#allocation6 + $0x90] sm:$0xff]  ;;  %v4228_v58 = vld [vmem:[#allocation6 + $0xc8] sm:$0xff]  ;;  %vm1812_vm2 = vsmask.f32 5392 }
  0x67   : > { %603 = vmatmul.bf16.vlgmr.msra.gmra.mxu2 %v515_v12  ;;  %v522_v41 = vrot.slane %v520_v31, 1  ;;  %v4237_v53 = vld [vmem:[#allocation6 + $0x110] sm:$0xff]  ;;  %v4216_v61 = vld [vmem:[#allocation6 + $0x88] sm:$0xff]  ;;  %s3410_s6 = sshll.u32 %s3407_s30, 4  ;;  %s3396_s16 = scalar_lea.sflag [#allocation5], %s4762_s25  ;;  %s3411_s6 = int_to_ptr.hbm [resolvable:$true] %s3410_s6 }
  0x68   : > { %792 = vmatpush.bf16.msrb.mxu2 %v4222_v49  ;;  %690 = vmatmul.bf16.vlgmr.msra.gmra.mxu3 %v4858_v43  ;;  %v4887_v20 = vld [vmem:[#allocation2 + $0x8] sm:$0xff]  ;;  %v493_v23 = vrot.slane %v491_v17, 1  ;;  %v836_v54 = vld [vmem:[#allocation2 + $0x4] sm:$0xe]  ;;  %v4236_v2 = vld [vmem:[#allocation6 + $0x108] sm:$0xff]  ;;  %s4576_s7 = sshra.s32 %s3411_s6, 4  ;;  %s4577_s7 = int_to_ptr.hbm [resolvable:$true] %s4576_s7 }
  0x69   : > { %956 = vmatpush.bf16.msrb.mxu3 %v4234_v55  ;;  %1128 = vmatpush.bf16.msrb.mxu0 %v4242_v1  ;;  %v496_v25 = vshll.u32 %v4887_v20, 16  ;;  %v441_v45 = vld [vmem:[#allocation2 + $0x28] sm:$0x1]  ;;  %v523_v50 = vsel %vm487_vm6, %v518_v40, %v522_v41  ;;  %v500_v52 = vshrl.u32 %v4887_v20, 16  ;;  %v875_v0 = vunpack.c.l.b16 %v836_v54  ;;  %v1172_v4 = vld [vmem:[#allocation2 + $0x4] sm:$0xc]  ;;  %p4583_p12 = scmp.lt.s32.totalorder %s4577_s7, %s5450_s3 }
  0x6a   : > { %1258 = vmatpush.bf16.msrb.mxu1 %v4250_v6  ;;  %v494_v28 = vor.u32 %v493_v23, %v489_v16  ;;  %v480_v48 = vunpack.c.l.b16 %v441_v45  ;;  %v4229_v49 = vld [vmem:[#allocation6 + $0xd0] sm:$0xff]  ;;  %v4244_v5 = vld [vmem:[#allocation6 + $0x148] sm:$0xff]  ;;  %v1191_v6 = vunpack.c.l.b16 %v1172_v4  ;;  %v4906_v12 = vld [vmem:[#allocation2 + $0xc] sm:$0xff]  ;;  %s4578_s9 = scalar_lea.hbm %s4577_s7, 64  ;;  %s4582_s22 = scalar_lea.hbm %s5450_s3, 128 }
  0x6b   : > { %680 = vmatmul.bf16.vlgmr.msra.gmra.mxu1 %v4365_v10  ;;  %v498_v32 = vrot.slane %v496_v25, 1  ;;  %v4896_v55 = vld [vmem:[#allocation2 + $0x8] sm:$0xff]   ;;  %v4235_v16 = vld [vmem:[#allocation6 + $0x100] sm:$0xff]  ;;  %v1034_v30 = vshll.u32 %v4906_v12, 16  ;;  %v4260_v45 = vld [vmem:[#allocation6 + $0x1a8] sm:$0xff]  ;;  %p4579_p1 = scmp.ne.s32.totalorder %s4577_s7, %s4578_s9  ;;  %p4584_p11 = scmp.lt.s32.totalorder %s4582_s22, %s4578_s9 }
  0x6c   : > { %793 = vmatpush.bf16.msrb.mxu2 %v4221_v9  ;;  %v4245_v56 = vld [vmem:[#allocation6 + $0x150] sm:$0xff]  ;;  %v4898_v57 = vpack.c.b16 %v480_v48, %v480_v48  ;;  %v876_v1 = vunpack.c.l.b16 %v4896_v55  ;;  %v4227_v9 = vld [vmem:[#allocation6 + $0xc0] sm:$0xff]  ;;  %v4262_v17 = vld [vmem:[#allocation6 + $0x1b8] sm:$0xff] }
  0x6d   : > { %957 = vmatpush.bf16.msrb.mxu3 %v4233_v7  ;;  %1129 = vmatpush.bf16.msrb.mxu0 %v4241_v11  ;;  %v499_v36 = vsel %vm487_vm6, %v494_v28, %v498_v32  ;;  %v502_v59 = vor.u32 %v500_v52, %v498_v32  ;;  %v524_v7 = vshrl.u32 %v4885_v19, 16  ;;  %v4215_v11 = vld [vmem:[#allocation6 + $0x80] sm:$0xff]  ;;  %v4269_v31 = vld [vmem:[#allocation6 + $0x1f0] sm:$0xff]  ;;  %p4580_p4 = pnand %p4579_p1, %p4735_p7  ;;  %p4585_p2 = por %p4584_p11, %p4583_p12 }
  0x6e   : > { %1259 = vmatpush.bf16.msrb.mxu1 %v4249_v13  ;;  %593 = vmatmul.bf16.vlgmr.msra.gmra.mxu0 %v499_v36  ;;  %v528_v8 = vshll.u32 %v4898_v57, 16  ;;  %v4908_v13 = vpack.c.b16 %v876_v1, %v875_v0  ;;  %v4243_v23 = vld [vmem:[#allocation6 + $0x140] sm:$0xff]  ;;  %v4261_v32 = vld [vmem:[#allocation6 + $0x1b0] sm:$0xff] }
  0x6f   : > { %v507_v10 = vsel %vm487_vm6, %v502_v59, %v4875_v63  ;;  %v526_v25 = vor.u32 %v524_v7, %v522_v41  ;;  %v1036_v41 = vrot.slane %v1034_v30, 2  ;;  %v4372_v48 = vld [vmem:[#allocation2] sm:$0xf0]  ;;  %v4259_v52 = vld [vmem:[#allocation6 + $0x1a0] sm:$0xff]  ;;  %p4581_p9 = pneg %p4580_p4 }
  0x70   : > { %794 = vmatpush.bf16.msrb.mxu2 %v4220_v18  ;;  %v1192_v18 = vpack.c.b16 %v876_v1, %v1191_v6  ;;  %v1023_v63 = vshrl.u32 %v4908_v13, 16  ;;  %v1026_v28 = vshll.u32 %v4908_v13, 16  ;;  %v892_v59 = vrot.slane %v4908_v13, 1  ;;  %v4275_v13 = vld [vmem:[#allocation6 + $0x220] sm:$0xff] }
  0x71   : > { %958 = vmatpush.bf16.msrb.mxu3 %v4232_v15  ;;  %1130 = vmatpush.bf16.msrb.mxu0 %v4240_v24  ;;  %v4270_v15 = vld [vmem:[#allocation6 + $0x1f8] sm:$0xff]  ;;  %v729_v1 = vrot.slane %v4887_v20, 1  ;;  %p4586_p13 = pnand %p4585_p2, %p4581_p9 }
  0x72   : > { %1260 = vmatpush.bf16.msrb.mxu1 %v4248_v27  ;;  %v4278_v24 = vld [vmem:[#allocation6 + $0x238] sm:$0xff]  ;;  %v530_v27 = vrot.slane %v528_v8, 1 }
  0x74   : > { %795 = vmatpush.bf16.msrb.mxu2 %v4219_v34  ;;  %v1194_v34 = vrot.slane %v1192_v18, 2  ;;  %v531_v36 = vsel %vm487_vm6, %v526_v25, %v530_v27 }
  0x75   : > { %959 = vmatpush.bf16.msrb.mxu3 %v4231_v29  ;;  %1131 = vmatpush.bf16.msrb.mxu0 %v4239_v35  ;;  %v1031_v29 = vshrl.u32 %v4906_v12, 16  ;;  %v1195_v35 = vrot.slane %v4906_v12, 2 }
  0x76   : > { %1261 = vmatpush.bf16.msrb.mxu1 %v4247_v38  ;;  %v1025_v38 = vrot.slane %v1023_v63, 1 }
  0x77   : > { %608 = vmatmul.bf16.gmra.mxu2 %v523_v50  ;;  %v1033_v40 = vrot.slane %v1031_v29, 1 }
  0x78   : > { %796 = vmatpush.bf16.msrb.mxu2 %v4218_v42  ;;  %695 = vmatmul.bf16.gmra.mxu3 %v4873_v62  ;;  %v1196_v42 = vsel %vm1193_vm7, %v1194_v34, %v1195_v35 }
  0x79   : > { %960 = vmatpush.bf16.msrb.mxu3 %v4230_v39  ;;  %1132 = vmatpush.bf16.msrb.mxu0 %v4238_v46  ;;  %v1028_v39 = vrot.slane %v1026_v28, 2  ;;  %v4277_v46 = vld [vmem:[#allocation6 + $0x230] sm:$0xff]  ;;  %v1037_v50 = vor.u32 %v1036_v41, %v1033_v40  ;;  %v406_v28 = vrot.slane %v4864_v22, 4  ;;  %v4256_v22 = vld [vmem:[#allocation6 + $0x188] sm:$0xff] }
  0x7a   : > { %1262 = vmatpush.bf16.msrb.mxu1 %v4246_v47  ;;  %v4268_v47 = vld [vmem:[#allocation6 + $0x1e8] sm:$0xff]  ;;  %v4273_v40 = vld [vmem:[#allocation6 + $0x210] sm:$0xff] }
  0x7b   : > { %685 = vmatmul.bf16.gmra.mxu1 %v4887_v20  ;;  %v4264_v41 = vld [vmem:[#allocation6 + $0x1c8] sm:$0xff] }
  0x7c   : > { %797 = vmatpush.bf16.msrb.mxu2 %v4217_v51  ;;  %v4373_v51 = vld [vmem:[#allocation2] sm:$0xe] }
  0x7d   : > { %961 = vmatpush.bf16.msrb.mxu3 %v4229_v49  ;;  %1133 = vmatpush.bf16.msrb.mxu0 %v4237_v53  ;;  %v1029_v49 = vor.u32 %v1028_v39, %v1025_v38  ;;  %v4276_v53 = vld [vmem:[#allocation6 + $0x228] sm:$0xff]  ;;  %v4374_v54 = vor.u32 %v4373_v51, %v4372_v48  ;;  %v4265_v38 = vld [vmem:[#allocation6 + $0x1d0] sm:$0xff] }
  0x7e   : > { %1263 = vmatpush.bf16.msrb.mxu1 %v4245_v56  ;;  %598 = vmatmul.bf16.gmra.mxu0 %v507_v10 }
  0x7f   : > { %v1038_v56 = vsel %vm1021_vm10, %v1029_v49, %v1037_v50  ;;  %v728_v0 = vrot.slane %v4374_v54, 1 }
  0x80   : > { %798 = vmatpush.bf16.msrb.mxu2 %v4216_v61  ;;  %v893_v61 = vrot.slane %v4906_v12, 1  ;;  %v4258_v12 = vld [vmem:[#allocation6 + $0x198] sm:$0xff] }
  0x81   : > { %962 = vmatpush.bf16.msrb.mxu3 %v4228_v58  ;;  %1134 = vmatpush.bf16.msrb.mxu0 %v4236_v2  ;;  %v4919_v58 = vld [vmem:[#allocation2 + $0x14] sm:$0xff]  ;;  %v730_v7 = vsel %vm727_vm12, %v728_v0, %v729_v1 }
  0x82   : > { %1264 = vmatpush.bf16.msrb.mxu1 %v4244_v5  ;;  %v1040_v2 = vshrl.u32 %v4919_v58, 16  ;;  %v1043_v4 = vshll.u32 %v4919_v58, 16  ;;  %v1197_v5 = vrot.slane %v4919_v58, 2  ;;  %v894_v6 = vsel %vm727_vm12, %v892_v59, %v893_v61  ;;  %v4255_v59 = vld [vmem:[#allocation6 + $0x180] sm:$0xff] }
  0x83   : > { %v895_v18 = vrot.slane %v4919_v58, 1  ;;  %v4263_v0 = vld [vmem:[#allocation6 + $0x1c0] sm:$0xff] }
  0x84   : > { %799 = vmatpush.bf16.msrb.mxu2 %v4215_v11  ;;  %v1042_v8 = vrot.slane %v1040_v2, 1  ;;  %v1198_v10 = vsel %vm1193_vm7, %v1195_v35, %v1197_v5  ;;  %v4267_v11 = vld [vmem:[#allocation6 + $0x1e0] sm:$0xff]  ;;  %v4257_v35 = vld [vmem:[#allocation6 + $0x190] sm:$0xff] }
  0x85   : > { %963 = vmatpush.bf16.msrb.mxu3 %v4227_v9  ;;  %1135 = vmatpush.bf16.msrb.mxu0 %v4235_v16  ;;  %v1045_v9 = vrot.slane %v1043_v4, 2  ;;  %v896_v63 = vsel %vm727_vm12, %v893_v61, %v895_v18  ;;  %v4272_v61 = vld [vmem:[#allocation6 + $0x208] sm:$0xff]  ;;  %v4271_v2 = vld [vmem:[#allocation6 + $0x200] sm:$0xff] }
  0x86   : > { %1265 = vmatpush.bf16.msrb.mxu1 %v4243_v23  ;;  %v731_v23 = vrot.slane %v4858_v43, 1 }
  0x87   : > { %613 = vmatmul.bf16.gmra.mxu2 %v531_v36  ;;  %v1046_v20 = vor.u32 %v1045_v9, %v1042_v8  ;;  %v4274_v36 = vld [vmem:[#allocation6 + $0x218] sm:$0xff] }
  0x88   : > { %1422 = vmatpush.bf16.msra.mxu2 %v4262_v17  ;;  %700 = vmatmul.bf16.gmra.mxu3 %v4885_v19  ;;  %v4931_v17 = vld [vmem:[#allocation2 + $0x1c] sm:$0xff]  ;;  %v732_v29 = vsel %vm727_vm12, %v729_v1, %v731_v23 }
  0x89   : > { %1594 = vmatpush.bf16.msra.mxu3 %v4270_v15  ;;  %1724 = vmatpush.bf16.msra.mxu0 %v4278_v24  ;;  %v4266_v15 = vld [vmem:[#allocation6 + $0x1d8] sm:$0xff]  ;;  %v1047_v16 = vsel %vm1021_vm10, %v1037_v50, %v1046_v20  ;;  %v1049_v24 = vshrl.u32 %v4931_v17, 16  ;;  %v1052_v25 = vshll.u32 %v4931_v17, 16  ;;  %v1199_v27 = vrot.slane %v4931_v17, 2 }
  0x8b   : > { %1266 = vmatmul.bf16.vlgmr.msrb.gmra.mxu1 %v1196_v42  ;;  %v1051_v30 = vrot.slane %v1049_v24, 1  ;;  %v1200_v34 = vsel %vm1193_vm7, %v1197_v5, %v1199_v27  ;;  %v1302_v24 = vld [vmem:[#allocation2 + $0x8] sm:$0xc] }
  0x8c   : > { %1423 = vmatpush.bf16.msra.mxu2 %v4261_v32  ;;  %v412_v32 = vld [vmem:[#allocation2 + $0x2c] sm:$0x1] }
  0x8d   : > { %1595 = vmatpush.bf16.msra.mxu3 %v4269_v31  ;;  %1725 = vmatpush.bf16.msra.mxu0 %v4277_v46  ;;  %v1054_v31 = vrot.slane %v1052_v25, 2  ;;  %v413_v43 = vsel %vm4807_vm1, %v406_v28, %v412_v32  ;;  %v897_v46 = vrot.slane %v4931_v17, 1  ;;  %v1638_v25 = vld [vmem:[#allocation2 + $0x8] sm:$0x8]  ;;  %v1342_v28 = vunpack.c.h.b16 %v4896_v55  ;;  %v4251_v32 = vld [vmem:[#allocation2 + $0x10] sm:$0xff] }
  0x8e   : > { %1136 = vmatmul.bf16.vlgmr.msrb.gmra.mxu0 %v1038_v56  ;;  %414 = vst [vmem:[#allocation2 + $0x2c] sm:$0x1] %v413_v43 }
  0x8f   : > { %v1055_v39 = vor.u32 %v1054_v31, %v1051_v30  ;;  %v898_v51 = vsel %vm727_vm12, %v895_v18, %v897_v46  ;;  %v1657_v30 = vunpack.c.l.b16 %v1638_v25 }
  0x90   : > { %1424 = vmatpush.bf16.msra.mxu2 %v4260_v45  ;;  %v4226_v45 = vld [vmem:[#allocation2 + $0x24] sm:$0xff] }
  0x91   : > { %1596 = vmatpush.bf16.msra.mxu3 %v4268_v47  ;;  %1726 = vmatpush.bf16.msra.mxu0 %v4276_v53  ;;  %v1056_v42 = vsel %vm1021_vm10, %v1046_v20, %v1055_v39  ;;  %v733_v47 = vrot.slane %v4873_v62, 1  ;;  %v1058_v48 = vshrl.u32 %v4226_v45, 16  ;;  %v1061_v49 = vshll.u32 %v4226_v45, 16 }
  0x92   : > { %v1201_v50 = vrot.slane %v4226_v45, 2 }
  0x93   : > { %v1060_v53 = vrot.slane %v1058_v48, 1  ;;  %v1063_v54 = vrot.slane %v1061_v49, 2 }
  0x94   : > { %1425 = vmatpush.bf16.msra.mxu2 %v4259_v52  ;;  %v734_v52 = vsel %vm727_vm12, %v731_v23, %v733_v47  ;;  %v1202_v56 = vsel %vm1193_vm7, %v1199_v27, %v1201_v50 }
  0x95   : > { %1597 = vmatpush.bf16.msra.mxu3 %v4267_v11  ;;  %1727 = vmatpush.bf16.msra.mxu0 %v4275_v13  ;;  %v1000_v58 = vld [vmem:[#allocation2 + $0x2c] sm:$0x3]  ;;  %v1064_v1 = vor.u32 %v1063_v54, %v1060_v53 }
  0x96   : > { %v1019_v62 = vunpack.c.l.b16 %v1000_v58 }
  0x97   : > { %800 = vmatmul.bf16.vlgmr.msrb.gmra.mxu2 %v730_v7  ;;  %v1065_v4 = vsel %vm1021_vm10, %v1055_v39, %v1064_v1  ;;  %v735_v7 = vrot.slane %v4885_v19, 1  ;;  %v1497_v39 = vshrl.u32 %v4251_v32, 16 }
  0x98   : > { %964 = vmatmul.bf16.vlgmr.msrb.gmra.mxu3 %v894_v6  ;;  %1426 = vmatpush.bf16.msra.mxu2 %v4258_v12  ;;  %v1020_v5 = vpack.c.b16 %v1019_v62, %v1019_v62  ;;  %v899_v6 = vrot.slane %v4226_v45, 1  ;;  %v846_v12 = vld [vmem:[#allocation2 + $0x2c] sm:$0x1] }
  0x99   : > { %1598 = vmatpush.bf16.msra.mxu3 %v4266_v15  ;;  %1728 = vmatpush.bf16.msra.mxu0 %v4274_v36  ;;  %v736_v13 = vsel %vm727_vm12, %v733_v47, %v735_v7  ;;  %v885_v17 = vunpack.c.l.b16 %v846_v12 }
  0x9a   : > { %v1067_v8 = vshrl.u32 %v1020_v5, 16  ;;  %v1070_v9 = vshll.u32 %v1020_v5, 16  ;;  %v900_v11 = vsel %vm727_vm12, %v897_v46, %v899_v6 }
  0x9b   : > { %1271 = vmatmul.bf16.gmra.mxu1 %v1198_v10  ;;  %v1203_v10 = vrot.slane %v1020_v5, 2  ;;  %v891_v23 = vpack.c.b16 %v885_v17, %v885_v17 }
  0x9c   : > { %1427 = vmatpush.bf16.msra.mxu2 %v4257_v35  ;;  %v1069_v20 = vrot.slane %v1067_v8, 1  ;;  %v1072_v15 = vrot.slane %v1070_v9, 2  ;;  %v1658_v35 = vpack.c.b16 %v1342_v28, %v1657_v30 }
  0x9d   : > { %1599 = vmatpush.bf16.msra.mxu3 %v4265_v38  ;;  %1729 = vmatpush.bf16.msra.mxu0 %v4273_v40  ;;  %v901_v27 = vrot.slane %v891_v23, 1 }
  0x9e   : > { %1141 = vmatmul.bf16.gmra.mxu0 %v1047_v16  ;;  %v1204_v16 = vsel %vm1193_vm7, %v1201_v50, %v1203_v10  ;;  %v1073_v18 = vor.u32 %v1072_v15, %v1069_v20  ;;  %v1660_v40 = vrot.slane %v1658_v35, 3  ;;  %v1359_v50 = vrot.slane %v4251_v32, 2  ;;  %v4253_v10 = vld [vmem:[#allocation2 + $0x20] sm:$0xff] }
  0x9f   : > { %v902_v31 = vsel %vm727_vm12, %v899_v6, %v901_v27  ;;  %v1515_v20 = vshrl.u32 %v4253_v10, 16  ;;  %v1518_v15 = vshll.u32 %v4253_v10, 16  ;;  %v1665_v17 = vrot.slane %v4253_v10, 3 }
  0xa0   : > { %1428 = vmatpush.bf16.msra.mxu2 %v4256_v22  ;;  %v1074_v19 = vsel %vm1021_vm10, %v1064_v1, %v1073_v18  ;;  %v1500_v22 = vshll.u32 %v4251_v32, 16 }
  0xa1   : > { %1600 = vmatpush.bf16.msra.mxu3 %v4264_v41  ;;  %1730 = vmatpush.bf16.msra.mxu0 %v4272_v61  ;;  %v1661_v41 = vrot.slane %v4251_v32, 3  ;;  %v1517_v23 = vrot.slane %v1515_v20, 2  ;;  %v4254_v32 = vld [vmem:[#allocation2 + $0x28] sm:$0xff] }
  0xa2   : > { %v1502_v45 = vrot.slane %v1500_v22, 3  ;;  %v1524_v35 = vshrl.u32 %v4254_v32, 16 }
  0xa3   : > { %v1662_v46 = vsel %vm1659_vm14, %v1660_v40, %v1661_v41 }
  0xa4   : > { %1429 = vmatpush.bf16.msra.mxu2 %v4255_v59  ;;  %v1526_v40 = vrot.slane %v1524_v35, 2 }
  0xa5   : > { %1601 = vmatpush.bf16.msra.mxu3 %v4263_v0  ;;  %1731 = vmatpush.bf16.msra.mxu0 %v4271_v2 }
  0xa7   : > { %805 = vmatmul.bf16.gmra.mxu2 %v732_v29  ;;  %v737_v29 = vrot.slane %v4898_v57, 1  ;;  %v1499_v57 = vrot.slane %v1497_v39, 2  ;;  %v1667_v39 = vrot.slane %v4254_v32, 3 }
  0xa8   : > { %969 = vmatmul.bf16.gmra.mxu3 %v896_v63  ;;  %v1341_v63 = vunpack.c.l.b16 %v1302_v24  ;;  %v1520_v24 = vrot.slane %v1518_v15, 3 }
  0xa9   : > { %v738_v43 = vsel %vm727_vm12, %v735_v7, %v737_v29  ;;  %v1503_v48 = vor.u32 %v1502_v45, %v1499_v57  ;;  %v1363_v29 = vrot.slane %v4253_v10, 2  ;;  %v1668_v45 = vsel %vm1659_vm14, %v1665_v17, %v1667_v39 }
  0xab   : > { %1276 = vmatmul.bf16.gmra.mxu1 %v1200_v34  ;;  %v1352_v34 = vpack.c.b16 %v1342_v28, %v1341_v63  ;;  %v1521_v63 = vor.u32 %v1520_v24, %v1517_v23 }
  0xad   : > { %v1489_v36 = vshrl.u32 %v1352_v34, 16  ;;  %v1492_v38 = vshll.u32 %v1352_v34, 16  ;;  %v1358_v49 = vrot.slane %v1352_v34, 2 }
  0xae   : > { %1146 = vmatmul.bf16.gmra.mxu0 %v1056_v42 }
  0xaf   : > { %v1491_v55 = vrot.slane %v1489_v36, 2  ;;  %v1494_v42 = vrot.slane %v1492_v38, 3  ;;  %v1360_v53 = vsel %vm1193_vm7, %v1358_v49, %v1359_v50  ;;  %v1527_v36 = vshll.u32 %v4254_v32, 16 }
  0xb0   : > { %v1365_v49 = vrot.slane %v4254_v32, 2 }
  0xb1   : > { %v1495_v47 = vor.u32 %v1494_v42, %v1491_v55  ;;  %v1466_v42 = vld [vmem:[#allocation2 + $0x30] sm:$0x7] }
  0xb7   : > { %810 = vmatmul.bf16.gmra.mxu2 %v734_v52  ;;  %v4252_v52 = vld [vmem:[#allocation2 + $0x18] sm:$0xff] }
  0xb8   : > { %974 = vmatmul.bf16.gmra.mxu3 %v898_v51  ;;  %v1504_v51 = vsel %vm5451_vm0, %v1495_v47, %v1503_v48  ;;  %v1506_v54 = vshrl.u32 %v4252_v52, 16  ;;  %v1663_v59 = vrot.slane %v4252_v52, 3  ;;  %v1361_v7 = vrot.slane %v4252_v52, 2 }
  0xb9   : > { %v1485_v47 = vunpack.c.l.b16 %v1466_v42 }
  0xba   : > { %v1508_v0 = vrot.slane %v1506_v54, 2  ;;  %v1362_v12 = vsel %vm1193_vm7, %v1359_v50, %v1361_v7  ;;  %v1666_v27 = vsel %vm1659_vm14, %v1663_v59, %v1665_v17  ;;  %v1364_v34 = vsel %vm1193_vm7, %v1361_v7, %v1363_v29 }
  0xbb   : > { %1281 = vmatmul.bf16.gmra.mxu1 %v1202_v56  ;;  %v1509_v56 = vshll.u32 %v4252_v52, 16  ;;  %v1486_v52 = vpack.c.b16 %v1485_v47, %v1485_v47  ;;  %v1366_v54 = vsel %vm1193_vm7, %v1363_v29, %v1365_v49 }
  0xbd   : > { %v1511_v1 = vrot.slane %v1509_v56, 3 }
  0xbe   : > { %1151 = vmatmul.bf16.gmra.mxu0 %v1065_v4  ;;  %v1664_v4 = vsel %vm1659_vm14, %v1661_v41, %v1663_v59  ;;  %v1529_v41 = vrot.slane %v1527_v36, 3  ;;  %v1533_v59 = vshrl.u32 %v1486_v52, 16 }
  0xbf   : > { %v1512_v5 = vor.u32 %v1511_v1, %v1508_v0 }
  0xc0   : > { %v1535_v7 = vrot.slane %v1533_v59, 2  ;;  %v4296_v59 = vld [vmem:[#allocation6 + $0x2a8] sm:$0xff] }
  0xc1   : > { %v1513_v9 = vsel %vm5451_vm0, %v1503_v48, %v1512_v5 }
  0xc7   : > { %815 = vmatmul.bf16.gmra.mxu2 %v736_v13 }
  0xc8   : > { %979 = vmatmul.bf16.gmra.mxu3 %v900_v11 }
  0xcb   : > { %1286 = vmatmul.bf16.gmra.mxu1 %v1204_v16 }
  0xce   : > { %1156 = vmatmul.bf16.gmra.mxu0 %v1074_v19 }
  0xd7   : > { %820 = vmatmul.bf16.gmra.mxu2 %v738_v43 }
  0xd8   : > { %984 = vmatmul.bf16.gmra.mxu3 %v902_v31  ;;  %v1522_v31 = vsel %vm5451_vm0, %v1512_v5, %v1521_v63 }
  0xde   : > { %1732 = vmatmul.bf16.vlgmr.msra.gmra.mxu0 %v1662_v46  ;;  %v1530_v46 = vor.u32 %v1529_v41, %v1526_v40 }
  0xe7   : > { %1430 = vmatmul.bf16.vlgmr.msra.gmra.mxu2 %v1360_v53 }
  0xe8   : > { %1602 = vmatmul.bf16.vlgmr.msra.gmra.mxu3 %v1504_v51  ;;  %v1531_v51 = vsel %vm5451_vm0, %v1521_v63, %v1530_v46  ;;  %v681_v53 = vpop.f32.mrf.mxu1 }
  0xea   : > { %v604_v61 = vpop.f32.mrf.mxu2 }
  0xeb   : > { %v691_v58 = vpop.f32.mrf.mxu3  ;;  %v4965_v2 = vpop.f32.mrf.mxu0 }
  0xec   : > { %v4963_v62 = vadd.f32 %v691_v58, %v604_v61  ;;  %v1312_v58 = vld [vmem:[#allocation2 + $0x30] sm:$0x3]  ;;  %v1536_v61 = vshll.u32 %v1486_v52, 16  ;;  %v682_v5 = vadd.f32 %v681_v53, %v4965_v2 }
  0xed   : > { %v1351_v1 = vunpack.c.l.b16 %v1312_v58 }
  0xee   : > { %1737 = vmatmul.bf16.gmra.mxu0 %v1664_v4  ;;  %v1669_v4 = vrot.slane %v1486_v52, 3 }
  0xf0   : > { %v1670_v20 = vsel %vm1659_vm14, %v1667_v39, %v1669_v4 }
  0xf2   : > { %v606_v8 = vpop.f32.mrf.mxu2 }
  0xf3   : > { %v693_v6 = vpop.f32.mrf.mxu3  ;;  %v4972_v13 = vpop.f32.mrf.mxu0 }
  0xf4   : > { %v4969_v11 = vadd.f32 %v693_v6, %v606_v8  ;;  %v1538_v8 = vrot.slane %v1536_v61, 3  ;;  %v4290_v61 = vld [vmem:[#allocation6 + $0x278] sm:$0xff] }
  0xf5   : > { %2221 = vmatpush.bf16.msrb.mxu2 %v4290_v61 }
  0xf6   : > { %v1539_v17 = vor.u32 %v1538_v8, %v1535_v7  ;;  %v4288_v8 = vld [vmem:[#allocation6 + $0x268] sm:$0xff] }
  0xf7   : > { %1435 = vmatmul.bf16.gmra.mxu2 %v1362_v12  ;;  %v1357_v12 = vpack.c.b16 %v1351_v1, %v1351_v1  ;;  %v4289_v1 = vld [vmem:[#allocation6 + $0x270] sm:$0xff] }
  0xf8   : > { %1607 = vmatmul.bf16.gmra.mxu3 %v1513_v9  ;;  %v1540_v2 = vsel %vm5451_vm0, %v1530_v46, %v1539_v17  ;;  %v4297_v46 = vld [vmem:[#allocation6 + $0x2b0] sm:$0xff]  ;;  %vm5080_vm0 = vmor %vm262_vm3, %vm1812_vm2  ;;  %vm5476_vm3 = vsmask.f32 5376 }
  0xf9   : > { %v1367_v24 = vrot.slane %v1357_v12, 2  ;;  %2222 = vmatpush.bf16.msrb.mxu2 %v4289_v1  ;;  %v4287_v12 = vld [vmem:[#allocation6 + $0x260] sm:$0xff] }
  0xfa   : > { %v609_v18 = vpop.f32.mrf.mxu2  ;;  %v4303_v1 = vld [vmem:[#allocation6 + $0x2e0] sm:$0xff] }
  0xfb   : > { %v696_v16 = vpop.f32.mrf.mxu3  ;;  %v4976_v25 = vpop.f32.mrf.mxu0  ;;  %v1368_v63 = vsel %vm1193_vm7, %v1365_v49, %v1367_v24  ;;  %v4286_v24 = vld [vmem:[#allocation6 + $0x258] sm:$0xff] }
  0xfc   : > { %v4974_v19 = vadd.f32 %v696_v16, %v609_v18  ;;  %v5000_v16 = vpop.f32.mrf.mxu1 }
  0xfd   : > { %2223 = vmatpush.bf16.msrb.mxu2 %v4288_v8 }
  0xfe   : > { %1742 = vmatmul.bf16.gmra.mxu0 %v1666_v27 }
 0x101   : > { %2224 = vmatpush.bf16.msrb.mxu2 %v4287_v12 }
 0x102   : > { %v4981_v30 = vpop.f32.mrf.mxu2 }
 0x103   : > { %v4979_v28 = vpop.f32.mrf.mxu3  ;;  %v4985_v43 = vpop.f32.mrf.mxu0 }
 0x105   : > { %2225 = vmatpush.bf16.msrb.mxu2 %v4286_v24 }
 0x107   : > { %1440 = vmatmul.bf16.gmra.mxu2 %v1364_v34 }
 0x108   : > { %1612 = vmatmul.bf16.gmra.mxu3 %v1522_v31  ;;  %v686_v31 = vpop.f32.mrf.mxu1 }
 0x109   : > { %v687_v34 = vadd.f32 %v686_v31, %v4976_v25  ;;  %v4306_v31 = vld [vmem:[#allocation6 + $0x2f8] sm:$0xff] }
 0x10a   : > { %v614_v22 = vpop.f32.mrf.mxu2  ;;  %2340 = vmatpush.bf16.msrb.mxu3 %v4306_v31  ;;  %v4315_v31 = vld [vmem:[#allocation6 + $0x320] sm:$0xff] }
 0x10b   : > { %v701_v38 = vpop.f32.mrf.mxu3  ;;  %v1137_v57 = vpop.f32.mrf.mxu0 }
 0x10c   : > { %v4987_v55 = vadd.f32 %v701_v38, %v614_v22  ;;  %v4298_v22 = vld [vmem:[#allocation6 + $0x2b8] sm:$0xff] }
 0x10d   : > { %2134 = vmatpush.bf16.msra.mxu1 %v4298_v22 }
 0x10e   : > { %1747 = vmatmul.bf16.gmra.mxu0 %v1668_v45 }
 0x111   : > { %2135 = vmatpush.bf16.msra.mxu1 %v4297_v46  ;;  %v4295_v46 = vld [vmem:[#allocation6 + $0x2a0] sm:$0xff] }
 0x112   : > { %v4992_v50 = vpop.f32.mrf.mxu2 }
 0x113   : > { %v4990_v48 = vpop.f32.mrf.mxu3  ;;  %v4996_v56 = vpop.f32.mrf.mxu0 }
 0x115   : > { %2136 = vmatpush.bf16.msra.mxu1 %v4296_v59 }
 0x117   : > { %1445 = vmatmul.bf16.gmra.mxu2 %v1366_v54 }
 0x118   : > { %1617 = vmatmul.bf16.gmra.mxu3 %v1531_v51 }
 0x119   : > { %2137 = vmatpush.bf16.msra.mxu1 %v4295_v46 }
 0x11a   : > { %v801_v6 = vpop.f32.mrf.mxu2 }
 0x11b   : > { %v965_v0 = vpop.f32.mrf.mxu3  ;;  %v826_v9 = vadd.f32 %v801_v6, %v682_v5  ;;  %v1142_v10 = vpop.f32.mrf.mxu0 }
 0x11c   : > { %v5030_v5 = vpop.f32.mrf.mxu1 }
 0x11d   : > { %v990_v15 = vadd.f32 %v965_v0, %v826_v9 }
 0x11e   : > { %1752 = vmatmul.bf16.gmra.mxu0 %v1670_v20 }
 0x11f   : > { %v5002_v18 = vadd.f32 %v1137_v57, %v990_v15 }
 0x122   : > { %v5006_v27 = vpop.f32.mrf.mxu2 }
 0x123   : > { %v5004_v23 = vpop.f32.mrf.mxu3  ;;  %v5010_v29 = vpop.f32.mrf.mxu0 }
 0x124   : > { %v1267_v15 = vpop.f32.mrf.mxu1 }
 0x127   : > { %1450 = vmatmul.bf16.gmra.mxu2 %v1368_v63 }
 0x128   : > { %1622 = vmatmul.bf16.gmra.mxu3 %v1540_v2 }
 0x12a   : > { %v806_v35 = vpop.f32.mrf.mxu2 }
 0x12b   : > { %v970_v32 = vpop.f32.mrf.mxu3  ;;  %v828_v36 = vadd.f32 %v806_v35, %v687_v34  ;;  %v1147_v38 = vpop.f32.mrf.mxu0 }
 0x12c   : > { %v1269_v35 = vpop.f32.mrf.mxu1 }
 0x12d   : > { %v992_v39 = vadd.f32 %v970_v32, %v828_v36 }
 0x12f   : > { %v5013_v40 = vadd.f32 %v1142_v10, %v992_v39  ;;  %v4305_v39 = vld [vmem:[#allocation6 + $0x2f0] sm:$0xff] }
 0x130   : > { %2341 = vmatpush.bf16.msrb.mxu3 %v4305_v39 }
 0x132   : > { %v5017_v42 = vpop.f32.mrf.mxu2 }
 0x133   : > { %v5015_v41 = vpop.f32.mrf.mxu3  ;;  %v5019_v57 = vpop.f32.mrf.mxu0 }
 0x13a   : > { %v811_v47 = vpop.f32.mrf.mxu2 }
 0x13b   : > { %v975_v45 = vpop.f32.mrf.mxu3  ;;  %v830_v49 = vadd.f32 %v811_v47, %v4963_v62  ;;  %v1152_v25 = vpop.f32.mrf.mxu0  ;;  %v4283_v47 = vld [vmem:[#allocation6 + $0x240] sm:$0xff] }
 0x13d   : > { %v994_v51 = vadd.f32 %v975_v45, %v830_v49 }
 0x13f   : > { %v5022_v52 = vadd.f32 %v1147_v38, %v994_v51  ;;  %v4284_v38 = vld [vmem:[#allocation6 + $0x248] sm:$0xff]  ;;  %v684_v51 = vadd.f32 %v5000_v16, %v4972_v13  ;;  %v4302_v13 = vld [vmem:[#allocation6 + $0x2d8] sm:$0xff] }
 0x140   : > { %v4316_v16 = vld [vmem:[#allocation6 + $0x328] sm:$0xff] }
 0x141   : > { %v827_v59 = vadd.f32 %v5006_v27, %v684_v51 }
 0x142   : > { %v5026_v54 = vpop.f32.mrf.mxu2 }
 0x143   : > { %v5024_v53 = vpop.f32.mrf.mxu3  ;;  %v5028_v58 = vpop.f32.mrf.mxu0  ;;  %v991_v8 = vadd.f32 %v5004_v23, %v827_v59  ;;  %v4292_v59 = vld [vmem:[#allocation6 + $0x288] sm:$0xff] }
 0x145   : > { %v1163_v27 = vadd.f32 %v4996_v56, %v991_v8  ;;  %v689_v56 = vadd.f32 %v5030_v5, %v4985_v43 }
 0x147   : > { %v1293_v23 = vadd.f32 %v1269_v35, %v1163_v27  ;;  %v4299_v35 = vld [vmem:[#allocation6 + $0x2c0] sm:$0xff]  ;;  %v1804_v27 = vld [vmem:[#allocation2 + $0x4] sm:$0xe] }
 0x14a   : > { %v816_v4 = vpop.f32.mrf.mxu2 }
 0x14b   : > { %v980_v0 = vpop.f32.mrf.mxu3  ;;  %v832_v62 = vadd.f32 %v816_v4, %v4974_v19  ;;  %v1157_v6 = vpop.f32.mrf.mxu0  ;;  %v4285_v19 = vld [vmem:[#allocation6 + $0x250] sm:$0xff] }
 0x14c   : > { %2226 = vmatpush.bf16.msrb.mxu2 %v4285_v19  ;;  %v4317_v4 = vld [vmem:[#allocation6 + $0x330] sm:$0xff]  ;;  %v5054_v19 = vld [vmem:[#allocation8] ss:$0 sm:$0xff] }
 0x14d   : > { %v996_v7 = vadd.f32 %v980_v0, %v832_v62  ;;  %v4294_v0 = vld [vmem:[#allocation6 + $0x298] sm:$0xff]  ;;  %v1272_v62 = vpop.f32.mrf.mxu1 }
 0x14e   : > { %2138 = vmatpush.bf16.msra.mxu1 %v4294_v0 }
 0x14f   : > { %v5033_v9 = vadd.f32 %v1152_v25, %v996_v7  ;;  %v4304_v25 = vld [vmem:[#allocation6 + $0x2e8] sm:$0xff]  ;;  %v1292_v7 = vadd.f32 %v1267_v15, %v5002_v18 }
 0x150   : > { %2227 = vmatpush.bf16.msrb.mxu2 %v4284_v38  ;;  %2342 = vmatpush.bf16.msrb.mxu3 %v4304_v25  ;;  %v4314_v25 = vld [vmem:[#allocation6 + $0x318] sm:$0xff] }
 0x152   : > { %v5037_v20 = vpop.f32.mrf.mxu2 }
 0x153   : > { %v5035_v10 = vpop.f32.mrf.mxu3  ;;  %v5039_v17 = vpop.f32.mrf.mxu0 }
 0x154   : > { %2228 = vmatpush.bf16.msrb.mxu2 %v4283_v47  ;;  %2343 = vmatpush.bf16.msrb.mxu3 %v4303_v1  ;;  %v4300_v47 = vld [vmem:[#allocation6 + $0x2c8] sm:$0xff] }
 0x155   : > { %v1274_v15 = vpop.f32.mrf.mxu1 }
 0x158   : > { %2344 = vmatpush.bf16.msrb.mxu3 %v4302_v13  ;;  %v1294_v13 = vadd.f32 %v1272_v62, %v5013_v40 }
 0x15a   : > { %v821_v63 = vpop.f32.mrf.mxu2 }
 0x15b   : > { %v985_v2 = vpop.f32.mrf.mxu3  ;;  %v834_v32 = vadd.f32 %v821_v63, %v4987_v55  ;;  %v1733_v34 = vpop.f32.mrf.mxu0  ;;  %v4318_v55 = vld [vmem:[#allocation6 + $0x338] sm:$0xff]  ;;  %v4301_v63 = vld [vmem:[#allocation6 + $0x2d0] sm:$0xff] }
 0x15c   : > { %2504 = vmatpush.bf16.msrb.mxu0 %v4318_v55  ;;  %2345 = vmatpush.bf16.msrb.mxu3 %v4301_v63 }
 0x15d   : > { %v998_v36 = vadd.f32 %v985_v2, %v834_v32 }
 0x15f   : > { %v5042_v22 = vadd.f32 %v1157_v6, %v998_v36  ;;  %v4293_v36 = vld [vmem:[#allocation6 + $0x290] sm:$0xff] }
 0x160   : > { %2505 = vmatpush.bf16.msrb.mxu0 %v4317_v4  ;;  %2139 = vmatpush.bf16.msra.mxu1 %v4293_v36  ;;  %v4313_v4 = vld [vmem:[#allocation6 + $0x310] sm:$0xff] }
 0x161   : > { %2346 = vmatpush.bf16.msrb.mxu3 %v4300_v47 }
 0x162   : > { %v5046_v49 = vpop.f32.mrf.mxu2 }
 0x163   : > { %v5044_v45 = vpop.f32.mrf.mxu3  ;;  %v1735_v61 = vpop.f32.mrf.mxu0 }
 0x164   : > { %2506 = vmatpush.bf16.msrb.mxu0 %v4316_v16  ;;  %2140 = vmatpush.bf16.msra.mxu1 %v4292_v59 }
 0x165   : > { %2347 = vmatpush.bf16.msrb.mxu3 %v4299_v35  ;;  %v1834_v35 = vld [vmem:[#allocation2 + $0x8] sm:$0xc] }
 0x168   : > { %2507 = vmatpush.bf16.msrb.mxu0 %v4315_v31  ;;  %v4312_v31 = vld [vmem:[#allocation6 + $0x308] sm:$0xff] }
 0x16a   : > { %v1431_v12 = vpop.f32.mrf.mxu2 }
 0x16b   : > { %v1603_v6 = vpop.f32.mrf.mxu3  ;;  %v1456_v24 = vadd.f32 %v1431_v12, %v1292_v7  ;;  %v1738_v18 = vpop.f32.mrf.mxu0  ;;  %v4291_v12 = vld [vmem:[#allocation6 + $0x280] sm:$0xff] }
 0x16c   : > { %2508 = vmatpush.bf16.msrb.mxu0 %v4314_v25  ;;  %2141 = vmatpush.bf16.msra.mxu1 %v4291_v12 }
 0x16d   : > { %v1628_v2 = vadd.f32 %v1603_v6, %v1456_v24 }
 0x16f   : > { %v1758_v32 = vadd.f32 %v1733_v34, %v1628_v2  ;;  %v829_v34 = vadd.f32 %v5017_v42, %v689_v56 }
 0x170   : > { %2509 = vmatpush.bf16.msrb.mxu0 %v4313_v4 }
 0x171   : > { %v1772_v39 = vadd.f32 %v5054_v19, %v1758_v32  ;;  %v993_v43 = vadd.f32 %v5015_v41, %v829_v34  ;;  %v1277_v32 = vpop.f32.mrf.mxu1 }
 0x172   : > { %v1433_v46 = vpop.f32.mrf.mxu2 }
 0x173   : > { %v1605_v38 = vpop.f32.mrf.mxu3  ;;  %v1782_v55 = vmax.f32 %v1772_v39, 0.0  ;;  %v1457_v51 = vadd.f32 %v1433_v46, %v1293_v23  ;;  %v1740_v63 = vpop.f32.mrf.mxu0  ;;  %v1165_v41 = vadd.f32 %v5010_v29, %v993_v43  ;;  %v1807_v23 = vld [vmem:[#allocation2 + $0x8] sm:$0x3]  ;;  %v4311_v46 = vld [vmem:[#allocation6 + $0x300] sm:$0xff]  ;;  %v831_v43 = vadd.f32 %v5026_v54, %v4969_v11 }
 0x174   : > { %2510 = vmatpush.bf16.msrb.mxu0 %v4312_v31  ;;  %v1853_v31 = vld [vmem:[#allocation2 + $0xc] sm:$0x8]  ;;  %v1296_v54 = vadd.f32 %v1277_v32, %v5022_v52 }
 0x175   : > { %v1792_v0 = vpack.c.bf16 %v1782_v55, %v1782_v55  ;;  %v1629_v1 = vadd.f32 %v1605_v38, %v1457_v51  ;;  %v1295_v59 = vadd.f32 %v1274_v15, %v1165_v41 }
 0x177   : > { %v1794_v6 = vshrl.u32 %v1792_v0, 16  ;;  %v1797_v7 = vshll.u32 %v1792_v0, 16  ;;  %v1759_v8 = vadd.f32 %v1735_v61, %v1629_v1 }
 0x178   : > { %2511 = vmatpush.bf16.msrb.mxu0 %v4311_v46 }
 0x179   : > { %v1796_v16 = vrot.slane %v1794_v6, 6  ;;  %v1799_v42 = vrot.slane %v1797_v7, 7  ;;  %v1773_v24 = vadd.f32 %v5054_v19, %v1759_v8  ;;  %v1279_v12 = vpop.f32.mrf.mxu1 }
 0x17a   : > { %v1436_v2 = vpop.f32.mrf.mxu2 }
 0x17b   : > { %v1608_v5 = vpop.f32.mrf.mxu3  ;;  %v1800_v36 = vor.u32 %v1799_v42, %v1796_v16  ;;  %v1783_v61 = vmax.f32 %v1773_v24, 0.0  ;;  %v1458_v38 = vadd.f32 %v1436_v2, %v1294_v13  ;;  %v995_v2 = vadd.f32 %v5024_v53, %v831_v43 }
 0x17d   : > { %v1801_v39 = vrot.slane %v1800_v36, 4  ;;  %v1805_v40 = vsel %vm4785_vm11, %v1800_v36, %v1804_v27  ;;  %v1810_v62 = vpack.c.bf16 %v1783_v61, %v1783_v61  ;;  %v1630_v56 = vadd.f32 %v1608_v5, %v1458_v38  ;;  %v1743_v5 = vpop.f32.mrf.mxu0 }
 0x17e   : > { %1806 = vst [vmem:[#allocation2 + $0x4] sm:$0xe] %v1805_v40  ;;  %v1167_v52 = vadd.f32 %v5019_v57, %v995_v2 }
 0x17f   : > { %v1808_v47 = vsel %vm4792_vm13, %v1801_v39, %v1807_v23  ;;  %v1815_v25 = vshrl.u32 %v1810_v62, 16  ;;  %v1818_v55 = vshll.u32 %v1810_v62, 16  ;;  %v1760_v51 = vadd.f32 %v1738_v18, %v1630_v56  ;;  %v1837_v62 = vld [vmem:[#allocation2 + $0xc] sm:$0x7] }
 0x180   : > { %1809 = vst [vmem:[#allocation2 + $0x8] sm:$0x3] %v1808_v47  ;;  %v1297_v57 = vadd.f32 %v1279_v12, %v1167_v52 }
 0x181   : > { %v1817_v29 = vrot.slane %v1815_v25, 6  ;;  %v1820_v0 = vrot.slane %v1818_v55, 7  ;;  %v1774_v1 = vadd.f32 %v5054_v19, %v1760_v51  ;;  %v4326_v51 = vld [vmem:[#allocation6 + $0x378] sm:$0xff] }
 0x182   : > { %v1438_v4 = vpop.f32.mrf.mxu2  ;;  %2675 = vmatpush.bf16.msrb.mxu1 %v4326_v51 }
 0x183   : > { %v1610_v34 = vpop.f32.mrf.mxu3  ;;  %v1821_v6 = vor.u32 %v1820_v0, %v1817_v29  ;;  %v1784_v7 = vmax.f32 %v1774_v1, 0.0  ;;  %v1459_v8 = vadd.f32 %v1438_v4, %v1295_v59  ;;  %v699_v1 = vadd.f32 %v4979_v28, %v4981_v30  ;;  %v4376_v4 = vld [vmem:[#allocation2] sm:$0xe] }
 0x185   : > { %v1835_v18 = vsel %vm4820_vm9, %v1821_v6, %v1834_v35  ;;  %v1811_v13 = vpack.c.bf16 %v1784_v7, %v1784_v7  ;;  %v1631_v15 = vadd.f32 %v1610_v34, %v1459_v8  ;;  %v5073_v16 = vld [vmem:[#allocation2] sm:$0xff]   ;;  %v1822_v41 = vrot.slane %v1821_v6, 4  ;;  %v1745_v55 = vpop.f32.mrf.mxu0  ;;  %v1282_v34 = vpop.f32.mrf.mxu1 }
 0x186   : > { %1836 = vst [vmem:[#allocation2 + $0x8] sm:$0xc] %v1835_v18  ;;  %2229 = vmatmul.bf16.vlgmr.msrb.gmra.mxu2 %v5073_v16  ;;  %v2040_v8 = vshll.u32 %v5073_v16, 16  ;;  %v4375_v18 = vld [vmem:[#allocation2] sm:$0xf0] }
 0x187   : > { %v1824_v42 = vshrl.u32 %v1811_v13, 16  ;;  %v1827_v24 = vshll.u32 %v1811_v13, 16  ;;  %v1761_v27 = vadd.f32 %v1740_v63, %v1631_v15  ;;  %v833_v13 = vadd.f32 %v5037_v20, %v699_v1 }
 0x188   : > { %v4377_v28 = vor.u32 %v4376_v4, %v4375_v18  ;;  %v2042_v12 = vrot.slane %v2040_v8, 1  ;;  %v1873_v8 = vld [vmem:[#allocation2 + $0x14] sm:$0xf] }
 0x189   : > { %v1826_v36 = vrot.slane %v1824_v42, 6  ;;  %v1829_v61 = vrot.slane %v1827_v24, 7  ;;  %v1775_v38 = vadd.f32 %v5054_v19, %v1761_v27 }
 0x18a   : > { %v1441_v39 = vpop.f32.mrf.mxu2 }
 0x18b   : > { %v1613_v11 = vpop.f32.mrf.mxu3  ;;  %v1830_v40 = vor.u32 %v1829_v61, %v1826_v36  ;;  %v1854_v53 = vsel %vm4842_vm5, %v1829_v61, %v1853_v31  ;;  %v1785_v63 = vmax.f32 %v1775_v38, 0.0  ;;  %v1460_v56 = vadd.f32 %v1441_v39, %v1296_v54  ;;  %v2384_v54 = vld [vmem:[#allocation2 + $0x4] sm:$0xe] }
 0x18c   : > { %1855 = vst [vmem:[#allocation2 + $0xc] sm:$0x8] %v1854_v53  ;;  %v1298_v36 = vadd.f32 %v1282_v34, %v5033_v9  ;;  %v997_v61 = vadd.f32 %v5035_v10, %v833_v13  ;;  %v2038_v38 = vshrl.u32 %v5073_v16, 16  ;;  %v2276_v10 = vrot.slane %v4377_v28, 1 }
 0x18d   : > { %v1831_v32 = vsel %vm5080_vm0, %v1822_v41, %v1830_v40  ;;  %v1840_v46 = vpack.c.bf16 %v1785_v63, %v1785_v63  ;;  %v1632_v47 = vadd.f32 %v1613_v11, %v1460_v56  ;;  %v1841_v42 = vrot.slane %v1830_v40, 4  ;;  %v4325_v56 = vld [vmem:[#allocation6 + $0x370] sm:$0xff]  ;;  %v1748_v52 = vpop.f32.mrf.mxu0 }
 0x18e   : > { %v1838_v25 = vsel %vm4833_vm4, %v1831_v32, %v1837_v62  ;;  %2676 = vmatpush.bf16.msrb.mxu1 %v4325_v56  ;;  %v1169_v13 = vadd.f32 %v5028_v58, %v997_v61  ;;  %v704_v28 = vadd.f32 %v4990_v48, %v4992_v50  ;;  %v4332_v50 = vld [vmem:[#allocation6 + $0x3a8] sm:$0xff] }
 0x18f   : > { %1839 = vst [vmem:[#allocation2 + $0xc] sm:$0x7] %v1838_v25  ;;  %v1843_v59 = vshrl.u32 %v1840_v46, 16  ;;  %v1846_v29 = vshll.u32 %v1840_v46, 16  ;;  %v1762_v0 = vadd.f32 %v1743_v5, %v1632_v47  ;;  %v1856_v5 = vld [vmem:[#allocation2 + $0x10] sm:$0xf]  ;;  %v2423_v46 = vunpack.c.l.b16 %v2384_v54  ;;  %v1284_v25 = vpop.f32.mrf.mxu1 }
 0x190   : > { %v4334_v47 = vld [vmem:[#allocation6 + $0x3b8] sm:$0xff]  ;;  %v1299_v61 = vadd.f32 %v1284_v25, %v1169_v13 }
 0x191   : > { %v1845_v6 = vrot.slane %v1843_v59, 6  ;;  %v1848_v7 = vrot.slane %v1846_v29, 7  ;;  %v1776_v43 = vadd.f32 %v5054_v19, %v1762_v0  ;;  %v1876_v0 = vld [vmem:[#allocation2 + $0x18] sm:$0x1]  ;;  %2804 = vmatpush.bf16.msra.mxu2 %v4334_v47 }
 0x192   : > { %v1443_v15 = vpop.f32.mrf.mxu2 }
 0x193   : > { %v1615_v35 = vpop.f32.mrf.mxu3  ;;  %v1849_v24 = vor.u32 %v1848_v7, %v1845_v6  ;;  %v1786_v27 = vmax.f32 %v1776_v43, 0.0  ;;  %v1461_v2 = vadd.f32 %v1443_v15, %v1297_v57 }
 0x195   : > { %v1850_v30 = vsel %vm5080_vm0, %v1841_v42, %v1849_v24  ;;  %v1859_v31 = vpack.c.bf16 %v1786_v27, %v1786_v27  ;;  %v1633_v11 = vadd.f32 %v1615_v35, %v1461_v2  ;;  %v1860_v29 = vrot.slane %v1849_v24, 4  ;;  %v4333_v42 = vld [vmem:[#allocation6 + $0x3b0] sm:$0xff] }
 0x196   : > { %v1857_v20 = vsel %vm4813_vm8, %v1850_v30, %v1856_v5  ;;  %v5103_v41 = vld [vmem:[#allocation2 + $0x8] sm:$0xff]  ;;  %2805 = vmatpush.bf16.msra.mxu2 %v4333_v42 }
 0x197   : > { %v5105_v39 = vld [vmem:[#allocation2 + $0x8] sm:$0xff]   ;;  %1858 = vst [vmem:[#allocation2 + $0x10] sm:$0xf] %v1857_v20  ;;  %v1862_v40 = vshrl.u32 %v1859_v31, 16  ;;  %v1865_v62 = vshll.u32 %v1859_v31, 16  ;;  %v1763_v53 = vadd.f32 %v1745_v55, %v1633_v11  ;;  %2234 = vmatmul.bf16.gmra.mxu2 %v5103_v41  ;;  %v2277_v32 = vrot.slane %v5103_v41, 1 }
 0x198   : > { %v2424_v63 = vunpack.c.l.b16 %v5105_v39  ;;  %v2045_v16 = vshll.u32 %v5103_v41, 16  ;;  %v2043_v55 = vor.u32 %v2042_v12, %v2038_v38  ;;  %v835_v20 = vadd.f32 %v5046_v49, %v704_v28 }
 0x199   : > { %v1864_v51 = vrot.slane %v1862_v40, 6  ;;  %v1867_v34 = vrot.slane %v1865_v62, 7  ;;  %v1777_v59 = vadd.f32 %v5054_v19, %v1763_v53  ;;  %v2278_v57 = vsel %vm727_vm12, %v2276_v10, %v2277_v32  ;;  %v1891_v10 = vld [vmem:[#allocation2 + $0x18] sm:$0xe] }
 0x19a   : > { %v1446_v1 = vpop.f32.mrf.mxu2  ;;  %v5115_v35 = vrot.slane %v2045_v16, 1  ;;  %v2434_v4 = vpack.c.b16 %v2424_v63, %v2423_v46  ;;  %2348 = vmatmul.bf16.vlgmr.msrb.gmra.mxu3 %v2278_v57  ;;  %v1750_v16 = vpop.f32.mrf.mxu0  ;;  %2806 = vmatpush.bf16.msra.mxu2 %v4332_v50 }
 0x19b   : > { %v1618_v9 = vpop.f32.mrf.mxu3  ;;  %v1868_v6 = vor.u32 %v1867_v34, %v1864_v51  ;;  %v1870_v7 = vrot.slane %v1864_v51, 4  ;;  %v1787_v43 = vmax.f32 %v1777_v59, 0.0  ;;  %v1462_v18 = vadd.f32 %v1446_v1, %v1298_v36  ;;  %v1287_v51 = vpop.f32.mrf.mxu1  ;;  %v4331_v1 = vld [vmem:[#allocation6 + $0x3a0] sm:$0xff] }
 0x19c   : > { %v2048_v15 = vsel %vm487_vm6, %v2043_v55, %v5115_v35  ;;  %v2570_v12 = vshrl.u32 %v2434_v4, 16  ;;  %v2573_v31 = vshll.u32 %v2434_v4, 16  ;;  %v2440_v40 = vrot.slane %v2434_v4, 1 }
 0x19d   : > { %v1869_v24 = vsel %vm5080_vm0, %v1860_v29, %v1868_v6  ;;  %v1877_v5 = vsel %vm4807_vm1, %v1870_v7, %v1876_v0  ;;  %v1879_v27 = vpack.c.bf16 %v1787_v43, %v1787_v43  ;;  %v1634_v2 = vadd.f32 %v1618_v9, %v1462_v18  ;;  %2142 = vmatmul.bf16.vlgmr.msra.gmra.mxu1 %v2048_v15  ;;  %v1894_v0 = vld [vmem:[#allocation2 + $0x1c] sm:$0x3] }
 0x19e   : > { %v1874_v30 = vsel %vm4800_vm15, %v1869_v24, %v1873_v8  ;;  %1878 = vst [vmem:[#allocation2 + $0x18] sm:$0x1] %v1877_v5  ;;  %v5130_v58 = vld [vmem:[#allocation2 + $0xc] sm:$0xff]  ;;  %v2572_v49 = vrot.slane %v2570_v12, 1  ;;  %v2575_v47 = vrot.slane %v2573_v31, 2  ;;  %v999_v43 = vadd.f32 %v5044_v45, %v835_v20  ;;  %2807 = vmatpush.bf16.msra.mxu2 %v4331_v1 }
 0x19f   : > { %1875 = vst [vmem:[#allocation2 + $0x14] sm:$0xf] %v1874_v30  ;;  %v1881_v11 = vshrl.u32 %v1879_v27, 16  ;;  %v1884_v54 = vshll.u32 %v1879_v27, 16  ;;  %v1764_v36 = vadd.f32 %v1748_v52, %v1634_v2  ;;  %v2441_v48 = vrot.slane %v5130_v58, 1  ;;  %v4324_v2 = vld [vmem:[#allocation6 + $0x368] sm:$0xff] }
 0x1a0   : > { %v2578_v9 = vshrl.u32 %v5130_v58, 16  ;;  %v2581_v25 = vshll.u32 %v5130_v58, 16  ;;  %v2576_v13 = vor.u32 %v2575_v47, %v2572_v49  ;;  %v2049_v45 = vshrl.u32 %v5103_v41, 16  ;;  %v4330_v30 = vld [vmem:[#allocation6 + $0x398] sm:$0xff]  ;;  %2677 = vmatpush.bf16.msrb.mxu1 %v4324_v2 }
 0x1a1   : > { %v1883_v62 = vrot.slane %v1881_v11, 6  ;;  %v1886_v53 = vrot.slane %v1884_v54, 7  ;;  %v1778_v56 = vadd.f32 %v5054_v19, %v1764_v36  ;;  %v2442_v52 = vsel %vm727_vm12, %v2440_v40, %v2441_v48  ;;  %v3183_v36 = vld [vmem:[#allocation2 + $0x8] sm:$0x8] }
 0x1a2   : > { %v1448_v46 = vpop.f32.mrf.mxu2  ;;  %2512 = vmatmul.bf16.vlgmr.msrb.gmra.mxu0 %v2442_v52  ;;  %v2580_v29 = vrot.slane %v2578_v9, 1  ;;  %v2583_v57 = vrot.slane %v2581_v25, 2  ;;  %v1300_v21 = vadd.f32 %v1287_v51, %v5042_v22  ;;  %v2051_v50 = vor.u32 %v2049_v45, %v5115_v35  ;;  %v4323_v22 = vld [vmem:[#allocation6 + $0x360] sm:$0xff]  ;;  %2808 = vmatpush.bf16.msra.mxu2 %v4330_v30  ;;  %v1753_v52 = vpop.f32.mrf.mxu0  ;;  %v4321_v30 = vld [vmem:[#allocation6 + $0x350] sm:$0xff] }
 0x1a3   : > { %v1620_v38 = vpop.f32.mrf.mxu3  ;;  %v1887_v34 = vor.u32 %v1886_v53, %v1883_v62  ;;  %v1788_v59 = vmax.f32 %v1778_v56, 0.0  ;;  %v1463_v55 = vadd.f32 %v1448_v46, %v1299_v61  ;;  %v1919_v61 = vld [vmem:[#allocation2 + $0x1c] sm:$0xc]  ;;  %v2888_v53 = vunpack.c.h.b16 %v5105_v39  ;;  %v1289_v47 = vpop.f32.mrf.mxu1 }
 0x1a4   : > { %v5145_v15 = vor.u32 %v2583_v57, %v2580_v29  ;;  %v1171_v46 = vadd.f32 %v5039_v17, %v999_v43  ;;  %v3202_v35 = vunpack.c.l.b16 %v3183_v36  ;;  %2678 = vmatpush.bf16.msrb.mxu1 %v4323_v22  ;;  %v4322_v17 = vld [vmem:[#allocation6 + $0x358] sm:$0xff]  ;;  %v4328_v29 = vld [vmem:[#allocation6 + $0x388] sm:$0xff] }
 0x1a5   : > { %v1888_v4 = vrot.slane %v1887_v34, 4  ;;  %v1892_v6 = vsel %vm4785_vm11, %v1887_v34, %v1891_v10  ;;  %v1897_v7 = vpack.c.bf16 %v1788_v59, %v1788_v59  ;;  %v1635_v8 = vadd.f32 %v1620_v38, %v1463_v55  ;;  %v4345_v55 = vld [vmem:[#allocation6 + $0x3f0] sm:$0xff]  ;;  %vm5477_vm11 = vmmov %vm5476_vm3 }
 0x1a6   : > { %1893 = vst [vmem:[#allocation2 + $0x18] sm:$0xe] %v1892_v6  ;;  %v5143_v18 = vld [vmem:[#allocation2 + $0x10] sm:$0xff]  ;;  %v5155_v12 = vsel %vm1021_vm10, %v2576_v13, %v5145_v15  ;;  %v1301_v6 = vadd.f32 %v1289_v47, %v1171_v46 }
 0x1a7   : > { %v1895_v42 = vsel %vm4792_vm13, %v1888_v4, %v1894_v0  ;;  %v1900_v24 = vshrl.u32 %v1897_v7, 16  ;;  %v1903_v5 = vshll.u32 %v1897_v7, 16  ;;  %v1765_v27 = vadd.f32 %v1750_v16, %v1635_v8  ;;  %2239 = vmatmul.bf16.gmra.mxu2 %v5143_v18  ;;  %v4346_v16 = vld [vmem:[#allocation6 + $0x3f8] sm:$0xff]  ;;  %v1938_v7 = vld [vmem:[#allocation2 + $0x20] sm:$0x8]  ;;  %vm5478_vm13 = vmmov %vm5476_vm3 }
 0x1a8   : > { %1896 = vst [vmem:[#allocation2 + $0x1c] sm:$0x3] %v1895_v42  ;;  %v2279_v14 = vrot.slane %v5143_v18, 1  ;;  %v2053_v28 = vshll.u32 %v5143_v18, 16  ;;  %v5171_v49 = vld [vmem:[#allocation2 + $0x10] sm:$0xff]  ;;  %2968 = vmatpush.bf16.msra.mxu3 %v4346_v16  ;;  %v3203_v0 = vpack.c.b16 %v2888_v53, %v3202_v35  ;;  %2679 = vmatpush.bf16.msrb.mxu1 %v4322_v17  ;;  %v4320_v17 = vld [vmem:[#allocation6 + $0x348] sm:$0xff] }
 0x1a9   : > { %v1902_v31 = vrot.slane %v1900_v24, 6  ;;  %v1905_v11 = vrot.slane %v1903_v5, 7  ;;  %v1779_v54 = vadd.f32 %v5054_v19, %v1765_v27  ;;  %v3205_v13 = vrot.slane %v5171_v49, 3  ;;  %v1922_v5 = vld [vmem:[#allocation2 + $0x20] sm:$0x7] }
 0x1aa   : > { %v1451_v20 = vpop.f32.mrf.mxu2  ;;  %v2280_v40 = vsel %vm727_vm12, %v2277_v32, %v2279_v14  ;;  %v5165_v62 = vrot.slane %v2053_v28, 1  ;;  %v4329_v32 = vld [vmem:[#allocation6 + $0x390] sm:$0xff] }
 0x1ab   : > { %v1623_v38 = vpop.f32.mrf.mxu3  ;;  %v1906_v56 = vor.u32 %v1905_v11, %v1902_v31  ;;  %v1789_v9 = vmax.f32 %v1779_v54, 0.0  ;;  %v1464_v10 = vadd.f32 %v1451_v20, %v1300_v21  ;;  %2353 = vmatmul.bf16.gmra.mxu3 %v2280_v40  ;;  %2809 = vmatpush.bf16.msra.mxu2 %v4329_v32  ;;  %v3204_v11 = vrot.slane %v3203_v0, 3  ;;  %v4354_v40 = vld [vmem:[#allocation6 + $0x438] sm:$0xff] }
 0x1ac   : > { %v2056_v41 = vsel %vm487_vm6, %v2051_v50, %v5165_v62  ;;  %2969 = vmatpush.bf16.msra.mxu3 %v4345_v55  ;;  %v4327_v50 = vld [vmem:[#allocation6 + $0x380] sm:$0xff]  ;;  %3139 = vmatpush.bf16.msra.mxu0 %v4354_v40  ;;  %v4353_v55 = vld [vmem:[#allocation6 + $0x430] sm:$0xff] }
 0x1ad   : > { %v1920_v25 = vsel %vm4820_vm9, %v1906_v56, %v1919_v61  ;;  %v1898_v51 = vpack.c.bf16 %v1789_v9, %v1789_v9  ;;  %v1636_v34 = vadd.f32 %v1623_v38, %v1464_v10  ;;  %2147 = vmatmul.bf16.gmra.mxu1 %v2056_v41  ;;  %v5175_v59 = vld [vmem:[#allocation2 + $0x14] sm:$0xff]  ;;  %v1907_v45 = vrot.slane %v1906_v56, 4  ;;  %v4344_v38 = vld [vmem:[#allocation6 + $0x3e8] sm:$0xff] }
 0x1ae   : > { %1921 = vst [vmem:[#allocation2 + $0x1c] sm:$0xc] %v1920_v25  ;;  %v2443_v44 = vrot.slane %v5175_v59, 1  ;;  %v2587_v8 = vshrl.u32 %v5175_v59, 16  ;;  %v2590_v43 = vshll.u32 %v5175_v59, 16  ;;  %v5196_v56 = vsel %vm1659_vm14, %v3204_v11, %v3205_v13  ;;  %2680 = vmatpush.bf16.msrb.mxu1 %v4321_v30 }
 0x1af   : > { %v1909_v1 = vshrl.u32 %v1898_v51, 16  ;;  %v1912_v57 = vshll.u32 %v1898_v51, 16  ;;  %v1766_v4 = vadd.f32 %v1753_v52, %v1636_v34  ;;  %2810 = vmatpush.bf16.msra.mxu2 %v4328_v29  ;;  %v1755_v52 = vpop.f32.mrf.mxu0  ;;  %v2057_v51 = vshrl.u32 %v5143_v18, 16  ;;  %v4343_v34 = vld [vmem:[#allocation6 + $0x3e0] sm:$0xff] }
 0x1b0   : > { %v2444_v2 = vsel %vm727_vm12, %v2441_v48, %v2443_v44  ;;  %v2589_v21 = vrot.slane %v2587_v8, 1  ;;  %v2592_v31 = vrot.slane %v2590_v43, 2  ;;  %2970 = vmatpush.bf16.msra.mxu3 %v4344_v38  ;;  %3140 = vmatpush.bf16.msra.mxu0 %v4353_v55  ;;  %v1941_v8 = vld [vmem:[#allocation2 + $0x24] sm:$0xf]  ;;  %v4339_v55 = vld [vmem:[#allocation6 + $0x3c0] sm:$0xff] }
 0x1b1   : > { %v1911_v42 = vrot.slane %v1909_v1, 6  ;;  %v1914_v24 = vrot.slane %v1912_v57, 7  ;;  %v1780_v27 = vadd.f32 %v5054_v19, %v1766_v4  ;;  %v2059_v57 = vor.u32 %v2057_v51, %v5165_v62 }
 0x1b2   : > { %v1453_v28 = vpop.f32.mrf.mxu2  ;;  %2517 = vmatmul.bf16.gmra.mxu0 %v2444_v2  ;;  %v5191_v22 = vor.u32 %v2592_v31, %v2589_v21  ;;  %2681 = vmatpush.bf16.msrb.mxu1 %v4320_v17  ;;  %v4341_v2 = vld [vmem:[#allocation6 + $0x3d0] sm:$0xff] }
 0x1b3   : > { %v1915_v54 = vor.u32 %v1914_v24, %v1911_v42  ;;  %v1939_v36 = vsel %vm4842_vm5, %v1914_v24, %v1938_v7  ;;  %v1790_v61 = vmax.f32 %v1780_v27, 0.0  ;;  %v1465_v20 = vadd.f32 %v1453_v28, %v1301_v6  ;;  %v1625_v48 = vpop.f32.mrf.mxu3  ;;  %2811 = vmatpush.bf16.msra.mxu2 %v4327_v50  ;;  %v4342_v42 = vld [vmem:[#allocation6 + $0x3d8] sm:$0xff]  ;;  %v4349_v17 = vld [vmem:[#allocation6 + $0x410] sm:$0xff] }
 0x1b4   : > { %1940 = vst [vmem:[#allocation2 + $0x20] sm:$0x8] %v1939_v36  ;;  %v5207_v41 = vsel %vm1021_vm10, %v5145_v15, %v5191_v22  ;;  %2971 = vmatpush.bf16.msra.mxu3 %v4343_v34 }
 0x1b5   : > { %v1916_v9 = vsel %vm5080_vm0, %v1907_v45, %v1915_v54  ;;  %v1925_v3 = vpack.c.bf16 %v1790_v61, %v1790_v61  ;;  %v1637_v10 = vadd.f32 %v1625_v48, %v1465_v20  ;;  %v5200_v16 = vld [vmem:[#allocation2 + $0x18] sm:$0xff]  ;;  %v1926_v6 = vrot.slane %v1915_v54, 4  ;;  %v1958_v61 = vld [vmem:[#allocation2 + $0x28] sm:$0xf]  ;;  %v1961_v20 = vld [vmem:[#allocation2 + $0x2c] sm:$0x1] }
 0x1b6   : > { %v1923_v46 = vsel %vm4833_vm4, %v1916_v9, %v1922_v5  ;;  %v2281_v25 = vrot.slane %v5200_v16, 1  ;;  %v2061_v60 = vshll.u32 %v5200_v16, 16  ;;  %v5224_v18 = vld [vmem:[#allocation2 + $0x18] sm:$0xff]  ;;  %v2065_v26 = vshrl.u32 %v5200_v16, 16 }
 0x1b7   : > { %1924 = vst [vmem:[#allocation2 + $0x20] sm:$0x7] %v1923_v46  ;;  %v1928_v32 = vshrl.u32 %v1925_v3, 16  ;;  %v1931_v35 = vshll.u32 %v1925_v3, 16  ;;  %v1767_v47 = vadd.f32 %v1755_v52, %v1637_v10  ;;  %2244 = vmatmul.bf16.gmra.mxu2 %v5200_v16  ;;  %v4351_v45 = vld [vmem:[#allocation6 + $0x420] sm:$0xff]  ;;  %v3207_v11 = vrot.slane %v5224_v18, 3 }
 0x1b8   : > { %v2282_v1 = vsel %vm727_vm12, %v2279_v14, %v2281_v25  ;;  %v5220_v4 = vrot.slane %v2061_v60, 1  ;;  %2972 = vmatpush.bf16.msra.mxu3 %v4342_v42  ;;  %v4319_v3 = vld [vmem:[#allocation6 + $0x340] sm:$0xff]  ;;  %v4340_v10 = vld [vmem:[#allocation6 + $0x3c8] sm:$0xff]  ;;  %v4350_v46 = vld [vmem:[#allocation6 + $0x418] sm:$0xff] }
 0x1b9   : > { %v1930_v29 = vrot.slane %v1928_v32, 6  ;;  %v1933_v0 = vrot.slane %v1931_v35, 7  ;;  %v1781_v15 = vadd.f32 %v5054_v19, %v1767_v47  ;;  %v4352_v19 = vld [vmem:[#allocation6 + $0x428] sm:$0xff]  ;;  %v5244_v32 = vsel %vm1659_vm14, %v3205_v13, %v3207_v11  ;;  %2682 = vmatpush.bf16.msrb.mxu1 %v4319_v3 }
 0x1ba   : > { %v2064_v24 = vsel %vm487_vm6, %v2059_v57, %v5220_v4  ;;  %3141 = vmatpush.bf16.msra.mxu0 %v4352_v19  ;;  %v4348_v57 = vld [vmem:[#allocation6 + $0x408] sm:$0xff] }
 0x1bb   : > { %v1934_v7 = vor.u32 %v1933_v0, %v1930_v29  ;;  %v1791_v43 = vmax.f32 %v1781_v15, 0.0  ;;  %2358 = vmatmul.bf16.gmra.mxu3 %v2282_v1  ;;  %v2067_v15 = vor.u32 %v2065_v26, %v5220_v4  ;;  %v3012_v1 = vld [vmem:[#allocation2 + $0x30] sm:$0x7]  ;;  %v4347_v4 = vld [vmem:[#allocation6 + $0x400] sm:$0xff] }
 0x1bc   : > { %2973 = vmatpush.bf16.msra.mxu3 %v4341_v2  ;;  %v3031_v42 = vunpack.c.l.b16 %v3012_v1 }
 0x1bd   : > { %v1935_v14 = vsel %vm5080_vm0, %v1926_v6, %v1934_v7  ;;  %v1944_v62 = vpack.c.bf16 %v1791_v43, %v1791_v43  ;;  %2152 = vmatmul.bf16.gmra.mxu1 %v2064_v24  ;;  %v1945_v50 = vrot.slane %v1934_v7, 4  ;;  %v4362_v43 = vld [vmem:[#allocation6 + $0x478] sm:$0xff] }
 0x1be   : > { %v1942_v5 = vsel %vm4813_vm8, %v1935_v14, %v1941_v8  ;;  %v5230_v27 = vld [vmem:[#allocation2 + $0x1c] sm:$0xff]  ;;  %3142 = vmatpush.bf16.msra.mxu0 %v4351_v45  ;;  %v2719_v8 = vld [vmem:[#allocation2 + $0x4] sm:$0xc]  ;;  %3268 = vmatpush.bf16.msra.mxu1 %v4362_v43 }
 0x1bf   : > { %1943 = vst [vmem:[#allocation2 + $0x24] sm:$0xf] %v1942_v5  ;;  %v1947_v28 = vshrl.u32 %v1944_v62, 16  ;;  %v1950_v30 = vshll.u32 %v1944_v62, 16  ;;  %v2445_v21 = vrot.slane %v5230_v27, 1  ;;  %v2596_v31 = vshrl.u32 %v5230_v27, 16 }
 0x1c0   : > { %v2599_v37 = vshll.u32 %v5230_v27, 16  ;;  %2974 = vmatpush.bf16.msra.mxu3 %v4340_v10  ;;  %v2738_v19 = vunpack.c.l.b16 %v2719_v8 }
 0x1c1   : > { %v1949_v54 = vrot.slane %v1947_v28, 6  ;;  %v1952_v36 = vrot.slane %v1950_v30, 7  ;;  %v2446_v38 = vsel %vm727_vm12, %v2443_v44, %v2445_v21  ;;  %v2598_v40 = vrot.slane %v2596_v31, 1 }
 0x1c2   : > { %2522 = vmatmul.bf16.gmra.mxu0 %v2446_v38  ;;  %v2601_v52 = vrot.slane %v2599_v37, 2  ;;  %v2739_v5 = vpack.c.b16 %v2424_v63, %v2738_v19  ;;  %v5283_v28 = vpack.c.b16 %v3031_v42, %v3031_v42 }
 0x1c3   : > { %v1953_v48 = vor.u32 %v1952_v36, %v1949_v54  ;;  %v1955_v9 = vrot.slane %v1949_v54, 4  ;;  %3143 = vmatpush.bf16.msra.mxu0 %v4350_v46  ;;  %v4361_v36 = vld [vmem:[#allocation6 + $0x470] sm:$0xff] }
 0x1c4   : > { %v5250_v47 = vor.u32 %v2601_v52, %v2598_v40  ;;  %2975 = vmatpush.bf16.msra.mxu3 %v4339_v55  ;;  %3269 = vmatpush.bf16.msra.mxu1 %v4361_v36  ;;  %v3213_v38 = vrot.slane %v5283_v28, 3  ;;  %v2848_v55 = vld [vmem:[#allocation2 + $0x8] sm:$0xc] }
 0x1c5   : > { %v1954_v35 = vsel %vm5080_vm0, %v1945_v50, %v1953_v48  ;;  %v1962_v44 = vsel %vm4807_vm1, %v1955_v9, %v1961_v20  ;;  %v2740_v20 = vrot.slane %v2739_v5, 2  ;;  %v3051_v5 = vshrl.u32 %v5224_v18, 16  ;;  %vm5480_vm1 = vmmov %vm5476_vm3 }
 0x1c6   : > { %v1959_v51 = vsel %vm4800_vm15, %v1954_v35, %v1958_v61  ;;  %1963 = vst [vmem:[#allocation2 + $0x2c] sm:$0x1] %v1962_v44  ;;  %v5254_v60 = vld [vmem:[#allocation2 + $0x20] sm:$0xff]  ;;  %v5261_v23 = vsel %vm1021_vm10, %v5191_v22, %v5250_v47  ;;  %vm5479_vm15 = vmmov %vm5476_vm3 }
 0x1c7   : > { %v5256_v34 = vld [vmem:[#allocation2 + $0x20] sm:$0xff]  ;;  %1960 = vst [vmem:[#allocation2 + $0x28] sm:$0xf] %v1959_v51  ;;  %2249 = vmatmul.bf16.gmra.mxu2 %v5254_v60  ;;  %v2283_v33 = vrot.slane %v5254_v60, 1  ;;  %v2069_v13 = vshll.u32 %v5254_v60, 16  ;;  %3144 = vmatpush.bf16.msra.mxu0 %v4349_v17  ;;  %v2887_v17 = vunpack.c.l.b16 %v2848_v55 }
 0x1c8   : > { %v3209_v29 = vrot.slane %v5256_v34, 3 }
 0x1c9   : > { %v2284_v0 = vsel %vm727_vm12, %v2281_v25, %v2283_v33  ;;  %v2071_v22 = vrot.slane %v2069_v13, 1 }
 0x1ca   : > { %v5273_v6 = vsel %vm1659_vm14, %v3207_v11, %v3209_v29  ;;  %v2741_v11 = vrot.slane %v5130_v58, 2  ;;  %v2073_v58 = vshrl.u32 %v5254_v60, 16  ;;  %v4360_v60 = vld [vmem:[#allocation6 + $0x468] sm:$0xff] }
 0x1cb   : > { %2363 = vmatmul.bf16.gmra.mxu3 %v2284_v0  ;;  %v2072_v7 = vsel %vm487_vm6, %v2067_v15, %v2071_v22  ;;  %3145 = vmatpush.bf16.msra.mxu0 %v4348_v57  ;;  %v2898_v0 = vpack.c.b16 %v2888_v53, %v2887_v17  ;;  %v3042_v15 = vshrl.u32 %v5171_v49, 16 }
 0x1cc   : > { %v2075_v44 = vor.u32 %v2073_v58, %v2071_v22  ;;  %3270 = vmatpush.bf16.msra.mxu1 %v4360_v60  ;;  %v3045_v22 = vshll.u32 %v5171_v49, 16 }
 0x1cd   : > { %2157 = vmatmul.bf16.gmra.mxu1 %v2072_v7  ;;  %v2394_v54 = vld [vmem:[#allocation2 + $0x2c] sm:$0x1]  ;;  %v2904_v57 = vrot.slane %v2898_v0, 2  ;;  %v3034_v7 = vshrl.u32 %v2898_v0, 16  ;;  %v3037_v8 = vshll.u32 %v2898_v0, 16  ;;  %v3044_v42 = vrot.slane %v3042_v15, 2 }
 0x1ce   : > { %v5276_v16 = vld [vmem:[#allocation2 + $0x24] sm:$0xff]  ;;  %v2433_v50 = vunpack.c.l.b16 %v2394_v54 }
 0x1cf   : > { %v1991_v25 = vld [vmem:[#allocation2 + $0x28] sm:$0x1]  ;;  %v2447_v14 = vrot.slane %v5276_v16, 1  ;;  %v2605_v62 = vshrl.u32 %v5276_v16, 16  ;;  %v2608_v45 = vshll.u32 %v5276_v16, 16  ;;  %3146 = vmatpush.bf16.msra.mxu0 %v4347_v4  ;;  %v3036_v39 = vrot.slane %v3034_v7, 2 }
 0x1d0   : > { %v2030_v24 = vunpack.c.l.b16 %v1991_v25  ;;  %v5289_v37 = vld [vmem:[#allocation2 + $0x28] sm:$0xff]  ;;  %v2439_v51 = vpack.c.b16 %v2433_v50, %v2433_v50  ;;  %v3047_v25 = vrot.slane %v3045_v22, 3  ;;  %v3039_v53 = vrot.slane %v3037_v8, 3 }
 0x1d1   : > { %v2448_v30 = vsel %vm727_vm12, %v2445_v21, %v2447_v14  ;;  %v2607_v31 = vrot.slane %v2605_v62, 1  ;;  %v2610_v63 = vrot.slane %v2608_v45, 2  ;;  %v2742_v21 = vsel %vm1193_vm7, %v2740_v20, %v2741_v11 }
 0x1d2   : > { %v2036_v2 = vpack.c.b16 %v2030_v24, %v2030_v24  ;;  %2527 = vmatmul.bf16.gmra.mxu0 %v2448_v30  ;;  %v3211_v9 = vrot.slane %v5289_v37, 3  ;;  %v2449_v13 = vrot.slane %v2439_v51, 1  ;;  %v3048_v4 = vor.u32 %v3047_v25, %v3044_v42 }
 0x1d3   : > { %v5292_v48 = vor.u32 %v2610_v63, %v2607_v31  ;;  %v3040_v19 = vor.u32 %v3039_v53, %v3036_v39  ;;  %v2745_v24 = vrot.slane %v5230_v27, 2  ;;  %v2907_v62 = vrot.slane %v5224_v18, 2  ;;  %v4357_v27 = vld [vmem:[#allocation6 + $0x450] sm:$0xff] }
 0x1d4   : > { %v2077_v61 = vshll.u32 %v2036_v2, 16  ;;  %v2285_v40 = vrot.slane %v2036_v2, 1  ;;  %v5303_v46 = vsel %vm1659_vm14, %v3209_v29, %v3211_v9  ;;  %v5306_v52 = vsel %vm1659_vm14, %v3211_v9, %v3213_v38  ;;  %v2548_v38 = vld [vmem:[#allocation2 + $0x2c] sm:$0x3] }
 0x1d5   : > { %v5300_v10 = vsel %vm1021_vm10, %v5250_v47, %v5292_v48  ;;  %v2450_v47 = vsel %vm727_vm12, %v2447_v14, %v2449_v13  ;;  %v2743_v29 = vrot.slane %v5175_v59, 2  ;;  %v4359_v59 = vld [vmem:[#allocation6 + $0x460] sm:$0xff]  ;;  %v4358_v14 = vld [vmem:[#allocation6 + $0x458] sm:$0xff]  ;;  %v3054_v2 = vshll.u32 %v5224_v18, 16 }
 0x1d6   : > { %v2079_v3 = vrot.slane %v2077_v61, 1  ;;  %v2286_v35 = vsel %vm727_vm12, %v2283_v33, %v2285_v40  ;;  %v2905_v33 = vrot.slane %v5171_v49, 2  ;;  %3271 = vmatpush.bf16.msra.mxu1 %v4359_v59  ;;  %v3049_v49 = vsel %vm5476_vm3, %v3040_v19, %v3048_v4  ;;  %v4356_v40 = vld [vmem:[#allocation6 + $0x448] sm:$0xff] }
 0x1d7   : > { %2812 = vmatmul.bf16.vlgmr.msra.gmra.mxu2 %v2742_v21  ;;  %v2744_v1 = vsel %vm1193_vm7, %v2741_v11, %v2743_v29  ;;  %v2746_v45 = vsel %vm1193_vm7, %v2743_v29, %v2745_v24  ;;  %v3053_v30 = vrot.slane %v3051_v5, 2  ;;  %v3056_v31 = vrot.slane %v3054_v2, 3 }
 0x1d8   : > { %v2080_v26 = vsel %vm487_vm6, %v2075_v44, %v2079_v3  ;;  %v2906_v43 = vsel %vm1193_vm7, %v2904_v57, %v2905_v33  ;;  %v2747_v36 = vrot.slane %v5276_v16, 2  ;;  %v2909_v18 = vrot.slane %v5256_v34, 2  ;;  %v4355_v44 = vld [vmem:[#allocation6 + $0x440] sm:$0xff] }
 0x1d9   : > { %v3057_v11 = vor.u32 %v3056_v31, %v3053_v30  ;;  %v3060_v61 = vshrl.u32 %v5256_v34, 16  ;;  %v3063_v63 = vshll.u32 %v5256_v34, 16  ;;  %v2567_v58 = vunpack.c.l.b16 %v2548_v38 }
 0x1da   : > { %3272 = vmatpush.bf16.msra.mxu1 %v4358_v14  ;;  %v2748_v20 = vsel %vm1193_vm7, %v2745_v24, %v2747_v36  ;;  %v2910_v50 = vsel %vm1193_vm7, %v2907_v62, %v2909_v18  ;;  %v3069_v60 = vshrl.u32 %v5289_v37, 16  ;;  %v3072_v13 = vshll.u32 %v5289_v37, 16 }
 0x1db   : > { %2368 = vmatmul.bf16.gmra.mxu3 %v2286_v35  ;;  %v3058_v54 = vsel %vm5477_vm11, %v3048_v4, %v3057_v11  ;;  %v3062_v21 = vrot.slane %v3060_v61, 2  ;;  %v3065_v9 = vrot.slane %v3063_v63, 3  ;;  %v2568_v3 = vpack.c.b16 %v2567_v58, %v2567_v58 }
 0x1dc   : > { %v3071_v17 = vrot.slane %v3069_v60, 2  ;;  %v3074_v29 = vrot.slane %v3072_v13, 3  ;;  %v3078_v14 = vshrl.u32 %v5283_v28, 16 }
 0x1dd   : > { %2162 = vmatmul.bf16.gmra.mxu1 %v2080_v26  ;;  %v3066_v16 = vor.u32 %v3065_v9, %v3062_v21  ;;  %v2749_v34 = vrot.slane %v2568_v3, 2  ;;  %v2911_v26 = vrot.slane %v5289_v37, 2  ;;  %v2614_v37 = vshrl.u32 %v2568_v3, 16 }
 0x1de   : > { %3273 = vmatpush.bf16.msra.mxu1 %v4357_v27 }
 0x1df   : > { %v3067_v35 = vsel %vm5478_vm13, %v3057_v11, %v3066_v16  ;;  %v2750_v55 = vsel %vm1193_vm7, %v2747_v36, %v2749_v34  ;;  %v2616_v4 = vrot.slane %v2614_v37, 1  ;;  %v3080_v11 = vrot.slane %v3078_v14, 2 }
 0x1e2   : > { %2532 = vmatmul.bf16.gmra.mxu0 %v2450_v47  ;;  %3274 = vmatpush.bf16.msra.mxu1 %v4356_v40 }
 0x1e6   : > { %3275 = vmatpush.bf16.msra.mxu1 %v4355_v44 }
 0x1e7   : > { %2817 = vmatmul.bf16.gmra.mxu2 %v2744_v1  ;;  %v3075_v1 = vor.u32 %v3074_v29, %v3071_v17 }
 0x1e9   : > { %v3076_v59 = vsel %vm5479_vm15, %v3066_v16, %v3075_v1 }
 0x1eb   : > { %2976 = vmatmul.bf16.vlgmr.msra.gmra.mxu3 %v2906_v43  ;;  %v2617_v43 = vshll.u32 %v2568_v3, 16 }
 0x1ed   : > { %2683 = vmatmul.bf16.vlgmr.msrb.gmra.mxu1 %v5155_v12  ;;  %v2908_v12 = vsel %vm1193_vm7, %v2905_v33, %v2907_v62  ;;  %v2858_v33 = vld [vmem:[#allocation2 + $0x30] sm:$0x3]  ;;  %v2619_v19 = vrot.slane %v2617_v43, 2  ;;  %v3081_v62 = vshll.u32 %v5283_v28, 16 }
 0x1ee   : > { %v2897_v57 = vunpack.c.l.b16 %v2858_v33 }
 0x1ef   : > { %v3083_v27 = vrot.slane %v3081_v62, 3 }
 0x1f0   : > { %v2903_v39 = vpack.c.b16 %v2897_v57, %v2897_v57 }
 0x1f1   : > { %v3084_v61 = vor.u32 %v3083_v27, %v3080_v11 }
 0x1f2   : > { %3147 = vmatmul.bf16.vlgmr.msra.gmra.mxu0 %v3049_v49 }
 0x1f7   : > { %2822 = vmatmul.bf16.gmra.mxu2 %v2746_v45  ;;  %v2620_v45 = vor.u32 %v2619_v19, %v2616_v4 }
 0x1f9   : > { %v2621_v36 = vsel %vm1021_vm10, %v5292_v48, %v2620_v45 }
 0x1fb   : > { %2981 = vmatmul.bf16.gmra.mxu3 %v2908_v12 }
 0x1fd   : > { %2688 = vmatmul.bf16.gmra.mxu1 %v5207_v41 }
 0x202   : > { %3152 = vmatmul.bf16.gmra.mxu0 %v3058_v54 }
 0x207   : > { %2827 = vmatmul.bf16.gmra.mxu2 %v2748_v20 }
 0x209   : > { %v2230_v41 = vpop.f32.mrf.mxu2 }
 0x20b   : > { %2986 = vmatmul.bf16.gmra.mxu3 %v2910_v50 }
 0x20d   : > { %2693 = vmatmul.bf16.gmra.mxu1 %v5261_v23  ;;  %v2912_v23 = vsel %vm1193_vm7, %v2909_v18, %v2911_v26 }
 0x211   : > { %v2232_v51 = vpop.f32.mrf.mxu2 }
 0x212   : > { %3157 = vmatmul.bf16.gmra.mxu0 %v3067_v35 }
 0x217   : > { %2832 = vmatmul.bf16.gmra.mxu2 %v2750_v55 }
 0x21a   : > { %v2143_v47 = vpop.f32.mrf.mxu1  ;;  %v2235_v15 = vpop.f32.mrf.mxu2 }
 0x21b   : > { %v2231_v0 = vadd.f32 %v2230_v41, %v2143_v47  ;;  %2991 = vmatmul.bf16.gmra.mxu3 %v2912_v23  ;;  %v3085_v41 = vsel %vm5480_vm1, %v3075_v1, %v3084_v61 }
 0x21d   : > { %2698 = vmatmul.bf16.gmra.mxu1 %v5300_v10  ;;  %v2349_v22 = vpop.f32.mrf.mxu3  ;;  %v2913_v10 = vrot.slane %v2903_v39, 2 }
 0x21e   : > { %v2374_v7 = vadd.f32 %v2349_v22, %v2231_v0 }
 0x21f   : > { %v2513_v8 = vpop.f32.mrf.mxu0  ;;  %v2914_v31 = vsel %vm1193_vm7, %v2911_v26, %v2913_v10 }
 0x220   : > { %v5343_v42 = vadd.f32 %v2513_v8, %v2374_v7 }
 0x222   : > { %v2145_v25 = vpop.f32.mrf.mxu1  ;;  %3162 = vmatmul.bf16.gmra.mxu0 %v3076_v59  ;;  %v2237_v49 = vpop.f32.mrf.mxu2 }
 0x223   : > { %v2233_v53 = vadd.f32 %v2232_v51, %v2145_v25 }
 0x225   : > { %v2351_v24 = vpop.f32.mrf.mxu3 }
 0x226   : > { %v2375_v5 = vadd.f32 %v2351_v24, %v2233_v53 }
 0x227   : > { %v2515_v2 = vpop.f32.mrf.mxu0 }
 0x228   : > { %v5348_v12 = vadd.f32 %v2515_v2, %v2375_v5 }
 0x22a   : > { %v2148_v30 = vpop.f32.mrf.mxu1  ;;  %v2240_v28 = vpop.f32.mrf.mxu2 }
 0x22b   : > { %v2236_v54 = vadd.f32 %v2235_v15, %v2148_v30  ;;  %2996 = vmatmul.bf16.gmra.mxu3 %v2914_v31 }
 0x22d   : > { %2703 = vmatmul.bf16.gmra.mxu1 %v2621_v36 }
 0x22e   : > { %v2354_v18 = vpop.f32.mrf.mxu3 }
 0x22f   : > { %v2376_v63 = vadd.f32 %v2354_v18, %v2236_v54  ;;  %v2518_v20 = vpop.f32.mrf.mxu0 }
 0x231   : > { %v2540_v38 = vadd.f32 %v2518_v20, %v2376_v63 }
 0x232   : > { %v2150_v40 = vpop.f32.mrf.mxu1  ;;  %3167 = vmatmul.bf16.gmra.mxu0 %v3085_v41  ;;  %v2242_v3 = vpop.f32.mrf.mxu2 }
 0x233   : > { %v2238_v50 = vadd.f32 %v2237_v49, %v2150_v40 }
 0x236   : > { %v2356_v21 = vpop.f32.mrf.mxu3 }
 0x237   : > { %v2377_v9 = vadd.f32 %v2356_v21, %v2238_v50  ;;  %v2520_v58 = vpop.f32.mrf.mxu0 }
 0x239   : > { %v2541_v16 = vadd.f32 %v2520_v58, %v2377_v9 }
 0x23a   : > { %v2153_v35 = vpop.f32.mrf.mxu1  ;;  %v2245_v55 = vpop.f32.mrf.mxu2 }
 0x23b   : > { %v2241_v34 = vadd.f32 %v2240_v28, %v2153_v35 }
 0x23d   : > { %3276 = vmatmul.bf16.vlgmr.msra.gmra.mxu1 %v5196_v56 }
 0x23e   : > { %v2359_v48 = vpop.f32.mrf.mxu3 }
 0x23f   : > { %v2378_v44 = vadd.f32 %v2359_v48, %v2241_v34  ;;  %v2523_v51 = vpop.f32.mrf.mxu0 }
 0x241   : > { %v2542_v26 = vadd.f32 %v2523_v51, %v2378_v44 }
 0x242   : > { %v2155_v60 = vpop.f32.mrf.mxu1  ;;  %v2247_v15 = vpop.f32.mrf.mxu2 }
 0x243   : > { %v2243_v13 = vadd.f32 %v2242_v3, %v2155_v60 }
 0x246   : > { %v2361_v47 = vpop.f32.mrf.mxu3 }
 0x247   : > { %v2379_v23 = vadd.f32 %v2361_v47, %v2243_v13  ;;  %v2525_v17 = vpop.f32.mrf.mxu0  ;;  %v5373_v47 = vld [vmem:[#allocation8 + $0x1] ss:$0 sm:$0xff] }
 0x249   : > { %v2543_v29 = vadd.f32 %v2525_v17, %v2379_v23 }
 0x24a   : > { %v2158_v0 = vpop.f32.mrf.mxu1  ;;  %v2250_v25 = vpop.f32.mrf.mxu2 }
 0x24b   : > { %v2246_v33 = vadd.f32 %v2245_v55, %v2158_v0  ;;  %v3327_v0 = vld [vmem:[%s4766_s5] sm:$0xff] }
 0x24d   : > { %3281 = vmatmul.bf16.gmra.mxu1 %v5244_v32 }
 0x24e   : > { %v2364_v22 = vpop.f32.mrf.mxu3 }
 0x24f   : > { %v2380_v1 = vadd.f32 %v2364_v22, %v2246_v33  ;;  %v2528_v57 = vpop.f32.mrf.mxu0 }
 0x251   : > { %v2544_v56 = vadd.f32 %v2528_v57, %v2380_v1  ;;  %v3331_v57 = vld [vmem:[%s4766_s5 + $0x8] sm:$0xff] }
 0x252   : > { %v2160_v7 = vpop.f32.mrf.mxu1  ;;  %v2252_v10 = vpop.f32.mrf.mxu2 }
 0x253   : > { %v2248_v8 = vadd.f32 %v2247_v15, %v2160_v7 }
 0x256   : > { %v2366_v37 = vpop.f32.mrf.mxu3 }
 0x257   : > { %v2381_v43 = vadd.f32 %v2366_v37, %v2248_v8  ;;  %v2530_v59 = vpop.f32.mrf.mxu0 }
 0x259   : > { %v2545_v39 = vadd.f32 %v2530_v59, %v2381_v43  ;;  %v3333_v59 = vrot.slane %v3331_v57, 6 }
 0x25a   : > { %v2163_v53 = vpop.f32.mrf.mxu1 }
 0x25b   : > { %v2251_v4 = vadd.f32 %v2250_v25, %v2163_v53 }
 0x25d   : > { %3286 = vmatmul.bf16.gmra.mxu1 %v5273_v6 }
 0x25e   : > { %v2369_v19 = vpop.f32.mrf.mxu3 }
 0x25f   : > { %v2382_v49 = vadd.f32 %v2369_v19, %v2251_v4  ;;  %v2533_v24 = vpop.f32.mrf.mxu0 }
 0x261   : > { %v2546_v32 = vadd.f32 %v2533_v24, %v2382_v49  ;;  %v3341_v24 = vld [vmem:[%s4766_s5 + $0x10] sm:$0xff] }
 0x262   : > { %v2165_v14 = vpop.f32.mrf.mxu1 }
 0x263   : > { %v2253_v62 = vadd.f32 %v2252_v10, %v2165_v14 }
 0x266   : > { %v2371_v5 = vpop.f32.mrf.mxu3 }
 0x267   : > { %v2383_v2 = vadd.f32 %v2371_v5, %v2253_v62  ;;  %v2535_v45 = vpop.f32.mrf.mxu0 }
 0x269   : > { %v2547_v30 = vadd.f32 %v2535_v45, %v2383_v2  ;;  %v3343_v2 = vrot.slane %v3341_v24, 4 }
 0x26a   : > { %v2684_v31 = vpop.f32.mrf.mxu1 }
 0x26b   : > { %v2709_v11 = vadd.f32 %v2684_v31, %v5343_v42  ;;  %v2813_v42 = vpop.f32.mrf.mxu2 }
 0x26d   : > { %3291 = vmatmul.bf16.gmra.mxu1 %v5303_v46  ;;  %v2838_v35 = vadd.f32 %v2813_v42, %v2709_v11 }
 0x26e   : > { %v2977_v46 = vpop.f32.mrf.mxu3 }
 0x272   : > { %v2686_v27 = vpop.f32.mrf.mxu1 }
 0x273   : > { %v2710_v54 = vadd.f32 %v2686_v27, %v5348_v12  ;;  %v3148_v12 = vpop.f32.mrf.mxu0 }
 0x276   : > { %v2979_v58 = vpop.f32.mrf.mxu3 }
 0x27a   : > { %v2689_v6 = vpop.f32.mrf.mxu1 }
 0x27b   : > { %v2711_v36 = vadd.f32 %v2689_v6, %v2540_v38  ;;  %v2815_v38 = vpop.f32.mrf.mxu2  ;;  %v3150_v3 = vpop.f32.mrf.mxu0  ;;  %v3351_v6 = vld [vmem:[%s4766_s5 + $0x18] sm:$0xff] }
 0x27c   : > { %v2839_v55 = vadd.f32 %v2815_v38, %v2710_v54 }
 0x27d   : > { %3296 = vmatmul.bf16.gmra.mxu1 %v5306_v52 }
 0x27e   : > { %v2982_v51 = vpop.f32.mrf.mxu3  ;;  %v3003_v33 = vadd.f32 %v2979_v58, %v2839_v55 }
 0x282   : > { %v2691_v18 = vpop.f32.mrf.mxu1 }
 0x283   : > { %v2712_v61 = vadd.f32 %v2691_v18, %v2541_v16  ;;  %v2818_v34 = vpop.f32.mrf.mxu2  ;;  %v3153_v60 = vpop.f32.mrf.mxu0 }
 0x284   : > { %v2840_v7 = vadd.f32 %v2818_v34, %v2711_v36 }
 0x286   : > { %v2984_v22 = vpop.f32.mrf.mxu3 }
 0x28a   : > { %v2694_v63 = vpop.f32.mrf.mxu1 }
 0x28b   : > { %v5361_v28 = vadd.f32 %v2694_v63, %v2542_v26  ;;  %v3002_v26 = vadd.f32 %v2977_v46, %v2838_v35  ;;  %v3155_v37 = vpop.f32.mrf.mxu0  ;;  %v3353_v46 = vrot.slane %v3351_v6, 2 }
 0x28d   : > { %v3173_v13 = vadd.f32 %v3148_v12, %v3002_v26 }
 0x28e   : > { %v2987_v49 = vpop.f32.mrf.mxu3 }
 0x292   : > { %v2696_v20 = vpop.f32.mrf.mxu1 }
 0x293   : > { %v5363_v40 = vadd.f32 %v2696_v20, %v2543_v29  ;;  %v2820_v29 = vpop.f32.mrf.mxu2  ;;  %v3158_v45 = vpop.f32.mrf.mxu0 }
 0x294   : > { %v2841_v10 = vadd.f32 %v2820_v29, %v2712_v61 }
 0x296   : > { %v2989_v20 = vpop.f32.mrf.mxu3 }
 0x29a   : > { %v2699_v41 = vpop.f32.mrf.mxu1 }
 0x29b   : > { %v5365_v50 = vadd.f32 %v2699_v41, %v2544_v56  ;;  %v3174_v56 = vadd.f32 %v3150_v3, %v3003_v33  ;;  %v2823_v4 = vpop.f32.mrf.mxu2  ;;  %v3160_v38 = vpop.f32.mrf.mxu0 }
 0x29c   : > { %v2842_v18 = vadd.f32 %v2823_v4, %v5361_v28 }
 0x2a2   : > { %v2701_v21 = vpop.f32.mrf.mxu1 }
 0x2a3   : > { %v5367_v9 = vadd.f32 %v2701_v21, %v2545_v39  ;;  %v3004_v39 = vadd.f32 %v2982_v51, %v2840_v7  ;;  %v2825_v54 = vpop.f32.mrf.mxu2  ;;  %v3006_v21 = vadd.f32 %v2987_v49, %v2842_v18  ;;  %v3385_v18 = vld [vmem:[%s4766_s5 + $0x38] sm:$0xff] }
 0x2a4   : > { %v2843_v35 = vadd.f32 %v2825_v54, %v5363_v40 }
 0x2a5   : > { %v3177_v3 = vadd.f32 %v3158_v45, %v3006_v21  ;;  %v3387_v21 = vrot.slane %v3385_v18, 2 }
 0x2aa   : > { %v2704_v52 = vpop.f32.mrf.mxu1 }
 0x2ab   : > { %v5369_v16 = vadd.f32 %v2704_v52, %v2546_v32  ;;  %v3175_v32 = vadd.f32 %v3153_v60, %v3004_v39  ;;  %v2992_v60 = vpop.f32.mrf.mxu3 }
 0x2b2   : > { %v2706_v48 = vpop.f32.mrf.mxu1 }
 0x2b3   : > { %v5371_v44 = vadd.f32 %v2706_v48, %v2547_v30  ;;  %v3005_v30 = vadd.f32 %v2984_v22, %v2841_v10  ;;  %v2828_v48 = vpop.f32.mrf.mxu2  ;;  %v2994_v7 = vpop.f32.mrf.mxu3 }
 0x2b5   : > { %v3176_v36 = vadd.f32 %v3155_v37, %v3005_v30  ;;  %v3365_v37 = vld [vmem:[%s4766_s5 + $0x28] sm:$0xff] }
 0x2b6   : > { %v3367_v4 = vrot.slane %v3365_v37, 6 }
 0x2ba   : > { %v3277_v23 = vpop.f32.mrf.mxu1 }
 0x2bb   : > { %v3302_v17 = vadd.f32 %v3277_v23, %v3173_v13  ;;  %v3007_v13 = vadd.f32 %v2989_v20, %v2843_v35  ;;  %v2830_v22 = vpop.f32.mrf.mxu2  ;;  %v2997_v10 = vpop.f32.mrf.mxu3 }
 0x2bd   : > { %v3317_v15 = vadd.f32 %v5373_v47, %v3302_v17  ;;  %v3163_v17 = vpop.f32.mrf.mxu0  ;;  %v3178_v29 = vadd.f32 %v3160_v38, %v3007_v13 }
 0x2bf   : > { %v3328_v1 = vadd.f32 %v3327_v0, %v3317_v15  ;;  %v2844_v0 = vadd.f32 %v2828_v48, %v5365_v50 }
 0x2c1   : > { %v3329_v8 = vmax.f32 %v3328_v1, 0.0  ;;  %v3361_v1 = vld [vmem:[%s4766_s5 + $0x20] sm:$0xff]  ;;  %v3008_v57 = vadd.f32 %v2992_v60, %v2844_v0 }
 0x2c2   : > { %v3279_v43 = vpop.f32.mrf.mxu1 }
 0x2c3   : > { %3330 = vst [vmem:[%s4776_s23] sm:$0xff] %v3329_v8  ;;  %v3303_v25 = vadd.f32 %v3279_v43, %v3174_v56  ;;  %v3179_v43 = vadd.f32 %v3163_v17, %v3008_v57  ;;  %v2833_v24 = vpop.f32.mrf.mxu2 }
 0x2c5   : > { %v3318_v53 = vadd.f32 %v5373_v47, %v3303_v25  ;;  %v2845_v25 = vadd.f32 %v2830_v22, %v5367_v9  ;;  %v3165_v50 = vpop.f32.mrf.mxu0 }
 0x2c7   : > { %v3335_v19 = vadd.f32 %v3333_v59, %v3318_v53 }
 0x2c9   : > { %v3337_v14 = vmax.f32 %v3335_v19, 0.0  ;;  %v3009_v19 = vadd.f32 %v2994_v7, %v2845_v25 }
 0x2ca   : > { %v3282_v62 = vpop.f32.mrf.mxu1 }
 0x2cb   : > { %3339 = vst [vmem:[%s4776_s23 + $0x6] sm:$0xfc] %v3337_v14  ;;  %v3304_v5 = vadd.f32 %v3282_v62, %v3175_v32  ;;  %v3375_v14 = vld [vmem:[%s4766_s5 + $0x30] sm:$0xff]  ;;  %v3180_v62 = vadd.f32 %v3165_v50, %v3009_v19 }
 0x2cc   : > { %v3377_v30 = vrot.slane %v3375_v14, 4 }
 0x2cd   : > { %v3319_v31 = vadd.f32 %v5373_v47, %v3304_v5  ;;  %v2846_v5 = vadd.f32 %v2833_v24, %v5369_v16 }
 0x2cf   : > { %v3336_v11 = vadd.f32 %v3333_v59, %v3319_v31  ;;  %v3345_v27 = vadd.f32 %v3343_v2, %v3319_v31  ;;  %v3168_v31 = vpop.f32.mrf.mxu0 }
 0x2d1   : > { %v3338_v63 = vmax.f32 %v3336_v11, 0.0  ;;  %v3347_v61 = vmax.f32 %v3345_v27, 0.0  ;;  %v3010_v11 = vadd.f32 %v2997_v10, %v2846_v5 }
 0x2d2   : > { %v3284_v41 = vpop.f32.mrf.mxu1 }
 0x2d3   : > { %3340 = vst [vmem:[%s4776_s23 + $0xe] sm:$0x3] %v3338_v63  ;;  %v3305_v42 = vadd.f32 %v3284_v41, %v3176_v36  ;;  %v2835_v36 = vpop.f32.mrf.mxu2  ;;  %v3181_v63 = vadd.f32 %v3168_v31, %v3010_v11  ;;  %v2999_v41 = vpop.f32.mrf.mxu3 }
 0x2d4   : > { %3349 = vst [vmem:[%s4776_s23 + $0xc] sm:$0xf0] %v3347_v61  ;;  %v2847_v61 = vadd.f32 %v2835_v36, %v5371_v44 }
 0x2d5   : > { %v3320_v12 = vadd.f32 %v5373_v47, %v3305_v42 }
 0x2d7   : > { %v3346_v58 = vadd.f32 %v3343_v2, %v3320_v12  ;;  %v3355_v52 = vadd.f32 %v3353_v46, %v3320_v12  ;;  %v3011_v12 = vadd.f32 %v2999_v41, %v2847_v61 }
 0x2d9   : > { %v3348_v28 = vmax.f32 %v3346_v58, 0.0  ;;  %v3357_v34 = vmax.f32 %v3355_v52, 0.0  ;;  %v3170_v58 = vpop.f32.mrf.mxu0 }
 0x2da   : > { %v3287_v51 = vpop.f32.mrf.mxu1  ;;  %v3182_v44 = vadd.f32 %v3170_v58, %v3011_v12 }
 0x2db   : > { %3350 = vst [vmem:[%s4776_s23 + $0x14] sm:$0xf] %v3348_v28  ;;  %v3306_v26 = vadd.f32 %v3287_v51, %v3177_v3 }
 0x2dc   : > { %3359 = vst [vmem:[%s4776_s23 + $0x12] sm:$0xc0] %v3357_v34 }
 0x2dd   : > { %v3321_v55 = vadd.f32 %v5373_v47, %v3306_v26 }
 0x2df   : > { %v3356_v23 = vadd.f32 %v3353_v46, %v3321_v55 }
 0x2e1   : > { %v3358_v40 = vmax.f32 %v3356_v23, 0.0 }
 0x2e2   : > { %v3289_v33 = vpop.f32.mrf.mxu1 }
 0x2e3   : > { %3360 = vst [vmem:[%s4776_s23 + $0x1a] sm:$0x3f] %v3358_v40  ;;  %v3307_v15 = vadd.f32 %v3289_v33, %v3178_v29 }
 0x2e5   : > { %v3322_v56 = vadd.f32 %v5373_v47, %v3307_v15 }
 0x2e7   : > { %v3362_v8 = vadd.f32 %v3361_v1, %v3322_v56 }
 0x2e9   : > { %v3363_v59 = vmax.f32 %v3362_v8, 0.0 }
 0x2ea   : > { %v3292_v39 = vpop.f32.mrf.mxu1 }
 0x2eb   : > { %3364 = vst [vmem:[%s4776_s23 + $0x20] sm:$0xff] %v3363_v59  ;;  %v3308_v53 = vadd.f32 %v3292_v39, %v3179_v43 }
 0x2ed   : > { %v3323_v49 = vadd.f32 %v5373_v47, %v3308_v53 }
 0x2ef   : > { %v3369_v32 = vadd.f32 %v3367_v4, %v3323_v49 }
 0x2f1   : > { %v3371_v2 = vmax.f32 %v3369_v32, 0.0 }
 0x2f2   : > { %v3294_v9 = vpop.f32.mrf.mxu1 }
 0x2f3   : > { %3373 = vst [vmem:[%s4776_s23 + $0x26] sm:$0xfc] %v3371_v2  ;;  %v3309_v45 = vadd.f32 %v3294_v9, %v3180_v62 }
 0x2f5   : > { %v3324_v27 = vadd.f32 %v5373_v47, %v3309_v45 }
 0x2f7   : > { %v3370_v54 = vadd.f32 %v3367_v4, %v3324_v27  ;;  %v3379_v6 = vadd.f32 %v3377_v30, %v3324_v27 }
 0x2f9   : > { %v3372_v16 = vmax.f32 %v3370_v54, 0.0  ;;  %v3381_v20 = vmax.f32 %v3379_v6, 0.0 }
 0x2fa   : > { %v3297_v42 = vpop.f32.mrf.mxu1 }
 0x2fb   : > { %3374 = vst [vmem:[%s4776_s23 + $0x2e] sm:$0x3] %v3372_v16  ;;  %v3310_v46 = vadd.f32 %v3297_v42, %v3181_v63 }
 0x2fc   : > { %3383 = vst [vmem:[%s4776_s23 + $0x2c] sm:$0xf0] %v3381_v20 }
 0x2fd   : > { %v3325_v38 = vadd.f32 %v5373_v47, %v3310_v46 }
 0x2ff   : > { %v3380_v52 = vadd.f32 %v3377_v30, %v3325_v38  ;;  %v3389_v3 = vadd.f32 %v3387_v21, %v3325_v38 }
 0x301   : > { %v3382_v35 = vmax.f32 %v3380_v52, 0.0  ;;  %v3391_v28 = vmax.f32 %v3389_v3, 0.0 }
 0x302   : > { %v3299_v34 = vpop.f32.mrf.mxu1 }
 0x303   : > { %3384 = vst [vmem:[%s4776_s23 + $0x34] sm:$0xf] %v3382_v35  ;;  %v3311_v48 = vadd.f32 %v3299_v34, %v3182_v44 }
 0x304   : > { %3393 = vst [vmem:[%s4776_s23 + $0x32] sm:$0xc0] %v3391_v28 }
 0x305   : > { %v3326_v51 = vadd.f32 %v5373_v47, %v3311_v48 }
 0x307   : > { %v3390_v26 = vadd.f32 %v3387_v21, %v3326_v51 }
 0x309   : > { %v3392_v60 = vmax.f32 %v3390_v26, 0.0 }
 0x30b   : > { %3394 = vst [vmem:[%s4776_s23 + $0x3a] sm:$0x3f] %v3392_v60 }
 0x30c   : > { %4589 = shalt.err (!%p4586_p13)
}
 0x30d   : > { %s4643_s25 = smov 128   ;;  %s4644_s26 = smov 8  }
 0x30e   : > { %4404 = dma.vmem_to_hbm [thread:$0]  (%p4735_p7), %s3409_s4, 1024, %s3411_s6, %s3396_s16, %s4643_s25, %s4643_s25, %s4644_s26  }
 0x30f PF: > { %s3425_s27 = sand.u32 1, %s4620_s12   ;;  %p5481_p0 = scmp.ge.s32.totalorder %s4632_s15, 2 }
 0x310   : > { %s3426_s5 = scalar_lea.sflag [#allocation5], %s3425_s27 }
 0x311   : > { %p4418_p3 = pnand %p5481_p0, %p4700_p6 }
 0x313   : > { %p4419_p5 = pneg %p4418_p3 }
 0x315   : > { %4615 = dma.done.wait (%p4419_p5), %s3426_s5, 1024  }
 0x316   : > { %4617 = vsyncadd (%p4419_p5), %s3426_s5, 4294966272  ;;  %p17_p10 = scmp.ge.s32.totalorder %s4722_s8, 4   ;;  %s5482_s12 = smov %s4624_s13 }
 0x317   : > { %s5483_s13 = smov %s4628_s14  ;;  %s5484_s14 = smov %s4731_s11 }
 0x318   : > { %s5485_s15 = smov %s4722_s8  ;;  %19 = sbr.rel (!%p17_p10) target bundleno = 6 (0x6), region = 107 }
 0x31d   :  { %3432 = vsyncpa [#allocation4], 1 }
 0x31e   :  { %3434 = vsyncpa [#allocation4 + $0x1], 1 }
 0x31f   :  { %3435 = vsyncpa [#allocation7], 1 }
 0x320   :  { %3436 = vsyncpa [#allocation5], 1 }
 0x321   :  { %3438 = vsyncpa [#allocation5 + $0x1], 1 }

</bundles_post_ra>
